<compile_context>
chip_gen: v5e
topology: v5e:2x2
jax: 0.10.0
libtpu: 0.0.40
codegen_flags: <defaults>
</compile_context>

<pallas_src>
import functools
import math

import jax
import jax.numpy as jnp
from jax.experimental import pallas as pl
from jax.experimental.pallas import tpu as pltpu


PATCH = 8
FEAT = 512
VMEM_LIMIT = 32 * 1024 * 1024


def _round_up(x, m):
    return ((x + m - 1) // m) * m


# ----------------------------------------------------------------------------
# Tiled matmul + bias (+ optional relu) — the MXU workhorse
# ----------------------------------------------------------------------------
def _matmul_bias_kernel(x_ref, w_ref, b_ref, o_ref, acc_ref, *, activation):
    k = pl.program_id(2)

    @pl.when(k == 0)
    def _():
        acc_ref[...] = jnp.zeros_like(acc_ref)

    acc_ref[...] += jnp.dot(
        x_ref[...], w_ref[...], preferred_element_type=jnp.float32
    )

    @pl.when(k == pl.num_programs(2) - 1)
    def _():
        acc = acc_ref[...] + b_ref[...]          # (1, tn) broadcast over rows
        if activation == "relu":
            acc = jnp.maximum(acc, 0.0)
        o_ref[...] = acc.astype(o_ref.dtype)


def matmul_bias(x, w, b, activation="none", tm=256, tn=256, tk=512):
    """act((M,K)@(K,N) + b).  bf16 MXU inputs, f32 accumulation, tiled + pipelined.

    M/N/K are zero-padded up to the tile grid so BlockSpecs stay (8,128)-aligned
    and output stores are lane-dense; the wrapper slices the result back.
    """
    M, K = x.shape
    K2, N = w.shape
    assert K == K2
    out_dtype = x.dtype

    tm = min(tm, _round_up(M, 8))
    tn = min(tn, _round_up(N, 128))
    tk = min(tk, _round_up(K, 128))
    Mp, Np, Kp = _round_up(M, tm), _round_up(N, tn), _round_up(K, tk)

    xb = x.astype(jnp.bfloat16)
    wb = w.astype(jnp.bfloat16)
    if (Mp, Kp) != (M, K):
        xb = jnp.pad(xb, ((0, Mp - M), (0, Kp - K)))
    if (Kp, Np) != (K, N):
        wb = jnp.pad(wb, ((0, Kp - K), (0, Np - N)))
    bp = b.reshape(1, N).astype(jnp.float32)
    if Np != N:
        bp = jnp.pad(bp, ((0, 0), (0, Np - N)))

    grid = (Mp // tm, Np // tn, Kp // tk)
    kernel = functools.partial(_matmul_bias_kernel, activation=activation)

    cost = pl.CostEstimate(
        flops=2 * Mp * Np * Kp,
        transcendentals=0,
        bytes_accessed=(Mp * Kp + Kp * Np) * 2 + Mp * Np * 4 + Np * 4,
    )

    out = pl.pallas_call(
        kernel,
        out_shape=jax.ShapeDtypeStruct((Mp, Np), out_dtype),
        grid_spec=pltpu.PrefetchScalarGridSpec(
            num_scalar_prefetch=0,
            grid=grid,
            in_specs=[
                pl.BlockSpec((tm, tk), lambda i, j, k: (i, k)),
                pl.BlockSpec((tk, tn), lambda i, j, k: (k, j)),
                pl.BlockSpec((1, tn), lambda i, j, k: (0, j)),
            ],
            out_specs=pl.BlockSpec((tm, tn), lambda i, j, k: (i, j)),
            scratch_shapes=[pltpu.VMEM((tm, tn), jnp.float32)],
        ),
        compiler_params=pltpu.CompilerParams(
            dimension_semantics=("parallel", "parallel", "arbitrary"),
            vmem_limit_bytes=VMEM_LIMIT,
        ),
        cost_estimate=cost,
    )(xb, wb, bp)

    if (Mp, Np) != (M, N):
        out = out[:M, :N]
    return out


# ----------------------------------------------------------------------------
# Fused attention + output projection + residual add
# ----------------------------------------------------------------------------
def _attn_block_kernel(qkv_ref, z0_ref, wo_ref, bo_ref, o_ref):
    """o = z0 + (softmax(q k^T) v) @ wo + bo.  Scale folded into wq at init.

    All batches handled in a single program (shapes are small); softmax stats
    kept in f32, matmuls run in bf16 on the MXU with f32 accumulation.
    """
    D = z0_ref.shape[-1]
    qkv = qkv_ref[...]
    q = qkv[:, :, :D].astype(jnp.bfloat16)
    k = qkv[:, :, D:2 * D].astype(jnp.bfloat16)
    v = qkv[:, :, 2 * D:].astype(jnp.bfloat16)

    s = jnp.einsum("bqd,bkd->bqk", q, k, preferred_element_type=jnp.float32)
    m = jnp.max(s, axis=-1, keepdims=True)
    p = jnp.exp(s - m)
    denom = jnp.sum(p, axis=-1, keepdims=True)
    attn = p * pl.reciprocal(denom, approx=True)            # EUP vrcp

    a = jnp.einsum("bqk,bkd->bqd", attn.astype(jnp.bfloat16), v,
                   preferred_element_type=jnp.float32)
    o = jnp.einsum("bsd,de->bse", a.astype(jnp.bfloat16), wo_ref[...],
                   preferred_element_type=jnp.float32)
    o_ref[...] = (z0_ref[...] + o + bo_ref[...]).astype(o_ref.dtype)


def attention_block(qkv, z0, wo, bo):
    """qkv: (B,S,3D), z0: (B,S,D) -> (B,S,D) with out-proj + residual fused."""
    # TODO(synk): for large S use a flash-style (B, q-tile) grid with online
    #             softmax instead of materializing the (S,S) score matrix.
    B, S, D = z0.shape
    wo_b = wo.astype(jnp.bfloat16)
    bo_r = bo.reshape(1, D).astype(jnp.float32)

    cost = pl.CostEstimate(
        flops=4 * B * S * S * D + 2 * B * S * D * D,
        transcendentals=B * S * S,
        bytes_accessed=4 * B * S * (3 * D) + 4 * B * S * D * 2 + 2 * D * D + 4 * D,
    )

    return pl.pallas_call(
        _attn_block_kernel,
        out_shape=jax.ShapeDtypeStruct((B, S, D), z0.dtype),
        in_specs=[
            pl.BlockSpec((B, S, 3 * D), lambda: (0, 0, 0)),
            pl.BlockSpec((B, S, D), lambda: (0, 0, 0)),
            pl.BlockSpec((D, D), lambda: (0, 0)),
            pl.BlockSpec((1, D), lambda: (0, 0)),
        ],
        out_specs=pl.BlockSpec((B, S, D), lambda: (0, 0, 0)),
        compiler_params=pltpu.CompilerParams(vmem_limit_bytes=VMEM_LIMIT),
        cost_estimate=cost,
    )(qkv, z0, wo_b, bo_r)


# ----------------------------------------------------------------------------
# Fused projection head: global-average-pool -> Linear -> ReLU -> Linear
# ----------------------------------------------------------------------------
def _mlp_head_kernel(z_ref, w1_ref, b1_ref, w2_ref, b2_ref, o_ref):
    pooled = jnp.mean(z_ref[...], axis=1)                    # (B, D), f32
    h = jnp.dot(pooled.astype(jnp.bfloat16), w1_ref[...],
                preferred_element_type=jnp.float32) + b1_ref[...]
    h = jnp.maximum(h, 0.0)                                  # hidden stays in VMEM
    out = jnp.dot(h.astype(jnp.bfloat16), w2_ref[...],
                  preferred_element_type=jnp.float32) + b2_ref[...]
    o_ref[...] = out.astype(o_ref.dtype)


def projection_head(z_tokens, p):
    """z_tokens: (B, S, 512) -> (B, num_classes); pool + 2-layer MLP in one kernel."""
    B, S, D = z_tokens.shape
    N = p["w2"].shape[1]
    Np = _round_up(N, 128)                                   # lane-dense output slab

    w1_b = p["w1"].astype(jnp.bfloat16)
    b1_r = p["b1"].reshape(1, D).astype(jnp.float32)
    w2_b = p["w2"].astype(jnp.bfloat16)
    b2_r = p["b2"].reshape(1, N).astype(jnp.float32)
    if Np != N:
        w2_b = jnp.pad(w2_b, ((0, 0), (0, Np - N)))
        b2_r = jnp.pad(b2_r, ((0, 0), (0, Np - N)))

    cost = pl.CostEstimate(
        flops=2 * B * D * D + 2 * B * D * Np + B * S * D,
        transcendentals=0,
        bytes_accessed=4 * B * S * D + 2 * D * D + 2 * D * Np + 4 * B * Np,
    )

    out = pl.pallas_call(
        _mlp_head_kernel,
        out_shape=jax.ShapeDtypeStruct((B, Np), z_tokens.dtype),
        in_specs=[
            pl.BlockSpec((B, S, D), lambda: (0, 0, 0)),
            pl.BlockSpec((D, D), lambda: (0, 0)),
            pl.BlockSpec((1, D), lambda: (0, 0)),
            pl.BlockSpec((D, Np), lambda: (0, 0)),
            pl.BlockSpec((1, Np), lambda: (0, 0)),
        ],
        out_specs=pl.BlockSpec((B, Np), lambda: (0, 0)),
        compiler_params=pltpu.CompilerParams(vmem_limit_bytes=VMEM_LIMIT),
        cost_estimate=cost,
    )(z_tokens, w1_b, b1_r, w2_b, b2_r)

    return out[:, :N] if Np != N else out


# ----------------------------------------------------------------------------
# Glue (layout transforms) in plain JAX
# ----------------------------------------------------------------------------
def _extract_patches(x, patch=PATCH):
    # x: (B, C, H, W) NCHW -> (B*Hf*Wf, C*patch*patch), channel-major per patch
    B, C, H, W = x.shape
    Hf, Wf = H // patch, W // patch
    xr = x.reshape(B, C, Hf, patch, Wf, patch)
    xr = xr.transpose(0, 2, 4, 1, 3, 5)                      # (B, Hf, Wf, C, p, p)
    return xr.reshape(B * Hf * Wf, C * patch * patch), (B, Hf, Wf)


def backbone(x, p):
    """ResAttEncoder stand-in: patchify conv (3->512, k=8, s=8) + residual attention.

    Returns z as (B, S, 512) tokens plus the (Hf, Wf) grid (token order = (hf, wf),
    which is exactly the NCHW feature map the reconstruction head needs).
    """
    patches, (B, Hf, Wf) = _extract_patches(x)
    S = Hf * Wf

    z0 = matmul_bias(patches, p["w_patch"], p["b_patch"])          # (B*S, 512)
    qkv = matmul_bias(z0, p["w_qkv"], p["b_qkv"])                  # (B*S, 1536) fused QKV

    z = attention_block(qkv.reshape(B, S, 3 * FEAT),
                        z0.reshape(B, S, FEAT),
                        p["wo"], p["bo"])                          # (B, S, 512)
    return z, (Hf, Wf)


def reconstruction_head(z_tokens, grid_hw, p):
    """ConvTranspose2d(512, 3, kernel_size=8, stride=8) — non-overlapping, so it's
    an exact matmul: (B*Hf*Wf, 512) @ (512, 3*8*8) + bias, then patch scatter.
    The N=192 output is padded to 256 inside matmul_bias and sliced back."""
    B, S, D = z_tokens.shape
    Hf, Wf = grid_hw
    zf = z_tokens.reshape(B * S, D)
    y = matmul_bias(zf, p["w_deconv"], p["b_deconv_full"])         # (B*S, 192)
    y = y.reshape(B, Hf, Wf, 3, PATCH, PATCH)
    y = y.transpose(0, 3, 1, 4, 2, 5)                              # (B, 3, Hf, 8, Wf, 8)
    return y.reshape(B, 3, Hf * PATCH, Wf * PATCH)


def encoder_forward(x1, x2, params):
    z_1, hw1 = backbone(x1, params)
    z_2, _ = backbone(x2, params)
    z_recon_1 = reconstruction_head(z_1, hw1, params)
    z_1p = projection_head(z_1, params)
    z_2p = projection_head(z_2, params)
    return (x1, z_recon_1, z_1p, z_2p)


# ----------------------------------------------------------------------------
# Deterministic parameter initialization (shapes implied by the module)
# ----------------------------------------------------------------------------
def init_params(num_classes=128, seed=0, dtype=jnp.float32):
    keys = jax.random.split(jax.random.PRNGKey(seed), 16)
    s = 0.02

    def nrm(k, shape):
        return (jax.random.normal(k, shape, dtype=jnp.float32) * s).astype(dtype)

    # patchify conv weight in PyTorch layout (out=512, in=3, 8, 8) -> (192, 512)
    w_patch_t = nrm(keys[0], (FEAT, 3, PATCH, PATCH))

    # fold the 1/sqrt(D) attention scale into wq / bq (zero runtime cost)
    scale = 1.0 / math.sqrt(FEAT)
    wq = nrm(keys[2], (FEAT, FEAT)) * scale
    bq = nrm(keys[3], (FEAT,)) * scale
    wk, bk = nrm(keys[4], (FEAT, FEAT)), nrm(keys[5], (FEAT,))
    wv, bv = nrm(keys[6], (FEAT, FEAT)), nrm(keys[7], (FEAT,))

    # ConvTranspose2d weight in PyTorch layout (in=512, out=3, 8, 8);
    # reshape + per-output-channel bias repeat hoisted here (not per forward)
    w_deconv_t = nrm(keys[14], (FEAT, 3, PATCH, PATCH))
    b_deconv = nrm(keys[15], (3,))

    params = {
        "w_patch": w_patch_t.reshape(FEAT, 3 * PATCH * PATCH).T,
        "b_patch": nrm(keys[1], (FEAT,)),
        # fused QKV projection: (512, 1536)
        "w_qkv": jnp.concatenate([wq, wk, wv], axis=1),
        "b_qkv": jnp.concatenate([bq, bk, bv], axis=0),
        "wo": nrm(keys[8], (FEAT, FEAT)), "bo": nrm(keys[9], (FEAT,)),
        # MLP projection head
        "w1": nrm(keys[10], (FEAT, FEAT)), "b1": nrm(keys[11], (FEAT,)),
        "w2": nrm(keys[12], (FEAT, num_classes)), "b2": nrm(keys[13], (num_classes,)),
        # deconv-as-matmul weight (512, 192) + repeated bias (192,)
        "w_deconv": w_deconv_t.reshape(FEAT, 3 * PATCH * PATCH),
        "b_deconv_full": jnp.repeat(b_deconv, PATCH * PATCH),
    }
    return params


if __name__ == "__main__":
    B, C, H, W = 2, 3, 16, 16
    key = jax.random.PRNGKey(0)
    k1, k2 = jax.random.split(key)
    x1 = jax.random.normal(k1, (B, C, H, W), dtype=jnp.float32)
    x2 = jax.random.normal(k2, (B, C, H, W), dtype=jnp.float32)

    params = init_params(num_classes=128, seed=0)

    fwd = jax.jit(encoder_forward)
    outs = fwd(x1, x2, params)
    outs = jax.block_until_ready(outs)

    x1_out, z_recon_1, z_1, z_2 = outs
    assert x1_out.shape == (B, C, H, W)
    assert z_recon_1.shape == (B, 3, H, W)
    assert z_1.shape == (B, 128)
    assert z_2.shape == (B, 128)
    assert all(bool(jnp.all(jnp.isfinite(o))) for o in (z_recon_1, z_1, z_2))
    print("KERNEL_OK")
</pallas_src>

<mosaic_0001>
module attributes {stable_mosaic.version = 11 : i64} {
  func.func @_matmul_bias_kernel(%arg0: i32, %arg1: i32, %arg2: i32, %arg3: memref<8x256xbf16, #tpu.memory_space<vmem>>, %arg4: memref<256x256xbf16, #tpu.memory_space<vmem>>, %arg5: memref<1x256xf32, #tpu.memory_space<vmem>>, %arg6: memref<8x256xf32, #tpu.memory_space<vmem>>, %arg7: memref<8x256xf32, #tpu.memory_space<vmem>>) attributes {dimension_semantics = [#tpu.dimension_semantics<parallel>, #tpu.dimension_semantics<parallel>, #tpu.dimension_semantics<arbitrary>], iteration_bounds = array<i64: 1, 2, 1>, scalar_prefetch = 0 : i64, scratch_operands = 1 : i64, tpu.core_type = #tpu.core_type<tc>, window_params = [{transform_indices = @transform_0, window_bounds = array<i64: 8, 256>}, {transform_indices = @transform_1, window_bounds = array<i64: 256, 256>}, {transform_indices = @transform_2, window_bounds = array<i64: 1, 256>}, {transform_indices = @transform_3, window_bounds = array<i64: 8, 256>}]} {
    %c0_i32 = arith.constant 0 : i32
    %0 = arith.cmpi eq, %arg2, %c0_i32 : i32
    %1 = arith.extui %0 : i1 to i32
    %c0_i32_0 = arith.constant 0 : i32
    %2 = arith.cmpi ne, %1, %c0_i32_0 : i32
    scf.if %2 {
      %cst_10 = arith.constant 0.000000e+00 : f32
      %12 = vector.broadcast %cst_10 : f32 to vector<8x256xf32>
      %c0_11 = arith.constant 0 : index
      %c0_12 = arith.constant 0 : index
      %13 = vector.load %arg7[%c0_11, %c0_12] : memref<8x256xf32, #tpu.memory_space<vmem>>, vector<8x256xf32>
      tpu.vector_store %arg7[%c0_11, %c0_12], %12 {strides = array<i32>} : memref<8x256xf32, #tpu.memory_space<vmem>>, vector<8x256xf32>,
    } else {
    }
    %c0 = arith.constant 0 : index
    %c0_1 = arith.constant 0 : index
    %3 = vector.load %arg7[%c0, %c0_1] : memref<8x256xf32, #tpu.memory_space<vmem>>, vector<8x256xf32>
    %c0_2 = arith.constant 0 : index
    %c0_3 = arith.constant 0 : index
    %4 = vector.load %arg3[%c0_2, %c0_3] : memref<8x256xbf16, #tpu.memory_space<vmem>>, vector<8x256xbf16>
    %c0_4 = arith.constant 0 : index
    %c0_5 = arith.constant 0 : index
    %5 = vector.load %arg4[%c0_4, %c0_5] : memref<256x256xbf16, #tpu.memory_space<vmem>>, vector<256x256xbf16>
    %cst = arith.constant dense<0.000000e+00> : vector<8x256xf32>
    %6 = tpu.matmul %4, %5, %cst {dimension_numbers = #tpu.dot_dimension_numbers<[1], [0], [0], [1], [0, 0, 1, 1], [], []>} : vector<8x256xbf16>, vector<256x256xbf16>, vector<8x256xf32> -> vector<8x256xf32>
    %7 = arith.addf %3, %6 : vector<8x256xf32>
    %c0_6 = arith.constant 0 : index
    %c0_7 = arith.constant 0 : index
    %8 = vector.load %arg7[%c0_6, %c0_7] : memref<8x256xf32, #tpu.memory_space<vmem>>, vector<8x256xf32>
    tpu.vector_store %arg7[%c0_6, %c0_7], %7 {strides = array<i32>} : memref<8x256xf32, #tpu.memory_space<vmem>>, vector<8x256xf32>,
    %c0_i32_8 = arith.constant 0 : i32
    %9 = arith.cmpi eq, %arg2, %c0_i32_8 : i32
    %10 = arith.extui %9 : i1 to i32
    %c0_i32_9 = arith.constant 0 : i32
    %11 = arith.cmpi ne, %10, %c0_i32_9 : i32
    scf.if %11 {
      %c0_10 = arith.constant 0 : index
      %c0_11 = arith.constant 0 : index
      %12 = vector.load %arg7[%c0_10, %c0_11] : memref<8x256xf32, #tpu.memory_space<vmem>>, vector<8x256xf32>
      %c0_12 = arith.constant 0 : index
      %c0_13 = arith.constant 0 : index
      %13 = vector.load %arg5[%c0_12, %c0_13] : memref<1x256xf32, #tpu.memory_space<vmem>>, vector<1x256xf32>
      %14 = vector.broadcast %13 : vector<1x256xf32> to vector<8x256xf32>
      %15 = arith.addf %12, %14 : vector<8x256xf32>
      %c0_14 = arith.constant 0 : index
      %c0_15 = arith.constant 0 : index
      %16 = vector.load %arg6[%c0_14, %c0_15] : memref<8x256xf32, #tpu.memory_space<vmem>>, vector<8x256xf32>
      tpu.vector_store %arg6[%c0_14, %c0_15], %15 {strides = array<i32>} : memref<8x256xf32, #tpu.memory_space<vmem>>, vector<8x256xf32>,
    } else {
    }
    return
  }
  func.func @transform_0(%arg0: i32, %arg1: i32, %arg2: i32) -> (i32, i32) {
    %c0_i32 = arith.constant 0 : i32
    return %arg0, %arg2 : i32, i32
  }
  func.func @transform_1(%arg0: i32, %arg1: i32, %arg2: i32) -> (i32, i32) {
    %c0_i32 = arith.constant 0 : i32
    return %arg2, %arg1 : i32, i32
  }
  func.func @transform_2(%arg0: i32, %arg1: i32, %arg2: i32) -> (i32, i32) {
    %c0_i32 = arith.constant 0 : i32
    %c0_i32_0 = arith.constant 0 : i32
    return %c0_i32, %arg1 : i32, i32
  }
  func.func @transform_3(%arg0: i32, %arg1: i32, %arg2: i32) -> (i32, i32) {
    %c0_i32 = arith.constant 0 : i32
    return %arg0, %arg1 : i32, i32
  }
}

module attributes {stable_mosaic.version = 11 : i64} {
  func.func @_matmul_bias_kernel(%arg0: i32, %arg1: i32, %arg2: i32, %arg3: memref<8x512xbf16, #tpu.memory_space<vmem>>, %arg4: memref<512x256xbf16, #tpu.memory_space<vmem>>, %arg5: memref<1x256xf32, #tpu.memory_space<vmem>>, %arg6: memref<8x256xf32, #tpu.memory_space<vmem>>, %arg7: memref<8x256xf32, #tpu.memory_space<vmem>>) attributes {dimension_semantics = [#tpu.dimension_semantics<parallel>, #tpu.dimension_semantics<parallel>, #tpu.dimension_semantics<arbitrary>], iteration_bounds = array<i64: 1, 6, 1>, scalar_prefetch = 0 : i64, scratch_operands = 1 : i64, tpu.core_type = #tpu.core_type<tc>, window_params = [{transform_indices = @transform_0, window_bounds = array<i64: 8, 512>}, {transform_indices = @transform_1, window_bounds = array<i64: 512, 256>}, {transform_indices = @transform_2, window_bounds = array<i64: 1, 256>}, {transform_indices = @transform_3, window_bounds = array<i64: 8, 256>}]} {
    %c0_i32 = arith.constant 0 : i32
    %0 = arith.cmpi eq, %arg2, %c0_i32 : i32
    %1 = arith.extui %0 : i1 to i32
    %c0_i32_0 = arith.constant 0 : i32
    %2 = arith.cmpi ne, %1, %c0_i32_0 : i32
    scf.if %2 {
      %cst_10 = arith.constant 0.000000e+00 : f32
      %12 = vector.broadcast %cst_10 : f32 to vector<8x256xf32>
      %c0_11 = arith.constant 0 : index
      %c0_12 = arith.constant 0 : index
      %13 = vector.load %arg7[%c0_11, %c0_12] : memref<8x256xf32, #tpu.memory_space<vmem>>, vector<8x256xf32>
      tpu.vector_store %arg7[%c0_11, %c0_12], %12 {strides = array<i32>} : memref<8x256xf32, #tpu.memory_space<vmem>>, vector<8x256xf32>,
    } else {
    }
    %c0 = arith.constant 0 : index
    %c0_1 = arith.constant 0 : index
    %3 = vector.load %arg7[%c0, %c0_1] : memref<8x256xf32, #tpu.memory_space<vmem>>, vector<8x256xf32>
    %c0_2 = arith.constant 0 : index
    %c0_3 = arith.constant 0 : index
    %4 = vector.load %arg3[%c0_2, %c0_3] : memref<8x512xbf16, #tpu.memory_space<vmem>>, vector<8x512xbf16>
    %c0_4 = arith.constant 0 : index
    %c0_5 = arith.constant 0 : index
    %5 = vector.load %arg4[%c0_4, %c0_5] : memref<512x256xbf16, #tpu.memory_space<vmem>>, vector<512x256xbf16>
    %cst = arith.constant dense<0.000000e+00> : vector<8x256xf32>
    %6 = tpu.matmul %4, %5, %cst {dimension_numbers = #tpu.dot_dimension_numbers<[1], [0], [0], [1], [0, 0, 1, 1], [], []>} : vector<8x512xbf16>, vector<512x256xbf16>, vector<8x256xf32> -> vector<8x256xf32>
    %7 = arith.addf %3, %6 : vector<8x256xf32>
    %c0_6 = arith.constant 0 : index
    %c0_7 = arith.constant 0 : index
    %8 = vector.load %arg7[%c0_6, %c0_7] : memref<8x256xf32, #tpu.memory_space<vmem>>, vector<8x256xf32>
    tpu.vector_store %arg7[%c0_6, %c0_7], %7 {strides = array<i32>} : memref<8x256xf32, #tpu.memory_space<vmem>>, vector<8x256xf32>,
    %c0_i32_8 = arith.constant 0 : i32
    %9 = arith.cmpi eq, %arg2, %c0_i32_8 : i32
    %10 = arith.extui %9 : i1 to i32
    %c0_i32_9 = arith.constant 0 : i32
    %11 = arith.cmpi ne, %10, %c0_i32_9 : i32
    scf.if %11 {
      %c0_10 = arith.constant 0 : index
      %c0_11 = arith.constant 0 : index
      %12 = vector.load %arg7[%c0_10, %c0_11] : memref<8x256xf32, #tpu.memory_space<vmem>>, vector<8x256xf32>
      %c0_12 = arith.constant 0 : index
      %c0_13 = arith.constant 0 : index
      %13 = vector.load %arg5[%c0_12, %c0_13] : memref<1x256xf32, #tpu.memory_space<vmem>>, vector<1x256xf32>
      %14 = vector.broadcast %13 : vector<1x256xf32> to vector<8x256xf32>
      %15 = arith.addf %12, %14 : vector<8x256xf32>
      %c0_14 = arith.constant 0 : index
      %c0_15 = arith.constant 0 : index
      %16 = vector.load %arg6[%c0_14, %c0_15] : memref<8x256xf32, #tpu.memory_space<vmem>>, vector<8x256xf32>
      tpu.vector_store %arg6[%c0_14, %c0_15], %15 {strides = array<i32>} : memref<8x256xf32, #tpu.memory_space<vmem>>, vector<8x256xf32>,
    } else {
    }
    return
  }
  func.func @transform_0(%arg0: i32, %arg1: i32, %arg2: i32) -> (i32, i32) {
    %c0_i32 = arith.constant 0 : i32
    return %arg0, %arg2 : i32, i32
  }
  func.func @transform_1(%arg0: i32, %arg1: i32, %arg2: i32) -> (i32, i32) {
    %c0_i32 = arith.constant 0 : i32
    return %arg2, %arg1 : i32, i32
  }
  func.func @transform_2(%arg0: i32, %arg1: i32, %arg2: i32) -> (i32, i32) {
    %c0_i32 = arith.constant 0 : i32
    %c0_i32_0 = arith.constant 0 : i32
    return %c0_i32, %arg1 : i32, i32
  }
  func.func @transform_3(%arg0: i32, %arg1: i32, %arg2: i32) -> (i32, i32) {
    %c0_i32 = arith.constant 0 : i32
    return %arg0, %arg1 : i32, i32
  }
}

module attributes {stable_mosaic.version = 11 : i64} {
  func.func @_mlp_head_kernel(%arg0: memref<2x4x512xf32, #tpu.memory_space<vmem>>, %arg1: memref<512x512xbf16, #tpu.memory_space<vmem>>, %arg2: memref<1x512xf32, #tpu.memory_space<vmem>>, %arg3: memref<512x128xbf16, #tpu.memory_space<vmem>>, %arg4: memref<1x128xf32, #tpu.memory_space<vmem>>, %arg5: memref<2x128xf32, #tpu.memory_space<vmem>>) attributes {dimension_semantics = [], scalar_prefetch = 0 : i64, scratch_operands = 0 : i64, tpu.core_type = #tpu.core_type<tc>} {
    %c0 = arith.constant 0 : index
    %c0_0 = arith.constant 0 : index
    %c0_1 = arith.constant 0 : index
    %0 = vector.load %arg0[%c0, %c0_0, %c0_1] : memref<2x4x512xf32, #tpu.memory_space<vmem>>, vector<2x4x512xf32>
    %cst = arith.constant dense<0.000000e+00> : vector<2x512xf32>
    %1 = vector.multi_reduction <add>, %0, %cst [1] : vector<2x4x512xf32> to vector<2x512xf32>
    %cst_2 = arith.constant 4.000000e+00 : f32
    %2 = vector.broadcast %cst_2 : f32 to vector<2x512xf32>
    %3 = arith.divf %1, %2 : vector<2x512xf32>
    %4 = arith.truncf %3 : vector<2x512xf32> to vector<2x512xbf16>
    %c0_3 = arith.constant 0 : index
    %c0_4 = arith.constant 0 : index
    %5 = vector.load %arg1[%c0_3, %c0_4] : memref<512x512xbf16, #tpu.memory_space<vmem>>, vector<512x512xbf16>
    %cst_5 = arith.constant dense<0.000000e+00> : vector<2x512xf32>
    %6 = tpu.matmul %4, %5, %cst_5 {dimension_numbers = #tpu.dot_dimension_numbers<[1], [0], [0], [1], [0, 0, 1, 1], [], []>} : vector<2x512xbf16>, vector<512x512xbf16>, vector<2x512xf32> -> vector<2x512xf32>
    %c0_6 = arith.constant 0 : index
    %c0_7 = arith.constant 0 : index
    %7 = vector.load %arg2[%c0_6, %c0_7] : memref<1x512xf32, #tpu.memory_space<vmem>>, vector<1x512xf32>
    %8 = vector.broadcast %7 : vector<1x512xf32> to vector<2x512xf32>
    %9 = arith.addf %6, %8 : vector<2x512xf32>
    %cst_8 = arith.constant 0.000000e+00 : f32
    %10 = vector.broadcast %cst_8 : f32 to vector<2x512xf32>
    %11 = arith.maximumf %9, %10 : vector<2x512xf32>
    %12 = arith.truncf %11 : vector<2x512xf32> to vector<2x512xbf16>
    %c0_9 = arith.constant 0 : index
    %c0_10 = arith.constant 0 : index
    %13 = vector.load %arg3[%c0_9, %c0_10] : memref<512x128xbf16, #tpu.memory_space<vmem>>, vector<512x128xbf16>
    %cst_11 = arith.constant dense<0.000000e+00> : vector<2x128xf32>
    %14 = tpu.matmul %12, %13, %cst_11 {dimension_numbers = #tpu.dot_dimension_numbers<[1], [0], [0], [1], [0, 0, 1, 1], [], []>} : vector<2x512xbf16>, vector<512x128xbf16>, vector<2x128xf32> -> vector<2x128xf32>
    %c0_12 = arith.constant 0 : index
    %c0_13 = arith.constant 0 : index
    %15 = vector.load %arg4[%c0_12, %c0_13] : memref<1x128xf32, #tpu.memory_space<vmem>>, vector<1x128xf32>
    %16 = vector.broadcast %15 : vector<1x128xf32> to vector<2x128xf32>
    %17 = arith.addf %14, %16 : vector<2x128xf32>
    %c0_14 = arith.constant 0 : index
    %c0_15 = arith.constant 0 : index
    %18 = vector.load %arg5[%c0_14, %c0_15] : memref<2x128xf32, #tpu.memory_space<vmem>>, vector<2x128xf32>
    tpu.vector_store %arg5[%c0_14, %c0_15], %17 {strides = array<i32>} : memref<2x128xf32, #tpu.memory_space<vmem>>, vector<2x128xf32>,
    return
  }
}

module attributes {stable_mosaic.version = 11 : i64} {
  func.func @_attn_block_kernel(%arg0: memref<2x4x1536xf32, #tpu.memory_space<vmem>>, %arg1: memref<2x4x512xf32, #tpu.memory_space<vmem>>, %arg2: memref<512x512xbf16, #tpu.memory_space<vmem>>, %arg3: memref<1x512xf32, #tpu.memory_space<vmem>>, %arg4: memref<2x4x512xf32, #tpu.memory_space<vmem>>) attributes {dimension_semantics = [], scalar_prefetch = 0 : i64, scratch_operands = 0 : i64, tpu.core_type = #tpu.core_type<tc>} {
    %c0 = arith.constant 0 : index
    %c0_0 = arith.constant 0 : index
    %c0_1 = arith.constant 0 : index
    %0 = vector.load %arg0[%c0, %c0_0, %c0_1] : memref<2x4x1536xf32, #tpu.memory_space<vmem>>, vector<2x4x1536xf32>
    %1 = vector.extract_strided_slice %0 {offsets = [0, 0, 0], sizes = [2, 4, 512], strides = [1, 1, 1]} : vector<2x4x1536xf32> to vector<2x4x512xf32>
    %2 = arith.truncf %1 : vector<2x4x512xf32> to vector<2x4x512xbf16>
    %3 = vector.extract_strided_slice %0 {offsets = [0, 0, 512], sizes = [2, 4, 512], strides = [1, 1, 1]} : vector<2x4x1536xf32> to vector<2x4x512xf32>
    %4 = arith.truncf %3 : vector<2x4x512xf32> to vector<2x4x512xbf16>
    %5 = vector.extract_strided_slice %0 {offsets = [0, 0, 1024], sizes = [2, 4, 512], strides = [1, 1, 1]} : vector<2x4x1536xf32> to vector<2x4x512xf32>
    %6 = arith.truncf %5 : vector<2x4x512xf32> to vector<2x4x512xbf16>
    "tpu.trace_start"() <{level = 10 : i32, message = "bqd,bkd->bqk"}> : () -> ()
    %cst = arith.constant dense<0.000000e+00> : vector<2x4x4xf32>
    %7 = tpu.matmul %2, %4, %cst {dimension_numbers = #tpu.dot_dimension_numbers<[2], [2], [1], [1], [0, 0, 0, 1, 1, 1], [0], [0]>} : vector<2x4x512xbf16>, vector<2x4x512xbf16>, vector<2x4x4xf32> -> vector<2x4x4xf32>
    "tpu.trace_stop"() : () -> ()
    %cst_2 = arith.constant dense<0xFF800000> : vector<2x4xf32>
    %8 = vector.multi_reduction <maximumf>, %7, %cst_2 [2] : vector<2x4x4xf32> to vector<2x4xf32>
    %9 = vector.shape_cast %8 : vector<2x4xf32> to vector<2x4x1xf32>
    %10 = vector.broadcast %9 : vector<2x4x1xf32> to vector<2x4x4xf32>
    %11 = arith.subf %7, %10 : vector<2x4x4xf32>
    %12 = math.exp %11 : vector<2x4x4xf32>
    %cst_3 = arith.constant dense<0.000000e+00> : vector<2x4xf32>
    %13 = vector.multi_reduction <add>, %12, %cst_3 [2] : vector<2x4x4xf32> to vector<2x4xf32>
    %14 = vector.shape_cast %13 : vector<2x4xf32> to vector<2x4x1xf32>
    %15 = tpu.reciprocal %14 {approx = true} : vector<2x4x1xf32> -> vector<2x4x1xf32>
    %16 = vector.broadcast %15 : vector<2x4x1xf32> to vector<2x4x4xf32>
    %17 = arith.mulf %12, %16 : vector<2x4x4xf32>
    %18 = arith.truncf %17 : vector<2x4x4xf32> to vector<2x4x4xbf16>
    "tpu.trace_start"() <{level = 10 : i32, message = "bqk,bkd->bqd"}> : () -> ()
    %cst_4 = arith.constant dense<0.000000e+00> : vector<2x4x512xf32>
    %19 = tpu.matmul %18, %6, %cst_4 {dimension_numbers = #tpu.dot_dimension_numbers<[2], [1], [1], [2], [0, 0, 0, 1, 1, 2], [0], [0]>} : vector<2x4x4xbf16>, vector<2x4x512xbf16>, vector<2x4x512xf32> -> vector<2x4x512xf32>
    "tpu.trace_stop"() : () -> ()
    %20 = arith.truncf %19 : vector<2x4x512xf32> to vector<2x4x512xbf16>
    %c0_5 = arith.constant 0 : index
    %c0_6 = arith.constant 0 : index
    %21 = vector.load %arg2[%c0_5, %c0_6] : memref<512x512xbf16, #tpu.memory_space<vmem>>, vector<512x512xbf16>
    "tpu.trace_start"() <{level = 10 : i32, message = "bsd,de->bse"}> : () -> ()
    %cst_7 = arith.constant dense<0.000000e+00> : vector<2x4x512xf32>
    %22 = tpu.matmul %20, %21, %cst_7 {dimension_numbers = #tpu.dot_dimension_numbers<[2], [0], [0, 1], [1], [0, 0, 0, 1, 1, 1], [], []>} : vector<2x4x512xbf16>, vector<512x512xbf16>, vector<2x4x512xf32> -> vector<2x4x512xf32>
    "tpu.trace_stop"() : () -> ()
    %c0_8 = arith.constant 0 : index
    %c0_9 = arith.constant 0 : index
    %c0_10 = arith.constant 0 : index
    %23 = vector.load %arg1[%c0_8, %c0_9, %c0_10] : memref<2x4x512xf32, #tpu.memory_space<vmem>>, vector<2x4x512xf32>
    %24 = arith.addf %23, %22 : vector<2x4x512xf32>
    %c0_11 = arith.constant 0 : index
    %c0_12 = arith.constant 0 : index
    %25 = vector.load %arg3[%c0_11, %c0_12] : memref<1x512xf32, #tpu.memory_space<vmem>>, vector<1x512xf32>
    %26 = vector.shape_cast %25 : vector<1x512xf32> to vector<1x1x512xf32>
    %27 = vector.broadcast %26 : vector<1x1x512xf32> to vector<2x4x512xf32>
    %28 = arith.addf %24, %27 : vector<2x4x512xf32>
    %c0_13 = arith.constant 0 : index
    %c0_14 = arith.constant 0 : index
    %c0_15 = arith.constant 0 : index
    %29 = vector.load %arg4[%c0_13, %c0_14, %c0_15] : memref<2x4x512xf32, #tpu.memory_space<vmem>>, vector<2x4x512xf32>
    tpu.vector_store %arg4[%c0_13, %c0_14, %c0_15], %28 {strides = array<i32>} : memref<2x4x512xf32, #tpu.memory_space<vmem>>, vector<2x4x512xf32>,
    return
  }
}

module attributes {stable_mosaic.version = 11 : i64} {
  func.func @_matmul_bias_kernel(%arg0: i32, %arg1: i32, %arg2: i32, %arg3: memref<8x256xbf16, #tpu.memory_space<vmem>>, %arg4: memref<256x256xbf16, #tpu.memory_space<vmem>>, %arg5: memref<1x256xf32, #tpu.memory_space<vmem>>, %arg6: memref<8x256xf32, #tpu.memory_space<vmem>>, %arg7: memref<8x256xf32, #tpu.memory_space<vmem>>) attributes {dimension_semantics = [#tpu.dimension_semantics<parallel>, #tpu.dimension_semantics<parallel>, #tpu.dimension_semantics<arbitrary>], iteration_bounds = array<i64: 1, 2, 1>, scalar_prefetch = 0 : i64, scratch_operands = 1 : i64, tpu.core_type = #tpu.core_type<tc>, window_params = [{transform_indices = @transform_0, window_bounds = array<i64: 8, 256>}, {transform_indices = @transform_1, window_bounds = array<i64: 256, 256>}, {transform_indices = @transform_2, window_bounds = array<i64: 1, 256>}, {transform_indices = @transform_3, window_bounds = array<i64: 8, 256>}]} {
    %c0_i32 = arith.constant 0 : i32
    %0 = arith.cmpi eq, %arg2, %c0_i32 : i32
    %1 = arith.extui %0 : i1 to i32
    %c0_i32_0 = arith.constant 0 : i32
    %2 = arith.cmpi ne, %1, %c0_i32_0 : i32
    scf.if %2 {
      %cst_10 = arith.constant 0.000000e+00 : f32
      %12 = vector.broadcast %cst_10 : f32 to vector<8x256xf32>
      %c0_11 = arith.constant 0 : index
      %c0_12 = arith.constant 0 : index
      %13 = vector.load %arg7[%c0_11, %c0_12] : memref<8x256xf32, #tpu.memory_space<vmem>>, vector<8x256xf32>
      tpu.vector_store %arg7[%c0_11, %c0_12], %12 {strides = array<i32>} : memref<8x256xf32, #tpu.memory_space<vmem>>, vector<8x256xf32>,
    } else {
    }
    %c0 = arith.constant 0 : index
    %c0_1 = arith.constant 0 : index
    %3 = vector.load %arg7[%c0, %c0_1] : memref<8x256xf32, #tpu.memory_space<vmem>>, vector<8x256xf32>
    %c0_2 = arith.constant 0 : index
    %c0_3 = arith.constant 0 : index
    %4 = vector.load %arg3[%c0_2, %c0_3] : memref<8x256xbf16, #tpu.memory_space<vmem>>, vector<8x256xbf16>
    %c0_4 = arith.constant 0 : index
    %c0_5 = arith.constant 0 : index
    %5 = vector.load %arg4[%c0_4, %c0_5] : memref<256x256xbf16, #tpu.memory_space<vmem>>, vector<256x256xbf16>
    %cst = arith.constant dense<0.000000e+00> : vector<8x256xf32>
    %6 = tpu.matmul %4, %5, %cst {dimension_numbers = #tpu.dot_dimension_numbers<[1], [0], [0], [1], [0, 0, 1, 1], [], []>} : vector<8x256xbf16>, vector<256x256xbf16>, vector<8x256xf32> -> vector<8x256xf32>
    %7 = arith.addf %3, %6 : vector<8x256xf32>
    %c0_6 = arith.constant 0 : index
    %c0_7 = arith.constant 0 : index
    %8 = vector.load %arg7[%c0_6, %c0_7] : memref<8x256xf32, #tpu.memory_space<vmem>>, vector<8x256xf32>
    tpu.vector_store %arg7[%c0_6, %c0_7], %7 {strides = array<i32>} : memref<8x256xf32, #tpu.memory_space<vmem>>, vector<8x256xf32>,
    %c0_i32_8 = arith.constant 0 : i32
    %9 = arith.cmpi eq, %arg2, %c0_i32_8 : i32
    %10 = arith.extui %9 : i1 to i32
    %c0_i32_9 = arith.constant 0 : i32
    %11 = arith.cmpi ne, %10, %c0_i32_9 : i32
    scf.if %11 {
      %c0_10 = arith.constant 0 : index
      %c0_11 = arith.constant 0 : index
      %12 = vector.load %arg7[%c0_10, %c0_11] : memref<8x256xf32, #tpu.memory_space<vmem>>, vector<8x256xf32>
      %c0_12 = arith.constant 0 : index
      %c0_13 = arith.constant 0 : index
      %13 = vector.load %arg5[%c0_12, %c0_13] : memref<1x256xf32, #tpu.memory_space<vmem>>, vector<1x256xf32>
      %14 = vector.broadcast %13 : vector<1x256xf32> to vector<8x256xf32>
      %15 = arith.addf %12, %14 : vector<8x256xf32>
      %c0_14 = arith.constant 0 : index
      %c0_15 = arith.constant 0 : index
      %16 = vector.load %arg6[%c0_14, %c0_15] : memref<8x256xf32, #tpu.memory_space<vmem>>, vector<8x256xf32>
      tpu.vector_store %arg6[%c0_14, %c0_15], %15 {strides = array<i32>} : memref<8x256xf32, #tpu.memory_space<vmem>>, vector<8x256xf32>,
    } else {
    }
    return
  }
  func.func @transform_0(%arg0: i32, %arg1: i32, %arg2: i32) -> (i32, i32) {
    %c0_i32 = arith.constant 0 : i32
    return %arg0, %arg2 : i32, i32
  }
  func.func @transform_1(%arg0: i32, %arg1: i32, %arg2: i32) -> (i32, i32) {
    %c0_i32 = arith.constant 0 : i32
    return %arg2, %arg1 : i32, i32
  }
  func.func @transform_2(%arg0: i32, %arg1: i32, %arg2: i32) -> (i32, i32) {
    %c0_i32 = arith.constant 0 : i32
    %c0_i32_0 = arith.constant 0 : i32
    return %c0_i32, %arg1 : i32, i32
  }
  func.func @transform_3(%arg0: i32, %arg1: i32, %arg2: i32) -> (i32, i32) {
    %c0_i32 = arith.constant 0 : i32
    return %arg0, %arg1 : i32, i32
  }
}

module attributes {stable_mosaic.version = 11 : i64} {
  func.func @_matmul_bias_kernel(%arg0: i32, %arg1: i32, %arg2: i32, %arg3: memref<8x512xbf16, #tpu.memory_space<vmem>>, %arg4: memref<512x256xbf16, #tpu.memory_space<vmem>>, %arg5: memref<1x256xf32, #tpu.memory_space<vmem>>, %arg6: memref<8x256xf32, #tpu.memory_space<vmem>>, %arg7: memref<8x256xf32, #tpu.memory_space<vmem>>) attributes {dimension_semantics = [#tpu.dimension_semantics<parallel>, #tpu.dimension_semantics<parallel>, #tpu.dimension_semantics<arbitrary>], iteration_bounds = array<i64: 1, 1, 1>, scalar_prefetch = 0 : i64, scratch_operands = 1 : i64, tpu.core_type = #tpu.core_type<tc>, window_params = [{transform_indices = @transform_0, window_bounds = array<i64: 8, 512>}, {transform_indices = @transform_1, window_bounds = array<i64: 512, 256>}, {transform_indices = @transform_2, window_bounds = array<i64: 1, 256>}, {transform_indices = @transform_3, window_bounds = array<i64: 8, 256>}]} {
    %c0_i32 = arith.constant 0 : i32
    %0 = arith.cmpi eq, %arg2, %c0_i32 : i32
    %1 = arith.extui %0 : i1 to i32
    %c0_i32_0 = arith.constant 0 : i32
    %2 = arith.cmpi ne, %1, %c0_i32_0 : i32
    scf.if %2 {
      %cst_10 = arith.constant 0.000000e+00 : f32
      %12 = vector.broadcast %cst_10 : f32 to vector<8x256xf32>
      %c0_11 = arith.constant 0 : index
      %c0_12 = arith.constant 0 : index
      %13 = vector.load %arg7[%c0_11, %c0_12] : memref<8x256xf32, #tpu.memory_space<vmem>>, vector<8x256xf32>
      tpu.vector_store %arg7[%c0_11, %c0_12], %12 {strides = array<i32>} : memref<8x256xf32, #tpu.memory_space<vmem>>, vector<8x256xf32>,
    } else {
    }
    %c0 = arith.constant 0 : index
    %c0_1 = arith.constant 0 : index
    %3 = vector.load %arg7[%c0, %c0_1] : memref<8x256xf32, #tpu.memory_space<vmem>>, vector<8x256xf32>
    %c0_2 = arith.constant 0 : index
    %c0_3 = arith.constant 0 : index
    %4 = vector.load %arg3[%c0_2, %c0_3] : memref<8x512xbf16, #tpu.memory_space<vmem>>, vector<8x512xbf16>
    %c0_4 = arith.constant 0 : index
    %c0_5 = arith.constant 0 : index
    %5 = vector.load %arg4[%c0_4, %c0_5] : memref<512x256xbf16, #tpu.memory_space<vmem>>, vector<512x256xbf16>
    %cst = arith.constant dense<0.000000e+00> : vector<8x256xf32>
    %6 = tpu.matmul %4, %5, %cst {dimension_numbers = #tpu.dot_dimension_numbers<[1], [0], [0], [1], [0, 0, 1, 1], [], []>} : vector<8x512xbf16>, vector<512x256xbf16>, vector<8x256xf32> -> vector<8x256xf32>
    %7 = arith.addf %3, %6 : vector<8x256xf32>
    %c0_6 = arith.constant 0 : index
    %c0_7 = arith.constant 0 : index
    %8 = vector.load %arg7[%c0_6, %c0_7] : memref<8x256xf32, #tpu.memory_space<vmem>>, vector<8x256xf32>
    tpu.vector_store %arg7[%c0_6, %c0_7], %7 {strides = array<i32>} : memref<8x256xf32, #tpu.memory_space<vmem>>, vector<8x256xf32>,
    %c0_i32_8 = arith.constant 0 : i32
    %9 = arith.cmpi eq, %arg2, %c0_i32_8 : i32
    %10 = arith.extui %9 : i1 to i32
    %c0_i32_9 = arith.constant 0 : i32
    %11 = arith.cmpi ne, %10, %c0_i32_9 : i32
    scf.if %11 {
      %c0_10 = arith.constant 0 : index
      %c0_11 = arith.constant 0 : index
      %12 = vector.load %arg7[%c0_10, %c0_11] : memref<8x256xf32, #tpu.memory_space<vmem>>, vector<8x256xf32>
      %c0_12 = arith.constant 0 : index
      %c0_13 = arith.constant 0 : index
      %13 = vector.load %arg5[%c0_12, %c0_13] : memref<1x256xf32, #tpu.memory_space<vmem>>, vector<1x256xf32>
      %14 = vector.broadcast %13 : vector<1x256xf32> to vector<8x256xf32>
      %15 = arith.addf %12, %14 : vector<8x256xf32>
      %c0_14 = arith.constant 0 : index
      %c0_15 = arith.constant 0 : index
      %16 = vector.load %arg6[%c0_14, %c0_15] : memref<8x256xf32, #tpu.memory_space<vmem>>, vector<8x256xf32>
      tpu.vector_store %arg6[%c0_14, %c0_15], %15 {strides = array<i32>} : memref<8x256xf32, #tpu.memory_space<vmem>>, vector<8x256xf32>,
    } else {
    }
    return
  }
  func.func @transform_0(%arg0: i32, %arg1: i32, %arg2: i32) -> (i32, i32) {
    %c0_i32 = arith.constant 0 : i32
    return %arg0, %arg2 : i32, i32
  }
  func.func @transform_1(%arg0: i32, %arg1: i32, %arg2: i32) -> (i32, i32) {
    %c0_i32 = arith.constant 0 : i32
    return %arg2, %arg1 : i32, i32
  }
  func.func @transform_2(%arg0: i32, %arg1: i32, %arg2: i32) -> (i32, i32) {
    %c0_i32 = arith.constant 0 : i32
    %c0_i32_0 = arith.constant 0 : i32
    return %c0_i32, %arg1 : i32, i32
  }
  func.func @transform_3(%arg0: i32, %arg1: i32, %arg2: i32) -> (i32, i32) {
    %c0_i32 = arith.constant 0 : i32
    return %arg0, %arg1 : i32, i32
  }
}

</mosaic_0001>

<bundles_post_ra>
// kernel: encoder_forward.9
= control target key start
LH: loop header
LB: loop body
LE: loop exit
PB: predicated region body
PF: predicated region fallthrough
CT: control target
= control target key end

     0   :  { %8 = vsyncpa [#allocation5], 0  ;;  %s1422_s0 = inlined_call_operand.vmem [shape: bf16[8,256], index: 0, kind: input, shape index: {}]   ;;  %s1423_s1 = inlined_call_operand.vmem [shape: bf16[256,512], index: 1, kind: input, shape index: {}]   ;;  %s1424_s2 = inlined_call_operand.hbm [shape: f32[1,512], index: 2, kind: input, shape index: {}]   ;;  %s1425_s3 = inlined_call_operand.vmem [shape: f32[8,512], index: 3, kind: output, shape index: {}]  }
   0x1   :  { %10 = vsyncpa [#allocation5 + $0x1], 0  ;;  %s1188_s12 = smov 0   ;;  %s1190_s13 = smov 0  }
   0x2   :  { %s1192_s14 = smov 0   ;;  %s1194_s15 = smov 0  }
   0x3   :  { %s1196_s16 = smov 0   ;;  %s1198_s17 = smov 0  }
   0x4 LB: > { %s860_s18 = sadd.s32 4294967295, %s1166_s17   ;;  %s31_s19 = sadd.s32 1, %s1162_s16  ;;  %s1166_s17 = sphi %s1198_s17, %s16_s17   ;;  %s1162_s16 = sphi %s1196_s16, %s1432_s16   ;;  %s1158_s15 = sphi %s1194_s15, %s1431_s15   ;;  %s1154_s14 = sphi %s1192_s14, %s1430_s14   ;;  %s1150_s13 = sphi %s1190_s13, %s1429_s13   ;;  %s1146_s12 = sphi %s1188_s12, %s1428_s12  }
   0x5   : > { %p33_p0 = scmp.ge.s32.totalorder %s31_s19, 2  ;;  %s72_s20 = sadd.s32 1, %s1154_s14 }
   0x6   : > { %p79_p1 = scmp.ne.s32.totalorder %s1154_s14, %s1150_s13  ;;  %p80_p2 = scmp.eq.s32.totalorder %s1166_s17, 0 }
   0x7   : > { %s1434_s19 = smov (%p33_p0, %s31_s19), 0  ;;  %p111_p4 = scmp.ne.s32.totalorder %s1150_s13, %s1146_s12 }
   0x8   : > { %p1224_p3 = por %p80_p2, %p79_p1  ;;  %s68_s22 = ssub.s32 %s1162_s16, %s1434_s19 }
   0x9   : > { %p112_p5 = scmp.eq.s32.totalorder %s860_s18, 0  ;;  %p70_p6 = scmp.eq.s32.totalorder %s68_s22, 0 }
   0xa   : > { %p864_p8 = scmp.ge.s32.totalorder %s1166_s17, 2 }
   0xb   : > { %p1231_p7 = por %p112_p5, %p111_p4 }
   0xc   : > { %s1236_s24 = scalar_select %p70_p6, %s1154_s14, %s72_s20  }
   0xd   : > { %172 = sbr.rel (%p864_p8) target bundleno = 59 (0x3b), region = 20 }
  0x12   : > { %175 = sbr.rel (!%p1224_p3) target bundleno = 54 (0x36), region = 24  ;;  %s177_s25 = sand.u32 (%p1224_p3), 1, %s1154_s14  }
  0x13   : > { %s1005_s26 = sshll.u32 (%p1224_p3), %s1162_s16, 3  ;;  %s865_s27 = sshll.u32 (%p1224_p3), %s177_s25, 8 }
  0x14   : > { %s1246_s30 = scalar_lea.vmem (%p1224_p3), %s1423_s1, %s1005_s26  ;;  %s1251_s4 = scalar_lea.vmem (%p1224_p3), [#allocation3], %s865_s27 }
  0x15   : > { %v276_v0 = vld [vmem:[%s1246_s30] sm:$0xff] (%p1224_p3)  ;;  %v278_v1 = vld [vmem:[%s1246_s30 + $0x10] sm:$0xff] (%p1224_p3) }
  0x16   : > { %v280_v2 = vld [vmem:[%s1246_s30 + $0x20] sm:$0xff] (%p1224_p3)  ;;  %277 = vst [vmem:[%s1251_s4] sm:$0xff] (%p1224_p3), %v276_v0  ;;  %v282_v3 = vld [vmem:[%s1246_s30 + $0x30] sm:$0xff] (%p1224_p3) }
  0x17   : > { %279 = vst [vmem:[%s1251_s4 + $0x8] sm:$0xff] %v278_v1  ;;  %v284_v4 = vld [vmem:[%s1246_s30 + $0x40] sm:$0xff]  ;;  %v286_v5 = vld [vmem:[%s1246_s30 + $0x50] sm:$0xff] }
  0x18   : > { %281 = vst [vmem:[%s1251_s4 + $0x10] sm:$0xff] %v280_v2  ;;  %v288_v6 = vld [vmem:[%s1246_s30 + $0x60] sm:$0xff]  ;;  %v290_v7 = vld [vmem:[%s1246_s30 + $0x70] sm:$0xff] }
  0x19   : > { %283 = vst [vmem:[%s1251_s4 + $0x18] sm:$0xff] %v282_v3  ;;  %v292_v8 = vld [vmem:[%s1246_s30 + $0x80] sm:$0xff]  ;;  %v294_v9 = vld [vmem:[%s1246_s30 + $0x90] sm:$0xff] }
  0x1a   : > { %285 = vst [vmem:[%s1251_s4 + $0x20] sm:$0xff] %v284_v4  ;;  %v296_v10 = vld [vmem:[%s1246_s30 + $0xa0] sm:$0xff]  ;;  %v298_v11 = vld [vmem:[%s1246_s30 + $0xb0] sm:$0xff] }
  0x1b   : > { %287 = vst [vmem:[%s1251_s4 + $0x28] sm:$0xff] %v286_v5  ;;  %v300_v12 = vld [vmem:[%s1246_s30 + $0xc0] sm:$0xff]  ;;  %v302_v13 = vld [vmem:[%s1246_s30 + $0xd0] sm:$0xff] }
  0x1c   : > { %289 = vst [vmem:[%s1251_s4 + $0x30] sm:$0xff] %v288_v6  ;;  %v304_v14 = vld [vmem:[%s1246_s30 + $0xe0] sm:$0xff]  ;;  %v306_v15 = vld [vmem:[%s1246_s30 + $0xf0] sm:$0xff] }
  0x1d   : > { %291 = vst [vmem:[%s1251_s4 + $0x38] sm:$0xff] %v290_v7  ;;  %v308_v16 = vld [vmem:[%s1246_s30 + $0x100] sm:$0xff]  ;;  %v310_v17 = vld [vmem:[%s1246_s30 + $0x110] sm:$0xff] }
  0x1e   : > { %293 = vst [vmem:[%s1251_s4 + $0x40] sm:$0xff] %v292_v8  ;;  %v312_v18 = vld [vmem:[%s1246_s30 + $0x120] sm:$0xff]  ;;  %v314_v19 = vld [vmem:[%s1246_s30 + $0x130] sm:$0xff] }
  0x1f   : > { %295 = vst [vmem:[%s1251_s4 + $0x48] sm:$0xff] %v294_v9  ;;  %v316_v20 = vld [vmem:[%s1246_s30 + $0x140] sm:$0xff]  ;;  %v318_v21 = vld [vmem:[%s1246_s30 + $0x150] sm:$0xff] }
  0x20   : > { %297 = vst [vmem:[%s1251_s4 + $0x50] sm:$0xff] %v296_v10  ;;  %v320_v22 = vld [vmem:[%s1246_s30 + $0x160] sm:$0xff]  ;;  %v322_v23 = vld [vmem:[%s1246_s30 + $0x170] sm:$0xff] }
  0x21   : > { %299 = vst [vmem:[%s1251_s4 + $0x58] sm:$0xff] %v298_v11  ;;  %v324_v24 = vld [vmem:[%s1246_s30 + $0x180] sm:$0xff]  ;;  %v326_v25 = vld [vmem:[%s1246_s30 + $0x190] sm:$0xff] }
  0x22   : > { %301 = vst [vmem:[%s1251_s4 + $0x60] sm:$0xff] %v300_v12  ;;  %v328_v26 = vld [vmem:[%s1246_s30 + $0x1a0] sm:$0xff]  ;;  %v330_v27 = vld [vmem:[%s1246_s30 + $0x1b0] sm:$0xff] }
  0x23   : > { %303 = vst [vmem:[%s1251_s4 + $0x68] sm:$0xff] %v302_v13  ;;  %v332_v28 = vld [vmem:[%s1246_s30 + $0x1c0] sm:$0xff]  ;;  %v334_v29 = vld [vmem:[%s1246_s30 + $0x1d0] sm:$0xff] }
  0x24   : > { %305 = vst [vmem:[%s1251_s4 + $0x70] sm:$0xff] %v304_v14  ;;  %v336_v30 = vld [vmem:[%s1246_s30 + $0x1e0] sm:$0xff]  ;;  %v338_v31 = vld [vmem:[%s1246_s30 + $0x1f0] sm:$0xff] }
  0x25   : > { %307 = vst [vmem:[%s1251_s4 + $0x78] sm:$0xff] %v306_v15 }
  0x26   : > { %309 = vst [vmem:[%s1251_s4 + $0x80] sm:$0xff] %v308_v16 }
  0x27   : > { %311 = vst [vmem:[%s1251_s4 + $0x88] sm:$0xff] %v310_v17 }
  0x28   : > { %313 = vst [vmem:[%s1251_s4 + $0x90] sm:$0xff] %v312_v18 }
  0x29   : > { %315 = vst [vmem:[%s1251_s4 + $0x98] sm:$0xff] %v314_v19 }
  0x2a   : > { %317 = vst [vmem:[%s1251_s4 + $0xa0] sm:$0xff] %v316_v20 }
  0x2b   : > { %319 = vst [vmem:[%s1251_s4 + $0xa8] sm:$0xff] %v318_v21 }
  0x2c   : > { %321 = vst [vmem:[%s1251_s4 + $0xb0] sm:$0xff] %v320_v22 }
  0x2d   : > { %323 = vst [vmem:[%s1251_s4 + $0xb8] sm:$0xff] %v322_v23 }
  0x2e   : > { %325 = vst [vmem:[%s1251_s4 + $0xc0] sm:$0xff] %v324_v24 }
  0x2f   : > { %327 = vst [vmem:[%s1251_s4 + $0xc8] sm:$0xff] %v326_v25 }
  0x30   : > { %329 = vst [vmem:[%s1251_s4 + $0xd0] sm:$0xff] %v328_v26 }
  0x31   : > { %331 = vst [vmem:[%s1251_s4 + $0xd8] sm:$0xff] %v330_v27 }
  0x32   : > { %333 = vst [vmem:[%s1251_s4 + $0xe0] sm:$0xff] %v332_v28 }
  0x33   : > { %335 = vst [vmem:[%s1251_s4 + $0xe8] sm:$0xff] %v334_v29 }
  0x34   : > { %337 = vst [vmem:[%s1251_s4 + $0xf0] sm:$0xff] %v336_v30 }
  0x35   : > { %339 = vst [vmem:[%s1251_s4 + $0xf8] sm:$0xff] %v338_v31 }
  0x36 PF: > { %s346_s5 = sand.u32 1, %s1154_s14   ;;  %s869_s6 = sshll.u32 %s1162_s16, 1 }
  0x37   : > { %s868_s7 = sshll.u32 %s346_s5, 1  ;;  %s354_s10 = scalar_lea.hbm %s1424_s2, %s869_s6 }
  0x38   : > { %s356_s11 = sshll.u32 %s354_s10, 4  ;;  %s350_s12 = scalar_lea.vmem [#allocation4], %s868_s7  ;;  %s357_s11 = int_to_ptr.hbm [resolvable:$true] %s356_s11 }
  0x39   : > { %s358_s18 = sshll.u32 %s350_s12, 4  ;;  %s347_s20 = scalar_lea.sflag [#allocation5], %s346_s5  ;;  %s359_s18 = int_to_ptr.vmem [resolvable:$true] %s358_s18 }
  0x3a   : > { %1038 = dma.hbm_to_vmem [thread:$0]  (%p1224_p3), %s357_s11, 32, %s359_s18, %s347_s20  }
  0x3b PF: > { %p870_p9 = scmp.ge.s32.totalorder %s1166_s17, 1  ;;  %p363_p10 = scmp.lt.s32.totalorder %s1166_s17, 3 }
  0x3d   : > { %p364_p11 = pnand %p870_p9, %p363_p10 }
  0x3e   : > { %s370_s22 = sand.u32 (!%p364_p11), 1, %s1150_s13  }
  0x3f   : > { %367 = sbr.rel (%p364_p11) target bundleno = 246 (0xf6), region = 66  ;;  %s871_s25 = sshll.u32 (!%p364_p11), %s370_s22, 8 }
  0x40   : > { %s872_s26 = sshll.u32 (!%p364_p11), %s370_s22, 1  ;;  %s1324_s27 = scalar_lea.vmem (!%p364_p11), [#allocation3], %s871_s25 }
  0x41   : > { %s377_s28 = scalar_lea.sflag (!%p364_p11), [#allocation5], %s370_s22  ;;  %s1326_s29 = scalar_lea.vmem (!%p364_p11), [#allocation4], %s872_s26 }
  0x44   : > { %1141 = dma.done.wait (%p1231_p7), %s377_s28, 32  }
  0x45   : > { %1143 = vsyncadd (%p1231_p7), %s377_s28, 4294967264  ;;  %v933_v32 = vld [vmem:[%s1324_s27 + $0x70] sm:$0xf]  ;;  %v1021_v33 = vld [vmem:[%s1324_s27 + $0x74] sm:$0xf0]  ;;  %s873_s30 = sshll.u32 %s1158_s15, 1 }
  0x46   : > { %v997_v34 = vld [vmem:[%s1324_s27 + $0xf0] sm:$0xf]  ;;  %v934_v35 = vor.u32 %v1021_v33, %v933_v32  ;;  %v1037_v36 = vld [vmem:[%s1324_s27 + $0xf4] sm:$0xf0]  ;;  %v1020_v37 = vld [vmem:[%s1324_s27 + $0x74] sm:$0xf] }
  0x47   : > { %v935_v38 = vld [vmem:[%s1324_s27 + $0x78] sm:$0xf0]  ;;  %v998_v39 = vor.u32 %v1037_v36, %v997_v34  ;;  %v1036_v41 = vld [vmem:[%s1324_s27 + $0xf4] sm:$0xf]  ;;  %v925_v43 = vld [vmem:[%s1324_s27 + $0x60] sm:$0xf] }
  0x48   : > { %v938_v40 = vor.u32 %v1020_v37, %v935_v38  ;;  %v999_v42 = vld [vmem:[%s1324_s27 + $0xf8] sm:$0xf0]  ;;  %652 = vmatpush.bf16.msra.mxu0 %v934_v35  ;;  %v1019_v45 = vld [vmem:[%s1324_s27 + $0x64] sm:$0xf0]  ;;  %v989_v46 = vld [vmem:[%s1324_s27 + $0xe0] sm:$0xf] }
  0x49   : > { %v1002_v44 = vor.u32 %v1036_v41, %v999_v42  ;;  %v1035_v47 = vld [vmem:[%s1324_s27 + $0xe4] sm:$0xf0]  ;;  %665 = vmatpush.bf16.msra.mxu1 %v998_v39  ;;  %v926_v48 = vor.u32 %v1019_v45, %v925_v43  ;;  %v1018_v50 = vld [vmem:[%s1324_s27 + $0x64] sm:$0xf]  ;;  %v927_v51 = vld [vmem:[%s1324_s27 + $0x68] sm:$0xf0] }
  0x4a   : > { %678 = vmatpush.bf16.msra.mxu2 %v938_v40  ;;  %v990_v49 = vor.u32 %v1035_v47, %v989_v46  ;;  %v1034_v52 = vld [vmem:[%s1324_s27 + $0xe4] sm:$0xf]  ;;  %v930_v53 = vor.u32 %v1018_v50, %v927_v51  ;;  %v991_v54 = vld [vmem:[%s1324_s27 + $0xe8] sm:$0xf0]  ;;  %v917_v55 = vld [vmem:[%s1324_s27 + $0x50] sm:$0xf] }
  0x4b   : > { %691 = vmatpush.bf16.msra.mxu3 %v1002_v44  ;;  %v1017_v56 = vld [vmem:[%s1324_s27 + $0x54] sm:$0xf0]  ;;  %v994_v57 = vor.u32 %v1034_v52, %v991_v54  ;;  %v981_v58 = vld [vmem:[%s1324_s27 + $0xd0] sm:$0xf]  ;;  %v1016_v60 = vld [vmem:[%s1324_s27 + $0x54] sm:$0xf] }
  0x4c   : > { %v1033_v59 = vld [vmem:[%s1324_s27 + $0xd4] sm:$0xf0]  ;;  %653 = vmatpush.bf16.msra.mxu0 %v926_v48  ;;  %v918_v61 = vor.u32 %v1017_v56, %v917_v55  ;;  %v919_v62 = vld [vmem:[%s1324_s27 + $0x58] sm:$0xf0]  ;;  %v1032_v63 = vld [vmem:[%s1324_s27 + $0xd4] sm:$0xf] }
  0x4d   : > { %v983_v0 = vld [vmem:[%s1324_s27 + $0xd8] sm:$0xf0]  ;;  %666 = vmatpush.bf16.msra.mxu1 %v990_v49  ;;  %v982_v1 = vor.u32 %v1033_v59, %v981_v58  ;;  %v922_v2 = vor.u32 %v1016_v60, %v919_v62  ;;  %v909_v3 = vld [vmem:[%s1324_s27 + $0x40] sm:$0xf]  ;;  %v1015_v4 = vld [vmem:[%s1324_s27 + $0x44] sm:$0xf0] }
  0x4e   : > { %679 = vmatpush.bf16.msra.mxu2 %v930_v53  ;;  %v973_v5 = vld [vmem:[%s1324_s27 + $0xc0] sm:$0xf]  ;;  %v986_v6 = vor.u32 %v1032_v63, %v983_v0  ;;  %v1031_v7 = vld [vmem:[%s1324_s27 + $0xc4] sm:$0xf0]  ;;  %v1014_v8 = vld [vmem:[%s1324_s27 + $0x44] sm:$0xf]  ;;  %v910_v12 = vor.u32 %v1015_v4, %v909_v3 }
  0x4f   : > { %692 = vmatpush.bf16.msra.mxu3 %v994_v57  ;;  %v911_v9 = vld [vmem:[%s1324_s27 + $0x48] sm:$0xf0]  ;;  %v1030_v10 = vld [vmem:[%s1324_s27 + $0xc4] sm:$0xf]  ;;  %v974_v13 = vor.u32 %v1031_v7, %v973_v5  ;;  %v901_v15 = vld [vmem:[%s1324_s27 + $0x30] sm:$0xf] }
  0x50   : > { %v975_v11 = vld [vmem:[%s1324_s27 + $0xc8] sm:$0xf0]  ;;  %654 = vmatpush.bf16.msra.mxu0 %v918_v61  ;;  %v914_v14 = vor.u32 %v1014_v8, %v911_v9  ;;  %v1013_v16 = vld [vmem:[%s1324_s27 + $0x34] sm:$0xf0]  ;;  %v965_v17 = vld [vmem:[%s1324_s27 + $0xb0] sm:$0xf] }
  0x51   : > { %667 = vmatpush.bf16.msra.mxu1 %v982_v1  ;;  %v978_v18 = vor.u32 %v1030_v10, %v975_v11  ;;  %v1029_v19 = vld [vmem:[%s1324_s27 + $0xb4] sm:$0xf0]  ;;  %v1012_v20 = vld [vmem:[%s1324_s27 + $0x34] sm:$0xf]  ;;  %v903_v21 = vld [vmem:[%s1324_s27 + $0x38] sm:$0xf0]  ;;  %v902_v24 = vor.u32 %v1013_v16, %v901_v15 }
  0x52   : > { %680 = vmatpush.bf16.msra.mxu2 %v922_v2  ;;  %v1028_v22 = vld [vmem:[%s1324_s27 + $0xb4] sm:$0xf]  ;;  %v967_v23 = vld [vmem:[%s1324_s27 + $0xb8] sm:$0xf0]  ;;  %v966_v25 = vor.u32 %v1029_v19, %v965_v17  ;;  %v906_v26 = vor.u32 %v1012_v20, %v903_v21  ;;  %v893_v27 = vld [vmem:[%s1324_s27 + $0x20] sm:$0xf] }
  0x53   : > { %693 = vmatpush.bf16.msra.mxu3 %v986_v6  ;;  %v1011_v28 = vld [vmem:[%s1324_s27 + $0x24] sm:$0xf0]  ;;  %v957_v29 = vld [vmem:[%s1324_s27 + $0xa0] sm:$0xf]  ;;  %v970_v30 = vor.u32 %v1028_v22, %v967_v23  ;;  %v1010_v32 = vld [vmem:[%s1324_s27 + $0x24] sm:$0xf] }
  0x54   : > { %655 = vmatpush.bf16.msra.mxu0 %v910_v12  ;;  %v1027_v31 = vld [vmem:[%s1324_s27 + $0xa4] sm:$0xf0]  ;;  %v895_v33 = vld [vmem:[%s1324_s27 + $0x28] sm:$0xf0]  ;;  %v1026_v34 = vld [vmem:[%s1324_s27 + $0xa4] sm:$0xf]  ;;  %v894_v36 = vor.u32 %v1011_v28, %v893_v27 }
  0x55   : > { %668 = vmatpush.bf16.msra.mxu1 %v974_v13  ;;  %v959_v35 = vld [vmem:[%s1324_s27 + $0xa8] sm:$0xf0]  ;;  %v958_v37 = vor.u32 %v1027_v31, %v957_v29  ;;  %v898_v38 = vor.u32 %v1010_v32, %v895_v33  ;;  %v885_v39 = vld [vmem:[%s1324_s27 + $0x10] sm:$0xf]  ;;  %v1009_v40 = vld [vmem:[%s1324_s27 + $0x14] sm:$0xf0] }
  0x56   : > { %681 = vmatpush.bf16.msra.mxu2 %v914_v14  ;;  %v949_v41 = vld [vmem:[%s1324_s27 + $0x90] sm:$0xf]  ;;  %v962_v42 = vor.u32 %v1026_v34, %v959_v35  ;;  %v1025_v43 = vld [vmem:[%s1324_s27 + $0x94] sm:$0xf0]  ;;  %v1008_v44 = vld [vmem:[%s1324_s27 + $0x14] sm:$0xf]  ;;  %v886_v48 = vor.u32 %v1009_v40, %v885_v39 }
  0x57   : > { %694 = vmatpush.bf16.msra.mxu3 %v978_v18  ;;  %v887_v45 = vld [vmem:[%s1324_s27 + $0x18] sm:$0xf0]  ;;  %v1024_v46 = vld [vmem:[%s1324_s27 + $0x94] sm:$0xf]  ;;  %v452_v49 = vld [vmem:[%s1422_s0] sm:$0xff]  ;;  %v950_v50 = vor.u32 %v1025_v43, %v949_v41  ;;  %p437_p12 = scmp.lt.s32.totalorder %s873_s30, 3 }
  0x58   : > { %656 = vmatpush.bf16.msra.mxu0 %v902_v24  ;;  %v951_v47 = vld [vmem:[%s1324_s27 + $0x98] sm:$0xf0]  ;;  %v890_v51 = vor.u32 %v1008_v44, %v887_v45  ;;  %v877_v52 = vld [vmem:[%s1324_s27] sm:$0xf]  ;;  %v1007_v53 = vld [vmem:[%s1324_s27 + $0x4] sm:$0xf0]  ;;  %v486_v61 = vunpack.c.l.b16 %v452_v49  ;;  %v487_v63 = vunpack.c.h.b16 %v452_v49 }
  0x59   : > { %669 = vmatpush.bf16.msra.mxu1 %v966_v25  ;;  %v941_v54 = vld [vmem:[%s1324_s27 + $0x80] sm:$0xf]  ;;  %v954_v55 = vor.u32 %v1024_v46, %v951_v47  ;;  %v1023_v56 = vld [vmem:[%s1324_s27 + $0x84] sm:$0xf0]  ;;  %v1006_v57 = vld [vmem:[%s1324_s27 + $0x4] sm:$0xf]  ;;  %v878_v62 = vor.u32 %v1007_v53, %v877_v52 }
  0x5a   : > { %682 = vmatpush.bf16.msra.mxu2 %v906_v26  ;;  %v879_v58 = vld [vmem:[%s1324_s27 + $0x8] sm:$0xf0]  ;;  %v1022_v59 = vld [vmem:[%s1324_s27 + $0x84] sm:$0xf]  ;;  %v942_v0 = vor.u32 %v1023_v56, %v941_v54  ;;  %v488_v3 = vpack.c.b16 %v486_v61, %v486_v61  ;;  %v489_v4 = vpack.c.b16 %v487_v63, %v487_v63  ;;  %s1436_s30 = smov (!%p437_p12, %s873_s30), 3 }
  0x5b   : > { %695 = vmatpush.bf16.msra.mxu3 %v970_v30  ;;  %v943_v60 = vld [vmem:[%s1324_s27 + $0x88] sm:$0xf0]  ;;  %v882_v1 = vor.u32 %v1006_v57, %v879_v58  ;;  %v713_v5 = vld [vmem:[%s1326_s29] sm:$0x3]  ;;  %s874_s4 = sshll.u32 %s1436_s30, 3 }
  0x5c   : > { %657 = vmatpush.bf16.msra.mxu0 %v894_v36  ;;  %v946_v2 = vor.u32 %v1022_v59, %v943_v60  ;;  %v715_v7 = vperm.slane %v713_v5, 0  ;;  %s442_s7 = scalar_lea.vmem %s1425_s3, %s874_s4  ;;  %v716_v12 = vperm.slane %v713_v5, 1 }
  0x5d   : > { %670 = vmatpush.bf16.msra.mxu1 %v958_v37 }
  0x5e   : > { %683 = vmatpush.bf16.msra.mxu2 %v898_v38 }
  0x5f   : > { %696 = vmatpush.bf16.msra.mxu3 %v962_v42 }
  0x60   : > { %658 = vmatpush.bf16.msra.mxu0 %v886_v48 }
  0x61   : > { %671 = vmatpush.bf16.msra.mxu1 %v950_v50 }
  0x62   : > { %684 = vmatpush.bf16.msra.mxu2 %v890_v51 }
  0x63   : > { %697 = vmatpush.bf16.msra.mxu3 %v954_v55 }
  0x64   : > { %659 = vmatpush.bf16.msra.mxu0 %v878_v62 }
  0x65   : > { %672 = vmatpush.bf16.msra.mxu1 %v942_v0 }
  0x66   : > { %685 = vmatpush.bf16.msra.mxu2 %v882_v1 }
  0x67   : > { %698 = vmatpush.bf16.msra.mxu3 %v946_v2  ;;  %660 = vmatmul.bf16.vlgmr.msra.gmra.mxu0 %v488_v3 }
  0x68   : > { %673 = vmatmul.bf16.vlgmr.msra.gmra.mxu1 %v489_v4 }
  0x69   : > { %686 = vmatmul.bf16.vlgmr.msra.gmra.mxu2 %v488_v3 }
  0x6a   : > { %699 = vmatmul.bf16.vlgmr.msra.gmra.mxu3 %v489_v4 }
  0xe4   : > { %v661_v6 = vpop.f32.mrf.mxu0 }
  0xe5   : > { %v674_v8 = vpop.f32.mrf.mxu1 }
  0xe6   : > { %v675_v9 = vadd.f32 %v674_v8, %v661_v6 }
  0xe8   : > { %v719_v10 = vadd.f32 %v715_v7, %v675_v9 }
  0xea   : > { %721 = vst [vmem:[%s442_s7] sm:$0xff] %v719_v10 }
  0xec   : > { %v687_v11 = vpop.f32.mrf.mxu2  ;;  %v663_v14 = vpop.f32.mrf.mxu0 }
  0xed   : > { %v700_v13 = vpop.f32.mrf.mxu3  ;;  %v676_v16 = vpop.f32.mrf.mxu1 }
  0xee   : > { %v701_v15 = vadd.f32 %v700_v13, %v687_v11 }
  0xf0   : > { %v720_v17 = vadd.f32 %v716_v12, %v701_v15 }
  0xf2   : > { %722 = vst [vmem:[%s442_s7 + $0x8] sm:$0xff] %v720_v17 }
  0xf4   : > { %v689_v18 = vpop.f32.mrf.mxu2 }
  0xf5   : > { %v702_v19 = vpop.f32.mrf.mxu3 }
  0xf6 PF: > { %s16_s17 = sadd.s32 1, %s1166_s17   ;;  %s1428_s12 = smov %s1150_s13 }
  0xf7   : > { %p13_p13 = scmp.ge.s32.totalorder %s16_s17, 4   ;;  %s1429_s13 = smov %s1154_s14 }
  0xf8   : > { %s1430_s14 = smov %s1236_s24  ;;  %s1431_s15 = smov %s1162_s16 }
  0xf9   : > { %s1432_s16 = smov %s1434_s19  ;;  %15 = sbr.rel (!%p13_p13) target bundleno = 4 (0x4), region = 129 }
  0xfe   :  { %753 = vsyncpa [#allocation5], 1 }
  0xff   :  { %755 = vsyncpa [#allocation5 + $0x1], 1 }

// kernel: encoder_forward.10
= control target key start
LH: loop header
LB: loop body
LE: loop exit
PB: predicated region body
PF: predicated region fallthrough
CT: control target
= control target key end

     0   :  { %s1641_s12 = smov 0   ;;  %s1643_s13 = smov 0   ;;  %s1993_s0 = inlined_call_operand.vmem [shape: bf16[8,512], index: 0, kind: input, shape index: {}]   ;;  %s1994_s1 = inlined_call_operand.vmem [shape: bf16[512,1536], index: 1, kind: input, shape index: {}]   ;;  %s1995_s2 = inlined_call_operand.vmem [shape: f32[1,1536], index: 2, kind: input, shape index: {}]   ;;  %s1996_s3 = inlined_call_operand.vmem [shape: f32[8,1536], index: 3, kind: output, shape index: {}]  }
   0x1   :  { %s1645_s14 = smov 0   ;;  %s1647_s15 = smov 0  }
   0x2   :  { %s1649_s16 = smov 0  }
   0x3 LB: > { %s28_s17 = sadd.s32 1, %s1615_s15  ;;  %p76_p1 = scmp.ne.s32.totalorder %s1607_s13, %s1603_s12  ;;  %s1619_s16 = sphi %s1649_s16, %s13_s16   ;;  %s1615_s15 = sphi %s1647_s15, %s2000_s15   ;;  %s1611_s14 = sphi %s1645_s14, %s1999_s14   ;;  %s1607_s13 = sphi %s1643_s13, %s1998_s13   ;;  %s1603_s12 = sphi %s1641_s12, %s1997_s12  }
   0x4   : > { %p30_p0 = scmp.ge.s32.totalorder %s28_s17, 6  ;;  %p77_p2 = scmp.eq.s32.totalorder %s1619_s16, 0 }
   0x5   : > { %s69_s19 = sadd.s32 1, %s1607_s13  ;;  %p1209_p5 = scmp.ge.s32.totalorder %s1619_s16, 6 }
   0x6   : > { %s2002_s17 = smov (%p30_p0, %s28_s17), 0  ;;  %p78_p3 = por %p77_p2, %p76_p1 }
   0x7   : > { %s65_s18 = ssub.s32 %s1615_s15, %s2002_s17  ;;  %169 = sbr.rel (%p1209_p5) target bundleno = 80 (0x50), region = 20 }
   0x8   : > { %p67_p4 = scmp.eq.s32.totalorder %s65_s18, 0 }
   0xa   : > { %s1676_s20 = scalar_select %p67_p4, %s1607_s13, %s69_s19  }
   0xc   : > { %172 = sbr.rel (!%p78_p3) target bundleno = 80 (0x50), region = 24  ;;  %s174_s21 = sand.u32 (%p78_p3), 1, %s1607_s13  }
   0xd   : > { %s1476_s22 = sshll.u32 (%p78_p3), %s1615_s15, 3  ;;  %s1210_s23 = sshll.u32 (%p78_p3), %s174_s21, 9 }
   0xe   : > { %s1684_s26 = scalar_lea.vmem (%p78_p3), %s1994_s1, %s1476_s22  ;;  %s1689_s27 = scalar_lea.vmem (%p78_p3), [#allocation3], %s1210_s23 }
   0xf   : > { %v337_v0 = vld [vmem:[%s1684_s26] sm:$0xff] (%p78_p3)  ;;  %v339_v1 = vld [vmem:[%s1684_s26 + $0x30] sm:$0xff] (%p78_p3) }
  0x10   : > { %v341_v2 = vld [vmem:[%s1684_s26 + $0x60] sm:$0xff] (%p78_p3)  ;;  %338 = vst [vmem:[%s1689_s27] sm:$0xff] (%p78_p3), %v337_v0  ;;  %v343_v3 = vld [vmem:[%s1684_s26 + $0x90] sm:$0xff] (%p78_p3) }
  0x11   : > { %340 = vst [vmem:[%s1689_s27 + $0x8] sm:$0xff] %v339_v1  ;;  %v345_v4 = vld [vmem:[%s1684_s26 + $0xc0] sm:$0xff]  ;;  %v347_v5 = vld [vmem:[%s1684_s26 + $0xf0] sm:$0xff] }
  0x12   : > { %342 = vst [vmem:[%s1689_s27 + $0x10] sm:$0xff] %v341_v2  ;;  %v349_v6 = vld [vmem:[%s1684_s26 + $0x120] sm:$0xff]  ;;  %v351_v7 = vld [vmem:[%s1684_s26 + $0x150] sm:$0xff] }
  0x13   : > { %344 = vst [vmem:[%s1689_s27 + $0x18] sm:$0xff] %v343_v3  ;;  %v353_v8 = vld [vmem:[%s1684_s26 + $0x180] sm:$0xff]  ;;  %v355_v9 = vld [vmem:[%s1684_s26 + $0x1b0] sm:$0xff] }
  0x14   : > { %346 = vst [vmem:[%s1689_s27 + $0x20] sm:$0xff] %v345_v4  ;;  %v357_v10 = vld [vmem:[%s1684_s26 + $0x1e0] sm:$0xff]  ;;  %v359_v11 = vld [vmem:[%s1684_s26 + $0x210] sm:$0xff] }
  0x15   : > { %348 = vst [vmem:[%s1689_s27 + $0x28] sm:$0xff] %v347_v5  ;;  %v361_v12 = vld [vmem:[%s1684_s26 + $0x240] sm:$0xff]  ;;  %v363_v13 = vld [vmem:[%s1684_s26 + $0x270] sm:$0xff] }
  0x16   : > { %350 = vst [vmem:[%s1689_s27 + $0x30] sm:$0xff] %v349_v6  ;;  %v365_v14 = vld [vmem:[%s1684_s26 + $0x2a0] sm:$0xff]  ;;  %v367_v15 = vld [vmem:[%s1684_s26 + $0x2d0] sm:$0xff] }
  0x17   : > { %352 = vst [vmem:[%s1689_s27 + $0x38] sm:$0xff] %v351_v7  ;;  %v369_v16 = vld [vmem:[%s1684_s26 + $0x300] sm:$0xff]  ;;  %v371_v17 = vld [vmem:[%s1684_s26 + $0x330] sm:$0xff] }
  0x18   : > { %354 = vst [vmem:[%s1689_s27 + $0x40] sm:$0xff] %v353_v8  ;;  %v373_v18 = vld [vmem:[%s1684_s26 + $0x360] sm:$0xff]  ;;  %v375_v19 = vld [vmem:[%s1684_s26 + $0x390] sm:$0xff] }
  0x19   : > { %356 = vst [vmem:[%s1689_s27 + $0x48] sm:$0xff] %v355_v9  ;;  %v377_v20 = vld [vmem:[%s1684_s26 + $0x3c0] sm:$0xff]  ;;  %v379_v21 = vld [vmem:[%s1684_s26 + $0x3f0] sm:$0xff] }
  0x1a   : > { %358 = vst [vmem:[%s1689_s27 + $0x50] sm:$0xff] %v357_v10  ;;  %v381_v22 = vld [vmem:[%s1684_s26 + $0x420] sm:$0xff]  ;;  %v383_v23 = vld [vmem:[%s1684_s26 + $0x450] sm:$0xff] }
  0x1b   : > { %360 = vst [vmem:[%s1689_s27 + $0x58] sm:$0xff] %v359_v11  ;;  %v385_v24 = vld [vmem:[%s1684_s26 + $0x480] sm:$0xff]  ;;  %v387_v25 = vld [vmem:[%s1684_s26 + $0x4b0] sm:$0xff] }
  0x1c   : > { %362 = vst [vmem:[%s1689_s27 + $0x60] sm:$0xff] %v361_v12  ;;  %v389_v26 = vld [vmem:[%s1684_s26 + $0x4e0] sm:$0xff]  ;;  %v391_v27 = vld [vmem:[%s1684_s26 + $0x510] sm:$0xff] }
  0x1d   : > { %364 = vst [vmem:[%s1689_s27 + $0x68] sm:$0xff] %v363_v13  ;;  %v393_v28 = vld [vmem:[%s1684_s26 + $0x540] sm:$0xff]  ;;  %v395_v29 = vld [vmem:[%s1684_s26 + $0x570] sm:$0xff] }
  0x1e   : > { %366 = vst [vmem:[%s1689_s27 + $0x70] sm:$0xff] %v365_v14  ;;  %v397_v30 = vld [vmem:[%s1684_s26 + $0x5a0] sm:$0xff]  ;;  %v399_v31 = vld [vmem:[%s1684_s26 + $0x5d0] sm:$0xff] }
  0x1f   : > { %368 = vst [vmem:[%s1689_s27 + $0x78] sm:$0xff] %v367_v15  ;;  %v401_v32 = vld [vmem:[%s1684_s26 + $0x600] sm:$0xff]  ;;  %v403_v33 = vld [vmem:[%s1684_s26 + $0x630] sm:$0xff] }
  0x20   : > { %370 = vst [vmem:[%s1689_s27 + $0x80] sm:$0xff] %v369_v16  ;;  %v405_v34 = vld [vmem:[%s1684_s26 + $0x660] sm:$0xff]  ;;  %v407_v35 = vld [vmem:[%s1684_s26 + $0x690] sm:$0xff] }
  0x21   : > { %372 = vst [vmem:[%s1689_s27 + $0x88] sm:$0xff] %v371_v17  ;;  %v409_v36 = vld [vmem:[%s1684_s26 + $0x6c0] sm:$0xff]  ;;  %v411_v37 = vld [vmem:[%s1684_s26 + $0x6f0] sm:$0xff] }
  0x22   : > { %374 = vst [vmem:[%s1689_s27 + $0x90] sm:$0xff] %v373_v18  ;;  %v413_v38 = vld [vmem:[%s1684_s26 + $0x720] sm:$0xff]  ;;  %v415_v39 = vld [vmem:[%s1684_s26 + $0x750] sm:$0xff] }
  0x23   : > { %376 = vst [vmem:[%s1689_s27 + $0x98] sm:$0xff] %v375_v19  ;;  %v417_v40 = vld [vmem:[%s1684_s26 + $0x780] sm:$0xff]  ;;  %v419_v41 = vld [vmem:[%s1684_s26 + $0x7b0] sm:$0xff] }
  0x24   : > { %378 = vst [vmem:[%s1689_s27 + $0xa0] sm:$0xff] %v377_v20  ;;  %v421_v42 = vld [vmem:[%s1684_s26 + $0x7e0] sm:$0xff]  ;;  %v423_v43 = vld [vmem:[%s1684_s26 + $0x810] sm:$0xff] }
  0x25   : > { %380 = vst [vmem:[%s1689_s27 + $0xa8] sm:$0xff] %v379_v21  ;;  %v425_v44 = vld [vmem:[%s1684_s26 + $0x840] sm:$0xff]  ;;  %v427_v45 = vld [vmem:[%s1684_s26 + $0x870] sm:$0xff] }
  0x26   : > { %382 = vst [vmem:[%s1689_s27 + $0xb0] sm:$0xff] %v381_v22  ;;  %v429_v46 = vld [vmem:[%s1684_s26 + $0x8a0] sm:$0xff]  ;;  %v431_v47 = vld [vmem:[%s1684_s26 + $0x8d0] sm:$0xff] }
  0x27   : > { %384 = vst [vmem:[%s1689_s27 + $0xb8] sm:$0xff] %v383_v23  ;;  %v433_v48 = vld [vmem:[%s1684_s26 + $0x900] sm:$0xff]  ;;  %v435_v49 = vld [vmem:[%s1684_s26 + $0x930] sm:$0xff] }
  0x28   : > { %386 = vst [vmem:[%s1689_s27 + $0xc0] sm:$0xff] %v385_v24  ;;  %v437_v50 = vld [vmem:[%s1684_s26 + $0x960] sm:$0xff]  ;;  %v439_v51 = vld [vmem:[%s1684_s26 + $0x990] sm:$0xff] }
  0x29   : > { %388 = vst [vmem:[%s1689_s27 + $0xc8] sm:$0xff] %v387_v25  ;;  %v441_v52 = vld [vmem:[%s1684_s26 + $0x9c0] sm:$0xff]  ;;  %v443_v53 = vld [vmem:[%s1684_s26 + $0x9f0] sm:$0xff] }
  0x2a   : > { %390 = vst [vmem:[%s1689_s27 + $0xd0] sm:$0xff] %v389_v26  ;;  %v445_v54 = vld [vmem:[%s1684_s26 + $0xa20] sm:$0xff]  ;;  %v447_v55 = vld [vmem:[%s1684_s26 + $0xa50] sm:$0xff] }
  0x2b   : > { %392 = vst [vmem:[%s1689_s27 + $0xd8] sm:$0xff] %v391_v27  ;;  %v449_v56 = vld [vmem:[%s1684_s26 + $0xa80] sm:$0xff]  ;;  %v451_v57 = vld [vmem:[%s1684_s26 + $0xab0] sm:$0xff] }
  0x2c   : > { %394 = vst [vmem:[%s1689_s27 + $0xe0] sm:$0xff] %v393_v28  ;;  %v453_v58 = vld [vmem:[%s1684_s26 + $0xae0] sm:$0xff]  ;;  %v455_v59 = vld [vmem:[%s1684_s26 + $0xb10] sm:$0xff] }
  0x2d   : > { %396 = vst [vmem:[%s1689_s27 + $0xe8] sm:$0xff] %v395_v29  ;;  %v457_v60 = vld [vmem:[%s1684_s26 + $0xb40] sm:$0xff]  ;;  %v459_v61 = vld [vmem:[%s1684_s26 + $0xb70] sm:$0xff] }
  0x2e   : > { %398 = vst [vmem:[%s1689_s27 + $0xf0] sm:$0xff] %v397_v30  ;;  %v461_v62 = vld [vmem:[%s1684_s26 + $0xba0] sm:$0xff]  ;;  %v463_v63 = vld [vmem:[%s1684_s26 + $0xbd0] sm:$0xff] }
  0x2f   : > { %400 = vst [vmem:[%s1689_s27 + $0xf8] sm:$0xff] %v399_v31 }
  0x30   : > { %402 = vst [vmem:[%s1689_s27 + $0x100] sm:$0xff] %v401_v32 }
  0x31   : > { %404 = vst [vmem:[%s1689_s27 + $0x108] sm:$0xff] %v403_v33 }
  0x32   : > { %406 = vst [vmem:[%s1689_s27 + $0x110] sm:$0xff] %v405_v34 }
  0x33   : > { %408 = vst [vmem:[%s1689_s27 + $0x118] sm:$0xff] %v407_v35 }
  0x34   : > { %410 = vst [vmem:[%s1689_s27 + $0x120] sm:$0xff] %v409_v36 }
  0x35   : > { %412 = vst [vmem:[%s1689_s27 + $0x128] sm:$0xff] %v411_v37 }
  0x36   : > { %414 = vst [vmem:[%s1689_s27 + $0x130] sm:$0xff] %v413_v38 }
  0x37   : > { %416 = vst [vmem:[%s1689_s27 + $0x138] sm:$0xff] %v415_v39 }
  0x38   : > { %418 = vst [vmem:[%s1689_s27 + $0x140] sm:$0xff] %v417_v40 }
  0x39   : > { %420 = vst [vmem:[%s1689_s27 + $0x148] sm:$0xff] %v419_v41 }
  0x3a   : > { %422 = vst [vmem:[%s1689_s27 + $0x150] sm:$0xff] %v421_v42 }
  0x3b   : > { %424 = vst [vmem:[%s1689_s27 + $0x158] sm:$0xff] %v423_v43 }
  0x3c   : > { %426 = vst [vmem:[%s1689_s27 + $0x160] sm:$0xff] %v425_v44 }
  0x3d   : > { %428 = vst [vmem:[%s1689_s27 + $0x168] sm:$0xff] %v427_v45 }
  0x3e   : > { %430 = vst [vmem:[%s1689_s27 + $0x170] sm:$0xff] %v429_v46 }
  0x3f   : > { %432 = vst [vmem:[%s1689_s27 + $0x178] sm:$0xff] %v431_v47 }
  0x40   : > { %434 = vst [vmem:[%s1689_s27 + $0x180] sm:$0xff] %v433_v48 }
  0x41   : > { %436 = vst [vmem:[%s1689_s27 + $0x188] sm:$0xff] %v435_v49 }
  0x42   : > { %438 = vst [vmem:[%s1689_s27 + $0x190] sm:$0xff] %v437_v50 }
  0x43   : > { %440 = vst [vmem:[%s1689_s27 + $0x198] sm:$0xff] %v439_v51 }
  0x44   : > { %442 = vst [vmem:[%s1689_s27 + $0x1a0] sm:$0xff] %v441_v52 }
  0x45   : > { %444 = vst [vmem:[%s1689_s27 + $0x1a8] sm:$0xff] %v443_v53 }
  0x46   : > { %446 = vst [vmem:[%s1689_s27 + $0x1b0] sm:$0xff] %v445_v54 }
  0x47   : > { %448 = vst [vmem:[%s1689_s27 + $0x1b8] sm:$0xff] %v447_v55 }
  0x48   : > { %450 = vst [vmem:[%s1689_s27 + $0x1c0] sm:$0xff] %v449_v56 }
  0x49   : > { %452 = vst [vmem:[%s1689_s27 + $0x1c8] sm:$0xff] %v451_v57 }
  0x4a   : > { %454 = vst [vmem:[%s1689_s27 + $0x1d0] sm:$0xff] %v453_v58 }
  0x4b   : > { %456 = vst [vmem:[%s1689_s27 + $0x1d8] sm:$0xff] %v455_v59 }
  0x4c   : > { %458 = vst [vmem:[%s1689_s27 + $0x1e0] sm:$0xff] %v457_v60 }
  0x4d   : > { %460 = vst [vmem:[%s1689_s27 + $0x1e8] sm:$0xff] %v459_v61 }
  0x4e   : > { %462 = vst [vmem:[%s1689_s27 + $0x1f0] sm:$0xff] %v461_v62 }
  0x4f   : > { %464 = vst [vmem:[%s1689_s27 + $0x1f8] sm:$0xff] %v463_v63 }
  0x50 PF: > { %p1213_p6 = scmp.ge.s32.totalorder %s1619_s16, 1  ;;  %p477_p7 = scmp.lt.s32.totalorder %s1619_s16, 7 }
  0x52   : > { %p478_p8 = pnand %p1213_p6, %p477_p7 }
  0x53   : > { %s484_s28 = sand.u32 (!%p478_p8), 1, %s1603_s12   ;;  %s1215_s8 = sshll.u32 (!%p478_p8), %s1611_s14, 1 }
  0x54   : > { %481 = sbr.rel (%p478_p8) target bundleno = 298 (0x12a), region = 66  ;;  %s1214_s29 = sshll.u32 (!%p478_p8), %s484_s28, 9 }
  0x55   : > { %s1819_s30 = scalar_lea.vmem (!%p478_p8), [#allocation3], %s1214_s29  ;;  %p537_p9 = scmp.lt.s32.totalorder (!%p478_p8), %s1215_s8, 11 }
  0x59   : > { %v1276_v0 = vld [vmem:[%s1819_s30 + $0x70] sm:$0xf]  ;;  %v1492_v1 = vld [vmem:[%s1819_s30 + $0x74] sm:$0xf0]  ;;  %v1268_v11 = vld [vmem:[%s1819_s30 + $0x60] sm:$0xf] }
  0x5a   : > { %v1340_v2 = vld [vmem:[%s1819_s30 + $0xf0] sm:$0xf]  ;;  %v1277_v3 = vor.u32 %v1492_v1, %v1276_v0  ;;  %v1508_v4 = vld [vmem:[%s1819_s30 + $0xf4] sm:$0xf0]  ;;  %v1490_v13 = vld [vmem:[%s1819_s30 + $0x64] sm:$0xf0] }
  0x5b   : > { %v1404_v5 = vld [vmem:[%s1819_s30 + $0x170] sm:$0xf]  ;;  %v1524_v6 = vld [vmem:[%s1819_s30 + $0x174] sm:$0xf0]  ;;  %v1341_v7 = vor.u32 %v1508_v4, %v1340_v2  ;;  %v1332_v14 = vld [vmem:[%s1819_s30 + $0xe0] sm:$0xf]  ;;  %v1269_v16 = vor.u32 %v1490_v13, %v1268_v11 }
  0x5c   : > { %v1405_v8 = vor.u32 %v1524_v6, %v1404_v5  ;;  %v1468_v9 = vld [vmem:[%s1819_s30 + $0x1f0] sm:$0xf]  ;;  %v1540_v10 = vld [vmem:[%s1819_s30 + $0x1f4] sm:$0xf0]  ;;  %959 = vmatpush.bf16.msra.mxu0 %v1277_v3  ;;  %v1506_v15 = vld [vmem:[%s1819_s30 + $0xe4] sm:$0xf0] }
  0x5d   : > { %v1469_v12 = vor.u32 %v1540_v10, %v1468_v9  ;;  %972 = vmatpush.bf16.msra.mxu1 %v1341_v7  ;;  %v1333_v17 = vor.u32 %v1506_v15, %v1332_v14  ;;  %v1396_v18 = vld [vmem:[%s1819_s30 + $0x160] sm:$0xf]  ;;  %v1522_v19 = vld [vmem:[%s1819_s30 + $0x164] sm:$0xf0]  ;;  %v1260_v23 = vld [vmem:[%s1819_s30 + $0x50] sm:$0xf] }
  0x5e   : > { %985 = vmatpush.bf16.msra.mxu2 %v1405_v8  ;;  %v1460_v20 = vld [vmem:[%s1819_s30 + $0x1e0] sm:$0xf]  ;;  %v1397_v21 = vor.u32 %v1522_v19, %v1396_v18  ;;  %v1538_v22 = vld [vmem:[%s1819_s30 + $0x1e4] sm:$0xf0]  ;;  %v1488_v24 = vld [vmem:[%s1819_s30 + $0x54] sm:$0xf0] }
  0x5f   : > { %998 = vmatpush.bf16.msra.mxu3 %v1469_v12  ;;  %v1461_v25 = vor.u32 %v1538_v22, %v1460_v20  ;;  %v1324_v26 = vld [vmem:[%s1819_s30 + $0xd0] sm:$0xf]  ;;  %v1504_v27 = vld [vmem:[%s1819_s30 + $0xd4] sm:$0xf0]  ;;  %v1261_v29 = vor.u32 %v1488_v24, %v1260_v23  ;;  %v1252_v35 = vld [vmem:[%s1819_s30 + $0x40] sm:$0xf] }
  0x60   : > { %v1388_v28 = vld [vmem:[%s1819_s30 + $0x150] sm:$0xf]  ;;  %960 = vmatpush.bf16.msra.mxu0 %v1269_v16  ;;  %v1520_v30 = vld [vmem:[%s1819_s30 + $0x154] sm:$0xf0]  ;;  %v1325_v33 = vor.u32 %v1504_v27, %v1324_v26  ;;  %v1486_v36 = vld [vmem:[%s1819_s30 + $0x44] sm:$0xf0] }
  0x61   : > { %v1452_v31 = vld [vmem:[%s1819_s30 + $0x1d0] sm:$0xf]  ;;  %v1536_v32 = vld [vmem:[%s1819_s30 + $0x1d4] sm:$0xf0]  ;;  %973 = vmatpush.bf16.msra.mxu1 %v1333_v17  ;;  %v1389_v34 = vor.u32 %v1520_v30, %v1388_v28  ;;  %v1316_v37 = vld [vmem:[%s1819_s30 + $0xc0] sm:$0xf]  ;;  %v1253_v44 = vor.u32 %v1486_v36, %v1252_v35 }
  0x62   : > { %986 = vmatpush.bf16.msra.mxu2 %v1397_v21  ;;  %v1453_v38 = vor.u32 %v1536_v32, %v1452_v31  ;;  %v1502_v39 = vld [vmem:[%s1819_s30 + $0xc4] sm:$0xf0]  ;;  %v1380_v40 = vld [vmem:[%s1819_s30 + $0x140] sm:$0xf]  ;;  %v1244_v47 = vld [vmem:[%s1819_s30 + $0x30] sm:$0xf] }
  0x63   : > { %999 = vmatpush.bf16.msra.mxu3 %v1461_v25  ;;  %v1518_v41 = vld [vmem:[%s1819_s30 + $0x144] sm:$0xf0]  ;;  %v1444_v42 = vld [vmem:[%s1819_s30 + $0x1c0] sm:$0xf]  ;;  %v1317_v45 = vor.u32 %v1502_v39, %v1316_v37  ;;  %v1484_v48 = vld [vmem:[%s1819_s30 + $0x34] sm:$0xf0] }
  0x64   : > { %v1534_v43 = vld [vmem:[%s1819_s30 + $0x1c4] sm:$0xf0]  ;;  %961 = vmatpush.bf16.msra.mxu0 %v1261_v29  ;;  %v1381_v46 = vor.u32 %v1518_v41, %v1380_v40  ;;  %v1308_v49 = vld [vmem:[%s1819_s30 + $0xb0] sm:$0xf]  ;;  %v1500_v51 = vld [vmem:[%s1819_s30 + $0xb4] sm:$0xf0]  ;;  %v1245_v56 = vor.u32 %v1484_v48, %v1244_v47 }
  0x65   : > { %974 = vmatpush.bf16.msra.mxu1 %v1325_v33  ;;  %v1445_v50 = vor.u32 %v1534_v43, %v1444_v42  ;;  %v1372_v52 = vld [vmem:[%s1819_s30 + $0x130] sm:$0xf]  ;;  %v1516_v53 = vld [vmem:[%s1819_s30 + $0x134] sm:$0xf0]  ;;  %v1309_v57 = vor.u32 %v1500_v51, %v1308_v49  ;;  %v1236_v59 = vld [vmem:[%s1819_s30 + $0x20] sm:$0xf] }
  0x66   : > { %987 = vmatpush.bf16.msra.mxu2 %v1389_v34  ;;  %v1436_v54 = vld [vmem:[%s1819_s30 + $0x1b0] sm:$0xf]  ;;  %v1532_v55 = vld [vmem:[%s1819_s30 + $0x1b4] sm:$0xf0]  ;;  %v1373_v58 = vor.u32 %v1516_v53, %v1372_v52  ;;  %v1482_v60 = vld [vmem:[%s1819_s30 + $0x24] sm:$0xf0] }
  0x67   : > { %1000 = vmatpush.bf16.msra.mxu3 %v1453_v38  ;;  %v1300_v61 = vld [vmem:[%s1819_s30 + $0xa0] sm:$0xf]  ;;  %v1437_v62 = vor.u32 %v1532_v55, %v1436_v54  ;;  %v1498_v63 = vld [vmem:[%s1819_s30 + $0xa4] sm:$0xf0]  ;;  %v1237_v4 = vor.u32 %v1482_v60, %v1236_v59  ;;  %v1228_v7 = vld [vmem:[%s1819_s30 + $0x10] sm:$0xf] }
  0x68   : > { %962 = vmatpush.bf16.msra.mxu0 %v1253_v44  ;;  %v1364_v0 = vld [vmem:[%s1819_s30 + $0x120] sm:$0xf]  ;;  %v1514_v1 = vld [vmem:[%s1819_s30 + $0x124] sm:$0xf0]  ;;  %v1301_v5 = vor.u32 %v1498_v63, %v1300_v61  ;;  %v1480_v8 = vld [vmem:[%s1819_s30 + $0x14] sm:$0xf0] }
  0x69   : > { %975 = vmatpush.bf16.msra.mxu1 %v1317_v45  ;;  %v1428_v2 = vld [vmem:[%s1819_s30 + $0x1a0] sm:$0xf]  ;;  %v1530_v3 = vld [vmem:[%s1819_s30 + $0x1a4] sm:$0xf0]  ;;  %v1365_v6 = vor.u32 %v1514_v1, %v1364_v0  ;;  %v1292_v9 = vld [vmem:[%s1819_s30 + $0x90] sm:$0xf]  ;;  %v1229_v16 = vor.u32 %v1480_v8, %v1228_v7 }
  0x6a   : > { %988 = vmatpush.bf16.msra.mxu2 %v1381_v46  ;;  %v1429_v10 = vor.u32 %v1530_v3, %v1428_v2  ;;  %v1496_v11 = vld [vmem:[%s1819_s30 + $0x94] sm:$0xf0]  ;;  %v1356_v12 = vld [vmem:[%s1819_s30 + $0x110] sm:$0xf]  ;;  %v1220_v17 = vld [vmem:[%s1819_s30] sm:$0xf] }
  0x6b   : > { %1001 = vmatpush.bf16.msra.mxu3 %v1445_v50  ;;  %v1512_v13 = vld [vmem:[%s1819_s30 + $0x114] sm:$0xf0]  ;;  %v1420_v14 = vld [vmem:[%s1819_s30 + $0x190] sm:$0xf]  ;;  %v1478_v18 = vld [vmem:[%s1819_s30 + $0x4] sm:$0xf0]  ;;  %v1293_v20 = vor.u32 %v1496_v11, %v1292_v9 }
  0x6c   : > { %963 = vmatpush.bf16.msra.mxu0 %v1245_v56  ;;  %v1528_v15 = vld [vmem:[%s1819_s30 + $0x194] sm:$0xf0]  ;;  %v1284_v19 = vld [vmem:[%s1819_s30 + $0x80] sm:$0xf]  ;;  %v1357_v21 = vor.u32 %v1512_v13, %v1356_v12  ;;  %v1494_v22 = vld [vmem:[%s1819_s30 + $0x84] sm:$0xf0]  ;;  %v1221_v32 = vor.u32 %v1478_v18, %v1220_v17 }
  0x6d   : > { %976 = vmatpush.bf16.msra.mxu1 %v1309_v57  ;;  %v1348_v23 = vld [vmem:[%s1819_s30 + $0x100] sm:$0xf]  ;;  %v1510_v24 = vld [vmem:[%s1819_s30 + $0x104] sm:$0xf0]  ;;  %v1421_v25 = vor.u32 %v1528_v15, %v1420_v14  ;;  %v1491_v28 = vld [vmem:[%s1819_s30 + $0x74] sm:$0xf]  ;;  %v1285_v37 = vor.u32 %v1494_v22, %v1284_v19 }
  0x6e   : > { %989 = vmatpush.bf16.msra.mxu2 %v1373_v58  ;;  %v1412_v26 = vld [vmem:[%s1819_s30 + $0x180] sm:$0xf]  ;;  %v1526_v27 = vld [vmem:[%s1819_s30 + $0x184] sm:$0xf0]  ;;  %v1278_v29 = vld [vmem:[%s1819_s30 + $0x78] sm:$0xf0]  ;;  %v1349_v38 = vor.u32 %v1510_v24, %v1348_v23 }
  0x6f   : > { %1002 = vmatpush.bf16.msra.mxu3 %v1437_v62  ;;  %v1507_v30 = vld [vmem:[%s1819_s30 + $0xf4] sm:$0xf]  ;;  %v560_v31 = vld [vmem:[%s1993_s0 + $0x8] sm:$0xff]  ;;  %v1342_v33 = vld [vmem:[%s1819_s30 + $0xf8] sm:$0xf0]  ;;  %v1413_v42 = vor.u32 %v1526_v27, %v1412_v26  ;;  %v1281_v43 = vor.u32 %v1491_v28, %v1278_v29  ;;  %s2004_s8 = smov (!%p537_p9, %s1215_s8), 11 }
  0x70   : > { %964 = vmatpush.bf16.msra.mxu0 %v1237_v4  ;;  %v1523_v34 = vld [vmem:[%s1819_s30 + $0x174] sm:$0xf]  ;;  %v1406_v35 = vld [vmem:[%s1819_s30 + $0x178] sm:$0xf0]  ;;  %v629_v36 = vunpack.c.l.b16 %v560_v31  ;;  %v630_v41 = vunpack.c.h.b16 %v560_v31  ;;  %v559_v44 = vld [vmem:[%s1993_s0] sm:$0xff]  ;;  %v1345_v45 = vor.u32 %v1507_v30, %v1342_v33  ;;  %s539_s11 = scalar_lea.vmem %s1995_s2, %s2004_s8  ;;  %s1217_s12 = sshll.u32 %s2004_s8, 3 }
  0x71   : > { %977 = vmatpush.bf16.msra.mxu1 %v1301_v5  ;;  %v1539_v39 = vld [vmem:[%s1819_s30 + $0x1f4] sm:$0xf]  ;;  %v1470_v40 = vld [vmem:[%s1819_s30 + $0x1f8] sm:$0xf0]  ;;  %v1409_v46 = vor.u32 %v1523_v34, %v1406_v35  ;;  %v1489_v47 = vld [vmem:[%s1819_s30 + $0x64] sm:$0xf]  ;;  %v627_v50 = vunpack.c.l.b16 %v559_v44  ;;  %v628_v51 = vunpack.c.h.b16 %v559_v44  ;;  %s549_s14 = scalar_lea.vmem %s1996_s3, %s1217_s12 }
  0x72   : > { %990 = vmatpush.bf16.msra.mxu2 %v1365_v6  ;;  %v1270_v48 = vld [vmem:[%s1819_s30 + $0x68] sm:$0xf0]  ;;  %v1505_v49 = vld [vmem:[%s1819_s30 + $0xe4] sm:$0xf]  ;;  %v1473_v52 = vor.u32 %v1539_v39, %v1470_v40  ;;  %v1905_v56 = vpack.c.b16 %v629_v36, %v629_v36  ;;  %v1909_v59 = vpack.c.b16 %v630_v41, %v630_v41  ;;  %v1487_v1 = vld [vmem:[%s1819_s30 + $0x54] sm:$0xf] }
  0x73   : > { %1003 = vmatpush.bf16.msra.mxu3 %v1429_v10  ;;  %v1334_v53 = vld [vmem:[%s1819_s30 + $0xe8] sm:$0xf0]  ;;  %v1521_v54 = vld [vmem:[%s1819_s30 + $0x164] sm:$0xf]  ;;  %v1911_v60 = vpack.c.b16 %v627_v50, %v627_v50  ;;  %v1273_v61 = vor.u32 %v1489_v47, %v1270_v48  ;;  %v1913_v62 = vpack.c.b16 %v628_v51, %v628_v51  ;;  %v1262_v2 = vld [vmem:[%s1819_s30 + $0x58] sm:$0xf0] }
  0x74   : > { %965 = vmatpush.bf16.msra.mxu0 %v1229_v16  ;;  %v1398_v55 = vld [vmem:[%s1819_s30 + $0x168] sm:$0xf0]  ;;  %v1537_v57 = vld [vmem:[%s1819_s30 + $0x1e4] sm:$0xf]  ;;  %v1337_v63 = vor.u32 %v1505_v49, %v1334_v53  ;;  %v1503_v3 = vld [vmem:[%s1819_s30 + $0xd4] sm:$0xf]  ;;  %v1265_v10 = vor.u32 %v1487_v1, %v1262_v2 }
  0x75   : > { %978 = vmatpush.bf16.msra.mxu1 %v1293_v20  ;;  %v1462_v58 = vld [vmem:[%s1819_s30 + $0x1e8] sm:$0xf0]  ;;  %v1401_v0 = vor.u32 %v1521_v54, %v1398_v55  ;;  %v1326_v5 = vld [vmem:[%s1819_s30 + $0xd8] sm:$0xf0]  ;;  %v1519_v6 = vld [vmem:[%s1819_s30 + $0x154] sm:$0xf] }
  0x76   : > { %991 = vmatpush.bf16.msra.mxu2 %v1357_v21  ;;  %v1465_v4 = vor.u32 %v1537_v57, %v1462_v58  ;;  %v1390_v7 = vld [vmem:[%s1819_s30 + $0x158] sm:$0xf0]  ;;  %v1535_v8 = vld [vmem:[%s1819_s30 + $0x1d4] sm:$0xf]  ;;  %v1329_v11 = vor.u32 %v1503_v3, %v1326_v5  ;;  %v1485_v13 = vld [vmem:[%s1819_s30 + $0x44] sm:$0xf] }
  0x77   : > { %1004 = vmatpush.bf16.msra.mxu3 %v1421_v25  ;;  %v1454_v9 = vld [vmem:[%s1819_s30 + $0x1d8] sm:$0xf0]  ;;  %v1393_v12 = vor.u32 %v1519_v6, %v1390_v7  ;;  %v1254_v14 = vld [vmem:[%s1819_s30 + $0x48] sm:$0xf0]  ;;  %v1501_v15 = vld [vmem:[%s1819_s30 + $0xc4] sm:$0xf] }
  0x78   : > { %966 = vmatpush.bf16.msra.mxu0 %v1221_v32  ;;  %v1457_v16 = vor.u32 %v1535_v8, %v1454_v9  ;;  %v1318_v17 = vld [vmem:[%s1819_s30 + $0xc8] sm:$0xf0]  ;;  %v1517_v18 = vld [vmem:[%s1819_s30 + $0x144] sm:$0xf]  ;;  %v1257_v22 = vor.u32 %v1485_v13, %v1254_v14  ;;  %v1483_v25 = vld [vmem:[%s1819_s30 + $0x34] sm:$0xf] }
  0x79   : > { %979 = vmatpush.bf16.msra.mxu1 %v1285_v37  ;;  %v1382_v19 = vld [vmem:[%s1819_s30 + $0x148] sm:$0xf0]  ;;  %v1533_v20 = vld [vmem:[%s1819_s30 + $0x1c4] sm:$0xf]  ;;  %v1321_v23 = vor.u32 %v1501_v15, %v1318_v17  ;;  %v1246_v26 = vld [vmem:[%s1819_s30 + $0x38] sm:$0xf0] }
  0x7a   : > { %992 = vmatpush.bf16.msra.mxu2 %v1349_v38  ;;  %v1446_v21 = vld [vmem:[%s1819_s30 + $0x1c8] sm:$0xf0]  ;;  %v1385_v24 = vor.u32 %v1517_v18, %v1382_v19  ;;  %v1499_v27 = vld [vmem:[%s1819_s30 + $0xb4] sm:$0xf]  ;;  %v1310_v29 = vld [vmem:[%s1819_s30 + $0xb8] sm:$0xf0]  ;;  %v1249_v34 = vor.u32 %v1483_v25, %v1246_v26 }
  0x7b   : > { %1005 = vmatpush.bf16.msra.mxu3 %v1413_v42  ;;  %967 = vmatmul.bf16.vlgmr.msra.gmra.mxu0 %v1911_v60  ;;  %v1449_v28 = vor.u32 %v1533_v20, %v1446_v21  ;;  %v1515_v30 = vld [vmem:[%s1819_s30 + $0x134] sm:$0xf]  ;;  %v1374_v31 = vld [vmem:[%s1819_s30 + $0x138] sm:$0xf0]  ;;  %v1313_v35 = vor.u32 %v1499_v27, %v1310_v29  ;;  %v1481_v37 = vld [vmem:[%s1819_s30 + $0x24] sm:$0xf] }
  0x7c   : > { %1011 = vmatpush.bf16.msrb.mxu0 %v1281_v43  ;;  %980 = vmatmul.bf16.vlgmr.msra.gmra.mxu1 %v1913_v62  ;;  %v1531_v32 = vld [vmem:[%s1819_s30 + $0x1b4] sm:$0xf]  ;;  %v1438_v33 = vld [vmem:[%s1819_s30 + $0x1b8] sm:$0xf0]  ;;  %v1377_v36 = vor.u32 %v1515_v30, %v1374_v31  ;;  %v1238_v38 = vld [vmem:[%s1819_s30 + $0x28] sm:$0xf0] }
  0x7d   : > { %1024 = vmatpush.bf16.msrb.mxu1 %v1345_v45  ;;  %993 = vmatmul.bf16.vlgmr.msra.gmra.mxu2 %v1905_v56  ;;  %v1497_v39 = vld [vmem:[%s1819_s30 + $0xa4] sm:$0xf]  ;;  %v1441_v40 = vor.u32 %v1531_v32, %v1438_v33  ;;  %v1302_v41 = vld [vmem:[%s1819_s30 + $0xa8] sm:$0xf0]  ;;  %v1479_v49 = vld [vmem:[%s1819_s30 + $0x14] sm:$0xf] }
  0x7e   : > { %1037 = vmatpush.bf16.msrb.mxu2 %v1409_v46  ;;  %1006 = vmatmul.bf16.vlgmr.msra.gmra.mxu3 %v1909_v59  ;;  %v1513_v42 = vld [vmem:[%s1819_s30 + $0x124] sm:$0xf]  ;;  %v1366_v43 = vld [vmem:[%s1819_s30 + $0x128] sm:$0xf0]  ;;  %v1241_v46 = vor.u32 %v1481_v37, %v1238_v38  ;;  %v1305_v47 = vor.u32 %v1497_v39, %v1302_v41  ;;  %v1230_v50 = vld [vmem:[%s1819_s30 + $0x18] sm:$0xf0] }
  0x7f   : > { %1050 = vmatpush.bf16.msrb.mxu3 %v1473_v52  ;;  %v1529_v44 = vld [vmem:[%s1819_s30 + $0x1a4] sm:$0xf]  ;;  %v1430_v45 = vld [vmem:[%s1819_s30 + $0x1a8] sm:$0xf0]  ;;  %v1369_v48 = vor.u32 %v1513_v42, %v1366_v43  ;;  %v1495_v51 = vld [vmem:[%s1819_s30 + $0x94] sm:$0xf] }
  0x80   : > { %1012 = vmatpush.bf16.msrb.mxu0 %v1273_v61  ;;  %v1433_v52 = vor.u32 %v1529_v44, %v1430_v45  ;;  %v1294_v53 = vld [vmem:[%s1819_s30 + $0x98] sm:$0xf0]  ;;  %v1511_v54 = vld [vmem:[%s1819_s30 + $0x114] sm:$0xf]  ;;  %v1233_v61 = vor.u32 %v1479_v49, %v1230_v50  ;;  %v1477_v1 = vld [vmem:[%s1819_s30 + $0x4] sm:$0xf] }
  0x81   : > { %1025 = vmatpush.bf16.msrb.mxu1 %v1337_v63  ;;  %v1358_v55 = vld [vmem:[%s1819_s30 + $0x118] sm:$0xf0]  ;;  %v1527_v57 = vld [vmem:[%s1819_s30 + $0x194] sm:$0xf]  ;;  %v1297_v63 = vor.u32 %v1495_v51, %v1294_v53  ;;  %v1222_v2 = vld [vmem:[%s1819_s30 + $0x8] sm:$0xf0] }
  0x82   : > { %1038 = vmatpush.bf16.msrb.mxu2 %v1401_v0  ;;  %v1422_v58 = vld [vmem:[%s1819_s30 + $0x198] sm:$0xf0]  ;;  %v1361_v0 = vor.u32 %v1511_v54, %v1358_v55  ;;  %v1493_v3 = vld [vmem:[%s1819_s30 + $0x84] sm:$0xf]  ;;  %v1286_v5 = vld [vmem:[%s1819_s30 + $0x88] sm:$0xf0] }
  0x83   : > { %1051 = vmatpush.bf16.msrb.mxu3 %v1465_v4  ;;  %v1425_v4 = vor.u32 %v1527_v57, %v1422_v58  ;;  %v1509_v6 = vld [vmem:[%s1819_s30 + $0x104] sm:$0xf]  ;;  %v1350_v7 = vld [vmem:[%s1819_s30 + $0x108] sm:$0xf0]  ;;  %v1072_v17 = vld [vmem:[%s539_s11] sm:$0x3] }
  0x84   : > { %1013 = vmatpush.bf16.msrb.mxu0 %v1265_v10  ;;  %v1525_v8 = vld [vmem:[%s1819_s30 + $0x184] sm:$0xf]  ;;  %v1414_v9 = vld [vmem:[%s1819_s30 + $0x188] sm:$0xf0]  ;;  %v1225_v10 = vor.u32 %v1477_v1, %v1222_v2  ;;  %v1075_v30 = vperm.slane %v1072_v17, 1 }
  0x85   : > { %1026 = vmatpush.bf16.msrb.mxu1 %v1329_v11  ;;  %v1289_v11 = vor.u32 %v1493_v3, %v1286_v5  ;;  %v1417_v13 = vor.u32 %v1525_v8, %v1414_v9 }
  0x86   : > { %1039 = vmatpush.bf16.msrb.mxu2 %v1393_v12  ;;  %v1353_v12 = vor.u32 %v1509_v6, %v1350_v7 }
  0x87   : > { %1052 = vmatpush.bf16.msrb.mxu3 %v1457_v16 }
  0x88   : > { %1014 = vmatpush.bf16.msrb.mxu0 %v1257_v22 }
  0x89   : > { %1027 = vmatpush.bf16.msrb.mxu1 %v1321_v23 }
  0x8a   : > { %1040 = vmatpush.bf16.msrb.mxu2 %v1385_v24 }
  0x8b   : > { %1053 = vmatpush.bf16.msrb.mxu3 %v1449_v28 }
  0x8c   : > { %1015 = vmatpush.bf16.msrb.mxu0 %v1249_v34 }
  0x8d   : > { %1028 = vmatpush.bf16.msrb.mxu1 %v1313_v35 }
  0x8e   : > { %1041 = vmatpush.bf16.msrb.mxu2 %v1377_v36 }
  0x8f   : > { %1054 = vmatpush.bf16.msrb.mxu3 %v1441_v40 }
  0x90   : > { %1016 = vmatpush.bf16.msrb.mxu0 %v1241_v46 }
  0x91   : > { %1029 = vmatpush.bf16.msrb.mxu1 %v1305_v47 }
  0x92   : > { %1042 = vmatpush.bf16.msrb.mxu2 %v1369_v48 }
  0x93   : > { %1055 = vmatpush.bf16.msrb.mxu3 %v1433_v52 }
  0x94   : > { %1017 = vmatpush.bf16.msrb.mxu0 %v1233_v61 }
  0x95   : > { %1030 = vmatpush.bf16.msrb.mxu1 %v1297_v63 }
  0x96   : > { %1043 = vmatpush.bf16.msrb.mxu2 %v1361_v0 }
  0x97   : > { %1056 = vmatpush.bf16.msrb.mxu3 %v1425_v4 }
  0x98   : > { %1018 = vmatpush.bf16.msrb.mxu0 %v1225_v10 }
  0x99   : > { %1031 = vmatpush.bf16.msrb.mxu1 %v1289_v11 }
  0x9a   : > { %1044 = vmatpush.bf16.msrb.mxu2 %v1353_v12 }
  0x9b   : > { %1057 = vmatpush.bf16.msrb.mxu3 %v1417_v13  ;;  %1019 = vmatmul.bf16.vlgmr.msrb.gmra.mxu0 %v1911_v60 }
  0x9c   : > { %1032 = vmatmul.bf16.vlgmr.msrb.gmra.mxu1 %v1913_v62  ;;  %v1074_v62 = vperm.slane %v1072_v17, 0 }
  0x9d   : > { %1045 = vmatmul.bf16.vlgmr.msrb.gmra.mxu2 %v1905_v56 }
  0x9e   : > { %1058 = vmatmul.bf16.vlgmr.msrb.gmra.mxu3 %v1909_v59 }
  0xf8   : > { %v968_v14 = vpop.f32.mrf.mxu0 }
  0xf9   : > { %v981_v15 = vpop.f32.mrf.mxu1 }
  0xfa   : > { %v982_v16 = vadd.f32 %v981_v15, %v968_v14 }
 0x100   : > { %v994_v18 = vpop.f32.mrf.mxu2  ;;  %v970_v56 = vpop.f32.mrf.mxu0 }
 0x101   : > { %v995_v19 = vadd.f32 %v994_v18, %v982_v16  ;;  %v1007_v60 = vpop.f32.mrf.mxu3  ;;  %v983_v59 = vpop.f32.mrf.mxu1 }
 0x103   : > { %v1008_v20 = vadd.f32 %v1007_v60, %v995_v19 }
 0x105   : > { %v1078_v21 = vadd.f32 %v1074_v62, %v1008_v20 }
 0x107   : > { %1080 = vst [vmem:[%s549_s14] sm:$0xff] %v1078_v21 }
 0x108   : > { %v996_v22 = vpop.f32.mrf.mxu2 }
 0x109   : > { %v1009_v23 = vpop.f32.mrf.mxu3 }
 0x118   : > { %v1020_v24 = vpop.f32.mrf.mxu0 }
 0x119   : > { %v1033_v25 = vpop.f32.mrf.mxu1 }
 0x11a   : > { %v1034_v26 = vadd.f32 %v1033_v25, %v1020_v24 }
 0x120   : > { %v1046_v27 = vpop.f32.mrf.mxu2  ;;  %v1022_v31 = vpop.f32.mrf.mxu0 }
 0x121   : > { %v1047_v28 = vadd.f32 %v1046_v27, %v1034_v26  ;;  %v1059_v29 = vpop.f32.mrf.mxu3  ;;  %v1035_v32 = vpop.f32.mrf.mxu1 }
 0x123   : > { %v1060_v33 = vadd.f32 %v1059_v29, %v1047_v28 }
 0x125   : > { %v1079_v34 = vadd.f32 %v1075_v30, %v1060_v33 }
 0x127   : > { %1081 = vst [vmem:[%s549_s14 + $0x8] sm:$0xff] %v1079_v34 }
 0x128   : > { %v1048_v35 = vpop.f32.mrf.mxu2 }
 0x129   : > { %v1061_v36 = vpop.f32.mrf.mxu3 }
 0x12a PF: > { %s13_s16 = sadd.s32 1, %s1619_s16   ;;  %s1997_s12 = smov %s1607_s13 }
 0x12b   : > { %p10_p10 = scmp.ge.s32.totalorder %s13_s16, 8   ;;  %s1998_s13 = smov %s1676_s20 }
 0x12c   : > { %s1999_s14 = smov %s1615_s15  ;;  %s2000_s15 = smov %s2002_s17 }
 0x12d   :  { %12 = sbr.rel (!%p10_p10) target bundleno = 3 (0x3), region = 119 }

// kernel: encoder_forward.16
= control target key start
LH: loop header
LB: loop body
LE: loop exit
PB: predicated region body
PF: predicated region fallthrough
CT: control target
= control target key end

     0   :  { %vm52_vm0 = vcmask 1043456   ;;  %s3351_s0 = inlined_call_operand.vmem [shape: f32[2,4,512], index: 0, kind: input, shape index: {}]   ;;  %s3352_s1 = inlined_call_operand.vmem [shape: bf16[512,512], index: 1, kind: input, shape index: {}]   ;;  %s3353_s2 = inlined_call_operand.vmem [shape: f32[1,512], index: 2, kind: input, shape index: {}]   ;;  %s3354_s3 = inlined_call_operand.vmem [shape: bf16[512,128], index: 3, kind: input, shape index: {}]   ;;  %s3355_s4 = inlined_call_operand.vmem [shape: f32[1,128], index: 4, kind: input, shape index: {}]   ;;  %s3356_s5 = inlined_call_operand.hbm [shape: f32[2,128], index: 5, kind: output, shape index: {}]  }
   0x1   :  { %v1598_v0 = vld [vmem:[%s3352_s1 + $0xe0] sm:$0xf]  ;;  %v2154_v1 = vld [vmem:[%s3352_s1 + $0xec] sm:$0xf0] }
   0x2   :  { %v1726_v2 = vld [vmem:[%s3352_s1 + $0x1e0] sm:$0xf]  ;;  %v1599_v3 = vor.u32 %v2154_v1, %v1598_v0  ;;  %v2186_v4 = vld [vmem:[%s3352_s1 + $0x1ec] sm:$0xf0] }
   0x3   :  { %v1854_v5 = vld [vmem:[%s3352_s1 + $0x2e0] sm:$0xf]  ;;  %v2218_v6 = vld [vmem:[%s3352_s1 + $0x2ec] sm:$0xf0]  ;;  %v1727_v7 = vor.u32 %v2186_v4, %v1726_v2 }
   0x4   :  { %v1855_v8 = vor.u32 %v2218_v6, %v1854_v5  ;;  %v1982_v9 = vld [vmem:[%s3352_s1 + $0x3e0] sm:$0xf]  ;;  %v2250_v10 = vld [vmem:[%s3352_s1 + $0x3ec] sm:$0xf0]  ;;  %939 = vmatpush.bf16.msra.mxu0 %v1599_v3 }
   0x5   :  { %v1582_v11 = vld [vmem:[%s3352_s1 + $0xc0] sm:$0xf]  ;;  %v1983_v12 = vor.u32 %v2250_v10, %v1982_v9  ;;  %v2150_v13 = vld [vmem:[%s3352_s1 + $0xcc] sm:$0xf0]  ;;  %952 = vmatpush.bf16.msra.mxu1 %v1727_v7 }
   0x6   :  { %v1710_v14 = vld [vmem:[%s3352_s1 + $0x1c0] sm:$0xf]  ;;  %v2182_v15 = vld [vmem:[%s3352_s1 + $0x1cc] sm:$0xf0]  ;;  %965 = vmatpush.bf16.msra.mxu2 %v1855_v8  ;;  %v1583_v16 = vor.u32 %v2150_v13, %v1582_v11 }
   0x7   :  { %v1711_v17 = vor.u32 %v2182_v15, %v1710_v14  ;;  %v1838_v18 = vld [vmem:[%s3352_s1 + $0x2c0] sm:$0xf]  ;;  %v2214_v19 = vld [vmem:[%s3352_s1 + $0x2cc] sm:$0xf0]  ;;  %978 = vmatpush.bf16.msra.mxu3 %v1983_v12 }
   0x8   :  { %v1966_v20 = vld [vmem:[%s3352_s1 + $0x3c0] sm:$0xf]  ;;  %v1839_v21 = vor.u32 %v2214_v19, %v1838_v18  ;;  %v2246_v22 = vld [vmem:[%s3352_s1 + $0x3cc] sm:$0xf0]  ;;  %940 = vmatpush.bf16.msra.mxu0 %v1583_v16 }
   0x9   :  { %v1566_v23 = vld [vmem:[%s3352_s1 + $0xa0] sm:$0xf]  ;;  %v2146_v24 = vld [vmem:[%s3352_s1 + $0xac] sm:$0xf0]  ;;  %v1967_v25 = vor.u32 %v2246_v22, %v1966_v20  ;;  %953 = vmatpush.bf16.msra.mxu1 %v1711_v17 }
   0xa   :  { %v1694_v26 = vld [vmem:[%s3352_s1 + $0x1a0] sm:$0xf]  ;;  %v2178_v27 = vld [vmem:[%s3352_s1 + $0x1ac] sm:$0xf0]  ;;  %v1567_v29 = vor.u32 %v2146_v24, %v1566_v23  ;;  %966 = vmatpush.bf16.msra.mxu2 %v1839_v21 }
   0xb   :  { %v1822_v28 = vld [vmem:[%s3352_s1 + $0x2a0] sm:$0xf]  ;;  %v2210_v30 = vld [vmem:[%s3352_s1 + $0x2ac] sm:$0xf0]  ;;  %v1695_v33 = vor.u32 %v2178_v27, %v1694_v26  ;;  %979 = vmatpush.bf16.msra.mxu3 %v1967_v25 }
   0xc   :  { %v1950_v31 = vld [vmem:[%s3352_s1 + $0x3a0] sm:$0xf]  ;;  %v2242_v32 = vld [vmem:[%s3352_s1 + $0x3ac] sm:$0xf0]  ;;  %v1823_v34 = vor.u32 %v2210_v30, %v1822_v28  ;;  %941 = vmatpush.bf16.msra.mxu0 %v1567_v29  ;;  %v2152_v28 = vld [vmem:[%s3352_s1 + $0xe4] sm:$0xf] }
   0xd   :  { %v1550_v35 = vld [vmem:[%s3352_s1 + $0x80] sm:$0xf]  ;;  %v2142_v36 = vld [vmem:[%s3352_s1 + $0x8c] sm:$0xf0]  ;;  %v1951_v38 = vor.u32 %v2242_v32, %v1950_v31  ;;  %954 = vmatpush.bf16.msra.mxu1 %v1695_v33  ;;  %v1600_v29 = vld [vmem:[%s3352_s1 + $0xf0] sm:$0xf0] }
   0xe   :  { %v1678_v37 = vld [vmem:[%s3352_s1 + $0x180] sm:$0xf]  ;;  %v2174_v39 = vld [vmem:[%s3352_s1 + $0x18c] sm:$0xf0]  ;;  %v1551_v44 = vor.u32 %v2142_v36, %v1550_v35  ;;  %967 = vmatpush.bf16.msra.mxu2 %v1823_v34  ;;  %v2184_v30 = vld [vmem:[%s3352_s1 + $0x1e4] sm:$0xf] }
   0xf   :  { %v1806_v40 = vld [vmem:[%s3352_s1 + $0x280] sm:$0xf]  ;;  %v2206_v41 = vld [vmem:[%s3352_s1 + $0x28c] sm:$0xf0]  ;;  %v1679_v45 = vor.u32 %v2174_v39, %v1678_v37  ;;  %980 = vmatpush.bf16.msra.mxu3 %v1951_v38  ;;  %v1728_v32 = vld [vmem:[%s3352_s1 + $0x1f0] sm:$0xf0] }
  0x10   :  { %v1934_v42 = vld [vmem:[%s3352_s1 + $0x380] sm:$0xf]  ;;  %v2238_v43 = vld [vmem:[%s3352_s1 + $0x38c] sm:$0xf0]  ;;  %v1807_v46 = vor.u32 %v2206_v41, %v1806_v40  ;;  %942 = vmatpush.bf16.msra.mxu0 %v1551_v44  ;;  %v2216_v33 = vld [vmem:[%s3352_s1 + $0x2e4] sm:$0xf]  ;;  %v1603_v40 = vor.u32 %v2152_v28, %v1600_v29 }
  0x11   :  { %v1534_v47 = vld [vmem:[%s3352_s1 + $0x60] sm:$0xf]  ;;  %v2138_v48 = vld [vmem:[%s3352_s1 + $0x6c] sm:$0xf0]  ;;  %v1935_v50 = vor.u32 %v2238_v43, %v1934_v42  ;;  %955 = vmatpush.bf16.msra.mxu1 %v1679_v45  ;;  %v1856_v34 = vld [vmem:[%s3352_s1 + $0x2f0] sm:$0xf0]  ;;  %v1731_v43 = vor.u32 %v2184_v30, %v1728_v32 }
  0x12   :  { %v1662_v49 = vld [vmem:[%s3352_s1 + $0x160] sm:$0xf]  ;;  %v2170_v51 = vld [vmem:[%s3352_s1 + $0x16c] sm:$0xf0]  ;;  %v1535_v56 = vor.u32 %v2138_v48, %v1534_v47  ;;  %968 = vmatpush.bf16.msra.mxu2 %v1807_v46  ;;  %v2248_v37 = vld [vmem:[%s3352_s1 + $0x3e4] sm:$0xf]  ;;  %v1859_v44 = vor.u32 %v2216_v33, %v1856_v34 }
  0x13   :  { %v1790_v52 = vld [vmem:[%s3352_s1 + $0x260] sm:$0xf]  ;;  %v2202_v53 = vld [vmem:[%s3352_s1 + $0x26c] sm:$0xf0]  ;;  %v1663_v57 = vor.u32 %v2170_v51, %v1662_v49  ;;  %981 = vmatpush.bf16.msra.mxu3 %v1935_v50  ;;  %v1984_v38 = vld [vmem:[%s3352_s1 + $0x3f0] sm:$0xf0] }
  0x14   :  { %v1918_v54 = vld [vmem:[%s3352_s1 + $0x360] sm:$0xf]  ;;  %v2234_v55 = vld [vmem:[%s3352_s1 + $0x36c] sm:$0xf0]  ;;  %v1791_v58 = vor.u32 %v2202_v53, %v1790_v52  ;;  %943 = vmatpush.bf16.msra.mxu0 %v1535_v56  ;;  %v2148_v41 = vld [vmem:[%s3352_s1 + $0xc4] sm:$0xf]  ;;  %v1987_v48 = vor.u32 %v2248_v37, %v1984_v38 }
  0x15   :  { %v1518_v59 = vld [vmem:[%s3352_s1 + $0x40] sm:$0xf]  ;;  %v2134_v60 = vld [vmem:[%s3352_s1 + $0x4c] sm:$0xf0]  ;;  %v1919_v62 = vor.u32 %v2234_v55, %v1918_v54  ;;  %956 = vmatpush.bf16.msra.mxu1 %v1663_v57  ;;  %v1584_v42 = vld [vmem:[%s3352_s1 + $0xd0] sm:$0xf0] }
  0x16   :  { %v1646_v61 = vld [vmem:[%s3352_s1 + $0x140] sm:$0xf]  ;;  %v2166_v63 = vld [vmem:[%s3352_s1 + $0x14c] sm:$0xf0]  ;;  %v1519_v4 = vor.u32 %v2134_v60, %v1518_v59  ;;  %969 = vmatpush.bf16.msra.mxu2 %v1791_v58  ;;  %v2180_v45 = vld [vmem:[%s3352_s1 + $0x1c4] sm:$0xf]  ;;  %v1587_v56 = vor.u32 %v2148_v41, %v1584_v42 }
  0x17   :  { %v1774_v0 = vld [vmem:[%s3352_s1 + $0x240] sm:$0xf]  ;;  %v2198_v1 = vld [vmem:[%s3352_s1 + $0x24c] sm:$0xf0]  ;;  %v1647_v5 = vor.u32 %v2166_v63, %v1646_v61  ;;  %982 = vmatpush.bf16.msra.mxu3 %v1919_v62  ;;  %v1712_v46 = vld [vmem:[%s3352_s1 + $0x1d0] sm:$0xf0] }
  0x18   :  { %v1902_v2 = vld [vmem:[%s3352_s1 + $0x340] sm:$0xf]  ;;  %v2230_v3 = vld [vmem:[%s3352_s1 + $0x34c] sm:$0xf0]  ;;  %v1775_v6 = vor.u32 %v2198_v1, %v1774_v0  ;;  %944 = vmatpush.bf16.msra.mxu0 %v1519_v4  ;;  %v2212_v47 = vld [vmem:[%s3352_s1 + $0x2c4] sm:$0xf]  ;;  %v1715_v63 = vor.u32 %v2180_v45, %v1712_v46 }
  0x19   :  { %v1502_v7 = vld [vmem:[%s3352_s1 + $0x20] sm:$0xf]  ;;  %v2130_v8 = vld [vmem:[%s3352_s1 + $0x2c] sm:$0xf0]  ;;  %v1903_v10 = vor.u32 %v2230_v3, %v1902_v2  ;;  %957 = vmatpush.bf16.msra.mxu1 %v1647_v5  ;;  %v1840_v49 = vld [vmem:[%s3352_s1 + $0x2d0] sm:$0xf0] }
  0x1a   :  { %v1630_v9 = vld [vmem:[%s3352_s1 + $0x120] sm:$0xf]  ;;  %v2162_v11 = vld [vmem:[%s3352_s1 + $0x12c] sm:$0xf0]  ;;  %v1503_v16 = vor.u32 %v2130_v8, %v1502_v7  ;;  %970 = vmatpush.bf16.msra.mxu2 %v1775_v6  ;;  %v2244_v50 = vld [vmem:[%s3352_s1 + $0x3c4] sm:$0xf]  ;;  %v1843_v0 = vor.u32 %v2212_v47, %v1840_v49 }
  0x1b   :  { %v1758_v12 = vld [vmem:[%s3352_s1 + $0x220] sm:$0xf]  ;;  %v2194_v13 = vld [vmem:[%s3352_s1 + $0x22c] sm:$0xf0]  ;;  %v1631_v19 = vor.u32 %v2162_v11, %v1630_v9  ;;  %983 = vmatpush.bf16.msra.mxu3 %v1903_v10  ;;  %v1968_v51 = vld [vmem:[%s3352_s1 + $0x3d0] sm:$0xf0] }
  0x1c   :  { %v1886_v14 = vld [vmem:[%s3352_s1 + $0x320] sm:$0xf]  ;;  %v2226_v15 = vld [vmem:[%s3352_s1 + $0x32c] sm:$0xf0]  ;;  %v1759_v20 = vor.u32 %v2194_v13, %v1758_v12  ;;  %945 = vmatpush.bf16.msra.mxu0 %v1503_v16  ;;  %v2590_v52 = vld [vmem:[%s3352_s1 + $0xa4] sm:$0xf]  ;;  %v1971_v5 = vor.u32 %v2244_v50, %v1968_v51 }
  0x1d   :  { %v1486_v17 = vld [vmem:[%s3352_s1] sm:$0xf]  ;;  %v2126_v18 = vld [vmem:[%s3352_s1 + $0xc] sm:$0xf0]  ;;  %v1887_v24 = vor.u32 %v2226_v15, %v1886_v14  ;;  %958 = vmatpush.bf16.msra.mxu1 %v1631_v19  ;;  %v1568_v53 = vld [vmem:[%s3352_s1 + $0xb0] sm:$0xf0] }
  0x1e   :  { %v1614_v21 = vld [vmem:[%s3352_s1 + $0x100] sm:$0xf]  ;;  %v2158_v22 = vld [vmem:[%s3352_s1 + $0x10c] sm:$0xf0]  ;;  %v1487_v31 = vor.u32 %v2126_v18, %v1486_v17  ;;  %971 = vmatpush.bf16.msra.mxu2 %v1759_v20  ;;  %v22_v54 = vld [vmem:[%s3351_s0 + $0x8] sm:$0xff]  ;;  %v2315_v61 = vmov 4.0   ;;  %v1571_v17 = vor.u32 %v2590_v52, %v1568_v53 }
  0x1f   :  { %v1742_v23 = vld [vmem:[%s3352_s1 + $0x200] sm:$0xf]  ;;  %v2190_v25 = vld [vmem:[%s3352_s1 + $0x20c] sm:$0xf0]  ;;  %v1615_v35 = vor.u32 %v2158_v22, %v1614_v21  ;;  %984 = vmatpush.bf16.msra.mxu3 %v1887_v24  ;;  %v24_v55 = vld [vmem:[%s3351_s0 + $0x18] sm:$0xff]  ;;  %2287 = vrcp.f32 %v2315_v61 }
  0x20   :  { %v1870_v26 = vld [vmem:[%s3352_s1 + $0x300] sm:$0xf]  ;;  %v2222_v27 = vld [vmem:[%s3352_s1 + $0x30c] sm:$0xf0]  ;;  %v1743_v36 = vor.u32 %v2190_v25, %v1742_v23  ;;  %946 = vmatpush.bf16.msra.mxu0 %v1487_v31  ;;  %v2604_v57 = vld [vmem:[%s3352_s1 + $0x1a4] sm:$0xf] }
  0x21   :  { %v1871_v39 = vor.u32 %v2222_v27, %v1870_v26  ;;  %959 = vmatpush.bf16.msra.mxu1 %v1615_v35  ;;  %v1696_v58 = vld [vmem:[%s3352_s1 + $0x1b0] sm:$0xf0]  ;;  %v2208_v59 = vld [vmem:[%s3352_s1 + $0x2a4] sm:$0xf]  ;;  %31 = vst [vmem:[#allocation1 + $0x10] ss:$2 sm:$0xff] %v22_v54 }
  0x22   :  { %972 = vmatpush.bf16.msra.mxu2 %v1743_v36  ;;  %v1824_v60 = vld [vmem:[%s3352_s1 + $0x2b0] sm:$0xf0]  ;;  %v21_v62 = vld [vmem:[%s3351_s0] sm:$0xff]  ;;  %39 = vst [vmem:[#allocation1 + $0x30] ss:$2 sm:$0xff] %v24_v55 }
  0x23   :  { %985 = vmatpush.bf16.msra.mxu3 %v1871_v39  ;;  %v2240_v1 = vld [vmem:[%s3352_s1 + $0x3a4] sm:$0xf]  ;;  %v1952_v2 = vld [vmem:[%s3352_s1 + $0x3b0] sm:$0xf0]  ;;  %29 = vst [vmem:[#allocation1] ss:$2 sm:$0xff] %v21_v62 }
  0x24   :  { %991 = vmatpush.bf16.msrb.mxu0 %v1603_v40  ;;  %v2627_v3 = vld [vmem:[%s3352_s1 + $0x84] sm:$0xf]  ;;  %v2632_v4 = vld [vmem:[%s3352_s1 + $0x90] sm:$0xf0] }
  0x25   :  { %1004 = vmatpush.bf16.msrb.mxu1 %v1731_v43  ;;  %v2637_v6 = vld [vmem:[%s3352_s1 + $0x184] sm:$0xf]  ;;  %v2642_v7 = vld [vmem:[%s3352_s1 + $0x190] sm:$0xf0] }
  0x26   :  { %1017 = vmatpush.bf16.msrb.mxu2 %v1859_v44  ;;  %v2647_v8 = vld [vmem:[%s3352_s1 + $0x284] sm:$0xf]  ;;  %v2652_v9 = vld [vmem:[%s3352_s1 + $0x290] sm:$0xf0] }
  0x27   :  { %1030 = vmatpush.bf16.msrb.mxu3 %v1987_v48  ;;  %v2657_v10 = vld [vmem:[%s3352_s1 + $0x384] sm:$0xf]  ;;  %v2662_v11 = vld [vmem:[%s3352_s1 + $0x390] sm:$0xf0] }
  0x28   :  { %v2667_v12 = vld [vmem:[%s3352_s1 + $0x64] sm:$0xf]  ;;  %v2672_v13 = vld [vmem:[%s3352_s1 + $0x70] sm:$0xf0]  ;;  %992 = vmatpush.bf16.msrb.mxu0 %v1587_v56 }
  0x29   :  { %v2677_v14 = vld [vmem:[%s3352_s1 + $0x164] sm:$0xf]  ;;  %v2682_v15 = vld [vmem:[%s3352_s1 + $0x170] sm:$0xf0] }
  0x2a   :  { %v23_v16 = vld [vmem:[%s3351_s0 + $0x10] sm:$0xff] }
  0x2b   :  { %37 = vst [vmem:[#allocation1 + $0x20] ss:$2 sm:$0xff] %v23_v16 }
  0x2c   :  { %10 = vsyncpa [#allocation3], 0  ;;  %1005 = vmatpush.bf16.msrb.mxu1 %v1715_v63  ;;  %1018 = vmatpush.bf16.msrb.mxu2 %v1843_v0  ;;  %v1699_v18 = vor.u32 %v2604_v57, %v1696_v58  ;;  %v1827_v19 = vor.u32 %v2208_v59, %v1824_v60  ;;  %v2692_v20 = vld [vmem:[%s3352_s1 + $0x264] sm:$0xf]  ;;  %v2697_v21 = vld [vmem:[%s3352_s1 + $0x270] sm:$0xf0]  ;;  %v2288_v23 = vpop.eup %2287  ;;  %v1955_v24 = vor.u32 %v2240_v1, %v1952_v2 }
  0x2d   :  { %v2702_v22 = vld [vmem:[%s3352_s1 + $0x364] sm:$0xf]  ;;  %1031 = vmatpush.bf16.msrb.mxu3 %v1971_v5  ;;  %v1555_v25 = vor.u32 %v2627_v3, %v2632_v4  ;;  %v2709_v26 = vld [vmem:[%s3352_s1 + $0x370] sm:$0xf0]  ;;  %v1683_v29 = vor.u32 %v2637_v6, %v2642_v7  ;;  %v1811_v30 = vor.u32 %v2647_v8, %v2652_v9  ;;  %v1939_v31 = vor.u32 %v2657_v10, %v2662_v11  ;;  %s2316_s10 = smov [#allocation2]   ;;  %s1475_s14 = sshll.u32 %s3356_s5, 4  ;;  %s1476_s14 = int_to_ptr.hbm [resolvable:$true] %s1475_s14 }
  0x2e   :  { %v2714_v27 = vld [vmem:[%s3352_s1 + $0x44] sm:$0xf]  ;;  %v2719_v28 = vld [vmem:[%s3352_s1 + $0x50] sm:$0xf0]  ;;  %v110_v33 = vmul.f32 4.0, %v2288_v23  ;;  %993 = vmatpush.bf16.msrb.mxu0 %v1571_v17  ;;  %v1539_v37 = vor.u32 %v2667_v12, %v2672_v13  ;;  %v1667_v38 = vor.u32 %v2677_v14, %v2682_v15  ;;  %v1795_v39 = vor.u32 %v2692_v20, %v2697_v21  ;;  %s1473_s11 = sshll.u32 %s2316_s10, 4  ;;  %s1474_s11 = int_to_ptr.vmem [resolvable:$true] %s1473_s11 }
  0x2f   :  { %v34_v32 = vld.sshfl [vmem:[#allocation1 + $0x10] sm:$0xff pattern:$0x75316420]  ;;  %v2730_v34 = vld [vmem:[%s3352_s1 + $0x144] sm:$0xf]  ;;  %v1923_v44 = vor.u32 %v2702_v22, %v2709_v26  ;;  %vm114_vm1 = vweird.f32 %v2288_v23  ;;  %v1523_v49 = vor.u32 %v2714_v27, %v2719_v28  ;;  %vm286_vm2 = vcmask 1041409  }
  0x30   :  { %v42_v35 = vld.sshfl [vmem:[#allocation1 + $0x30] sm:$0xff pattern:$0x75316420]  ;;  %v67_v36 = vsel %vm52_vm0, %v34_v32, 0.0  ;;  %1006 = vmatpush.bf16.msrb.mxu1 %v1699_v18  ;;  %1019 = vmatpush.bf16.msrb.mxu2 %v1827_v19  ;;  %v111_v43 = vsub.f32 1.0, %v110_v33 }
  0x31   :  { %v2742_v40 = vld [vmem:[%s3352_s1 + $0x150] sm:$0xf0]  ;;  %v68_v41 = vrot.slane %v67_v36, 4  ;;  %v95_v42 = vsel %vm52_vm0, %v42_v35, 0.0  ;;  %1032 = vmatpush.bf16.msrb.mxu3 %v1955_v24 }
  0x32   :  { %v35_v45 = vld.sshfl [vmem:[#allocation1 + $0x18] sm:$0xff pattern:$0x75316420]  ;;  %v96_v46 = vrot.slane %v95_v42, 4  ;;  %v112_v51 = vmul.f32 %v2288_v23, %v111_v43  ;;  %994 = vmatpush.bf16.msrb.mxu0 %v1555_v25  ;;  %v1651_v59 = vor.u32 %v2730_v34, %v2742_v40 }
  0x33   :  { %v32_v47 = vld.sshfl [vmem:[#allocation1] sm:$0xff pattern:$0x75316420]  ;;  %v74_v48 = vsel %vm52_vm0, %v35_v45, 0.0  ;;  %v69_v50 = vadd.f32 %v68_v41, %v67_v36 }
  0x34   :  { %v40_v52 = vld.sshfl [vmem:[#allocation1 + $0x20] sm:$0xff pattern:$0x75316420]  ;;  %v53_v53 = vsel %vm52_vm0, %v32_v47, 0.0  ;;  %v75_v54 = vrot.slane %v74_v48, 4  ;;  %v97_v55 = vadd.f32 %v96_v46, %v95_v42  ;;  %1007 = vmatpush.bf16.msrb.mxu1 %v1683_v29  ;;  %1020 = vmatpush.bf16.msrb.mxu2 %v1811_v30  ;;  %v113_v61 = vadd.f32 %v2288_v23, %v112_v51 }
  0x35   :  { %v54_v56 = vrot.slane %v53_v53, 4  ;;  %v81_v57 = vsel %vm52_vm0, %v40_v52, 0.0  ;;  %v43_v58 = vld.sshfl [vmem:[#allocation1 + $0x38] sm:$0xff pattern:$0x75316420]  ;;  %v70_v60 = vrot.slane %v69_v50, 2  ;;  %1033 = vmatpush.bf16.msrb.mxu3 %v1939_v31 }
  0x36   :  { %v82_v62 = vrot.slane %v81_v57, 4  ;;  %v76_v63 = vadd.f32 %v75_v54, %v74_v48  ;;  %v33_v0 = vld.sshfl [vmem:[#allocation1 + $0x8] sm:$0xff pattern:$0x75316420]  ;;  %v98_v1 = vrot.slane %v97_v55, 2  ;;  %v102_v3 = vsel %vm52_vm0, %v43_v58, 0.0  ;;  %995 = vmatpush.bf16.msrb.mxu0 %v1539_v37 }
  0x37   :  { %v55_v2 = vadd.f32 %v54_v56, %v53_v53  ;;  %v41_v4 = vld.sshfl [vmem:[#allocation1 + $0x28] sm:$0xff pattern:$0x75316420]  ;;  %v60_v5 = vsel %vm52_vm0, %v33_v0, 0.0  ;;  %v71_v6 = vadd.f32 %v70_v60, %v69_v50  ;;  %v2757_v7 = vsel %vm114_vm1, %v2288_v23, %v113_v61  ;;  %v2196_v46 = vld [vmem:[%s3352_s1 + $0x244] sm:$0xf] }
  0x38   :  { %v83_v8 = vadd.f32 %v82_v62, %v81_v57  ;;  %v77_v9 = vrot.slane %v76_v63, 2  ;;  %v99_v10 = vadd.f32 %v98_v1, %v97_v55  ;;  %v103_v12 = vrot.slane %v102_v3, 4  ;;  %1008 = vmatpush.bf16.msrb.mxu1 %v1667_v38  ;;  %1021 = vmatpush.bf16.msrb.mxu2 %v1795_v39  ;;  %v1776_v47 = vld [vmem:[%s3352_s1 + $0x250] sm:$0xf0]  ;;  %v2228_v52 = vld [vmem:[%s3352_s1 + $0x344] sm:$0xf] }
  0x39   :  { %v56_v11 = vrot.slane %v55_v2, 2  ;;  %v61_v13 = vrot.slane %v60_v5, 4  ;;  %v72_v14 = vrot.slane %v71_v6, 1  ;;  %v88_v17 = vsel %vm52_vm0, %v41_v4, 0.0  ;;  %1034 = vmatpush.bf16.msrb.mxu3 %v1923_v44  ;;  %v1904_v53 = vld [vmem:[%s3352_s1 + $0x350] sm:$0xf0] }
  0x3a   :  { %v84_v15 = vrot.slane %v83_v8, 2  ;;  %v78_v16 = vadd.f32 %v77_v9, %v76_v63  ;;  %v100_v18 = vrot.slane %v99_v10, 1  ;;  %v104_v20 = vadd.f32 %v103_v12, %v102_v3  ;;  %996 = vmatpush.bf16.msrb.mxu0 %v1523_v49  ;;  %v2128_v58 = vld [vmem:[%s3352_s1 + $0x24] sm:$0xf]  ;;  %v1632_v1 = vld [vmem:[%s3352_s1 + $0x130] sm:$0xf0] }
  0x3b   :  { %v57_v19 = vadd.f32 %v56_v11, %v55_v2  ;;  %v62_v21 = vadd.f32 %v61_v13, %v60_v5  ;;  %v73_v22 = vadd.f32 %v72_v14, %v71_v6  ;;  %v89_v25 = vrot.slane %v88_v17, 4  ;;  %v2160_v60 = vld [vmem:[%s3352_s1 + $0x124] sm:$0xf] }
  0x3c   :  { %v85_v23 = vadd.f32 %v84_v15, %v83_v8  ;;  %v79_v24 = vrot.slane %v78_v16, 1  ;;  %v101_v26 = vadd.f32 %v100_v18, %v99_v10  ;;  %v105_v28 = vrot.slane %v104_v20, 2  ;;  %1009 = vmatpush.bf16.msrb.mxu1 %v1651_v59  ;;  %v1504_v59 = vld [vmem:[%s3352_s1 + $0x30] sm:$0xf0]  ;;  %v2192_v2 = vld [vmem:[%s3352_s1 + $0x224] sm:$0xf] }
  0x3d   :  { %v58_v27 = vrot.slane %v57_v19, 1  ;;  %v63_v29 = vrot.slane %v62_v21, 2  ;;  %v118_v30 = vmul.f32 %v2757_v7, %v73_v22  ;;  %v90_v33 = vadd.f32 %v89_v25, %v88_v17  ;;  %v1760_v8 = vld [vmem:[%s3352_s1 + $0x230] sm:$0xf0]  ;;  %v2224_v9 = vld [vmem:[%s3352_s1 + $0x324] sm:$0xf] }
  0x3e   :  { %v86_v31 = vrot.slane %v85_v23, 1  ;;  %v80_v32 = vadd.f32 %v79_v24, %v78_v16  ;;  %v122_v34 = vmul.f32 %v2757_v7, %v101_v26  ;;  %v106_v36 = vadd.f32 %v105_v28, %v104_v20  ;;  %v1888_v10 = vld [vmem:[%s3352_s1 + $0x330] sm:$0xf0]  ;;  %v2124_v15 = vld [vmem:[%s3352_s1 + $0x4] sm:$0xf] }
  0x3f   :  { %v59_v35 = vadd.f32 %v58_v27, %v57_v19  ;;  %v64_v37 = vadd.f32 %v63_v29, %v62_v21  ;;  %v126_v38 = vpack.c.bf16 %v118_v30, %v118_v30  ;;  %v91_v41 = vrot.slane %v90_v33, 2  ;;  %v1488_v16 = vld [vmem:[%s3352_s1 + $0x10] sm:$0xf0]  ;;  %v2156_v17 = vld [vmem:[%s3352_s1 + $0x104] sm:$0xf] }
  0x40   :  { %v87_v39 = vadd.f32 %v86_v31, %v85_v23  ;;  %v119_v40 = vmul.f32 %v2757_v7, %v80_v32  ;;  %v130_v42 = vpack.c.bf16 %v122_v34, %v122_v34  ;;  %v107_v44 = vrot.slane %v106_v36, 1  ;;  %v1616_v22 = vld [vmem:[%s3352_s1 + $0x110] sm:$0xf0]  ;;  %v2188_v23 = vld [vmem:[%s3352_s1 + $0x204] sm:$0xf] }
  0x41   :  { %v116_v43 = vmul.f32 %v2757_v7, %v59_v35  ;;  %v65_v45 = vrot.slane %v64_v37, 1  ;;  %v280_v48 = vunpack.c.l.b16 %v126_v38  ;;  %v92_v51 = vadd.f32 %v91_v41, %v90_v33  ;;  %v1744_v24 = vld [vmem:[%s3352_s1 + $0x210] sm:$0xf0]  ;;  %v2220_v28 = vld [vmem:[%s3352_s1 + $0x304] sm:$0xf] }
  0x42   :  { %v120_v49 = vmul.f32 %v2757_v7, %v87_v39  ;;  %v127_v50 = vpack.c.bf16 %v119_v40, %v119_v40  ;;  %v284_v54 = vunpack.c.l.b16 %v130_v42  ;;  %v108_v56 = vadd.f32 %v107_v44, %v106_v36  ;;  %v1606_v29 = vld [vmem:[%s3352_s1 + $0xe8] sm:$0xf]  ;;  %v2155_v30 = vld [vmem:[%s3352_s1 + $0xf4] sm:$0xf0]  ;;  %v1872_v34 = vld [vmem:[%s3352_s1 + $0x310] sm:$0xf0] }
  0x43   :  { %v124_v55 = vpack.c.bf16 %v116_v43, %v116_v43  ;;  %v66_v57 = vadd.f32 %v65_v45, %v64_v37  ;;  %v93_v63 = vrot.slane %v92_v51, 1  ;;  %v1779_v0 = vor.u32 %v2196_v46, %v1776_v47  ;;  %v1862_v35 = vld [vmem:[%s3352_s1 + $0x2e8] sm:$0xf]  ;;  %v2219_v36 = vld [vmem:[%s3352_s1 + $0x2f4] sm:$0xf0] }
  0x44   :  { %v128_v61 = vpack.c.bf16 %v120_v49, %v120_v49  ;;  %v281_v62 = vunpack.c.l.b16 %v127_v50  ;;  %v289_v3 = vsel %vm286_vm2, %v284_v54, %v280_v48  ;;  %v123_v5 = vmul.f32 %v2757_v7, %v108_v56  ;;  %v1990_v41 = vld [vmem:[%s3352_s1 + $0x3e8] sm:$0xf]  ;;  %v2251_v42 = vld [vmem:[%s3352_s1 + $0x3f4] sm:$0xf0] }
  0x45   :  { %v278_v4 = vunpack.c.l.b16 %v124_v55  ;;  %v117_v6 = vmul.f32 %v2757_v7, %v66_v57  ;;  %v2804_v11 = vpack.c.b16 %v289_v3, %v289_v3  ;;  %v94_v13 = vadd.f32 %v93_v63, %v92_v51  ;;  %1022 = vmatpush.bf16.msrb.mxu2 %v1779_v0  ;;  %v1734_v45 = vld [vmem:[%s3352_s1 + $0x1e8] sm:$0xf]  ;;  %v2187_v46 = vld [vmem:[%s3352_s1 + $0x1f4] sm:$0xf0] }
  0x46   :  { %v282_v12 = vunpack.c.l.b16 %v128_v61  ;;  %v1907_v14 = vor.u32 %v2228_v52, %v1904_v53  ;;  %v131_v18 = vpack.c.bf16 %v123_v5, %v123_v5  ;;  %v1507_v20 = vor.u32 %v2128_v58, %v1504_v59  ;;  %v1590_v47 = vld [vmem:[%s3352_s1 + $0xc8] sm:$0xf]  ;;  %v2151_v52 = vld [vmem:[%s3352_s1 + $0xd4] sm:$0xf0] }
  0x47   :  { %v125_v19 = vpack.c.bf16 %v117_v6, %v117_v6  ;;  %v1635_v21 = vor.u32 %v2160_v60, %v1632_v1  ;;  %973 = vmatmul.bf16.vlgmr.msra.gmra.mxu2 %v2804_v11  ;;  %v121_v26 = vmul.f32 %v2757_v7, %v94_v13  ;;  %v1763_v27 = vor.u32 %v2192_v2, %v1760_v8  ;;  %v1846_v53 = vld [vmem:[%s3352_s1 + $0x2c8] sm:$0xf]  ;;  %v2215_v54 = vld [vmem:[%s3352_s1 + $0x2d4] sm:$0xf0] }
  0x48   :  { %v287_v25 = vsel %vm286_vm2, %v282_v12, %v278_v4  ;;  %1035 = vmatpush.bf16.msrb.mxu3 %v1907_v14  ;;  %v285_v32 = vunpack.c.l.b16 %v131_v18  ;;  %997 = vmatpush.bf16.msrb.mxu0 %v1507_v20  ;;  %v1891_v7 = vor.u32 %v2224_v9, %v1888_v10  ;;  %v1491_v38 = vor.u32 %v2124_v15, %v1488_v16  ;;  %v1974_v58 = vld [vmem:[%s3352_s1 + $0x3c8] sm:$0xf]  ;;  %v2247_v59 = vld [vmem:[%s3352_s1 + $0x3d4] sm:$0xf0] }
  0x49   :  { %v2836_v31 = vpack.c.b16 %v287_v25, %v287_v25  ;;  %v279_v33 = vunpack.c.l.b16 %v125_v19  ;;  %1010 = vmatpush.bf16.msrb.mxu1 %v1635_v21  ;;  %v129_v37 = vpack.c.bf16 %v121_v26, %v121_v26  ;;  %1023 = vmatpush.bf16.msrb.mxu2 %v1763_v27  ;;  %v1619_v39 = vor.u32 %v2156_v17, %v1616_v22  ;;  %v2183_v63 = vld [vmem:[%s3352_s1 + $0x1d4] sm:$0xf0]  ;;  %v1574_v1 = vld [vmem:[%s3352_s1 + $0xa8] sm:$0xf] }
  0x4a   :  { %v1747_v40 = vor.u32 %v2188_v23, %v1744_v24  ;;  %v290_v43 = vsel %vm286_vm2, %v285_v32, %v281_v62  ;;  %v1607_v44 = vor.u32 %v2155_v30, %v1606_v29  ;;  %v1875_v50 = vor.u32 %v2220_v28, %v1872_v34  ;;  %v1718_v62 = vld [vmem:[%s3352_s1 + $0x1c8] sm:$0xf]  ;;  %v2147_v2 = vld [vmem:[%s3352_s1 + $0xb4] sm:$0xf0] }
  0x4b   :  { %947 = vmatmul.bf16.vlgmr.msra.gmra.mxu0 %v2836_v31  ;;  %v2864_v48 = vpack.c.b16 %v290_v43, %v290_v43  ;;  %v283_v49 = vunpack.c.l.b16 %v129_v37  ;;  %v1863_v51 = vor.u32 %v2219_v36, %v1862_v35  ;;  %v1991_v55 = vor.u32 %v2251_v42, %v1990_v41  ;;  %v1830_v3 = vld [vmem:[%s3352_s1 + $0x2a8] sm:$0xf]  ;;  %v2211_v4 = vld [vmem:[%s3352_s1 + $0x2b4] sm:$0xf0] }
  0x4c   :  { %1036 = vmatpush.bf16.msrb.mxu3 %v1891_v7  ;;  %998 = vmatpush.bf16.msrb.mxu0 %v1491_v38  ;;  %v1735_v57 = vor.u32 %v2187_v46, %v1734_v45  ;;  %v1591_v61 = vor.u32 %v2151_v52, %v1590_v47  ;;  %v1847_v0 = vor.u32 %v2215_v54, %v1846_v53  ;;  %v1958_v8 = vld [vmem:[%s3352_s1 + $0x3a8] sm:$0xf]  ;;  %v2243_v9 = vld [vmem:[%s3352_s1 + $0x3b4] sm:$0xf0] }
  0x4d   :  { %1011 = vmatpush.bf16.msrb.mxu1 %v1619_v39  ;;  %986 = vmatmul.bf16.vlgmr.msra.gmra.mxu3 %v2864_v48  ;;  %v288_v56 = vsel %vm286_vm2, %v283_v49, %v279_v33  ;;  %v1975_v5 = vor.u32 %v2247_v59, %v1974_v58  ;;  %v1719_v6 = vor.u32 %v2183_v63, %v1718_v62  ;;  %v1702_v12 = vld [vmem:[%s3352_s1 + $0x1a8] sm:$0xf]  ;;  %v2179_v13 = vld [vmem:[%s3352_s1 + $0x1b4] sm:$0xf0] }
  0x4e   :  { %1024 = vmatpush.bf16.msrb.mxu2 %v1747_v40  ;;  %v2883_v60 = vpack.c.b16 %v288_v56, %v288_v56  ;;  %v1575_v10 = vor.u32 %v2147_v2, %v1574_v1  ;;  %v1831_v14 = vor.u32 %v2211_v4, %v1830_v3  ;;  %v1814_v15 = vld [vmem:[%s3352_s1 + $0x288] sm:$0xf]  ;;  %v2207_v16 = vld [vmem:[%s3352_s1 + $0x294] sm:$0xf0]  ;;  %v1959_v17 = vor.u32 %v2243_v9, %v1958_v8  ;;  %v2217_v9 = vld [vmem:[%s3352_s1 + $0x2ec] sm:$0xf] }
  0x4f   :  { %v1558_v18 = vld [vmem:[%s3352_s1 + $0x88] sm:$0xf]  ;;  %v2143_v19 = vld [vmem:[%s3352_s1 + $0x94] sm:$0xf0]  ;;  %v1703_v20 = vor.u32 %v2179_v13, %v1702_v12  ;;  %v1815_v25 = vor.u32 %v2207_v16, %v1814_v15  ;;  %v1608_v15 = vld [vmem:[%s3352_s1 + $0xf8] sm:$0xf0] }
  0x50   :  { %1043 = vmatpush.bf16.msra.mxu0 %v1607_v44  ;;  %1037 = vmatpush.bf16.msrb.mxu3 %v1875_v50  ;;  %v1942_v21 = vld [vmem:[%s3352_s1 + $0x388] sm:$0xf]  ;;  %v2239_v22 = vld [vmem:[%s3352_s1 + $0x394] sm:$0xf0]  ;;  %v1559_v26 = vor.u32 %v2143_v19, %v1558_v18  ;;  %v2249_v18 = vld [vmem:[%s3352_s1 + $0x3ec] sm:$0xf] }
  0x51   :  { %960 = vmatmul.bf16.vlgmr.msra.gmra.mxu1 %v2883_v60  ;;  %v1686_v23 = vld [vmem:[%s3352_s1 + $0x188] sm:$0xf]  ;;  %v2175_v24 = vld [vmem:[%s3352_s1 + $0x194] sm:$0xf0]  ;;  %v1943_v29 = vor.u32 %v2239_v22, %v1942_v21  ;;  %v1992_v19 = vld [vmem:[%s3352_s1 + $0x3f8] sm:$0xf0] }
  0x52   :  { %1069 = vmatpush.bf16.msra.mxu2 %v1863_v51  ;;  %1056 = vmatpush.bf16.msra.mxu1 %v1735_v57  ;;  %v1798_v27 = vld [vmem:[%s3352_s1 + $0x268] sm:$0xf]  ;;  %v2203_v28 = vld [vmem:[%s3352_s1 + $0x274] sm:$0xf0]  ;;  %v1687_v33 = vor.u32 %v2175_v24, %v1686_v23  ;;  %v2185_v21 = vld [vmem:[%s3352_s1 + $0x1ec] sm:$0xf] }
  0x53   :  { %v1542_v30 = vld [vmem:[%s3352_s1 + $0x68] sm:$0xf]  ;;  %v2139_v32 = vld [vmem:[%s3352_s1 + $0x74] sm:$0xf0]  ;;  %v1799_v37 = vor.u32 %v2203_v28, %v1798_v27  ;;  %v1736_v22 = vld [vmem:[%s3352_s1 + $0x1f8] sm:$0xf0]  ;;  %v1995_v28 = vor.u32 %v2249_v18, %v1992_v19 }
  0x54   :  { %1082 = vmatpush.bf16.msra.mxu3 %v1991_v55  ;;  %1044 = vmatpush.bf16.msra.mxu0 %v1591_v61  ;;  %v1926_v7 = vld [vmem:[%s3352_s1 + $0x368] sm:$0xf]  ;;  %v2235_v34 = vld [vmem:[%s3352_s1 + $0x374] sm:$0xf0]  ;;  %v1543_v38 = vor.u32 %v2139_v32, %v1542_v30  ;;  %v2213_v30 = vld [vmem:[%s3352_s1 + $0x2cc] sm:$0xf] }
  0x55   :  { %v1670_v35 = vld [vmem:[%s3352_s1 + $0x168] sm:$0xf]  ;;  %v2171_v36 = vld [vmem:[%s3352_s1 + $0x174] sm:$0xf0]  ;;  %v1927_v41 = vor.u32 %v2235_v34, %v1926_v7  ;;  %v1848_v32 = vld [vmem:[%s3352_s1 + $0x2d8] sm:$0xf0] }
  0x56   :  { %1070 = vmatpush.bf16.msra.mxu2 %v1847_v0  ;;  %1057 = vmatpush.bf16.msra.mxu1 %v1719_v6  ;;  %v1782_v39 = vld [vmem:[%s3352_s1 + $0x248] sm:$0xf]  ;;  %v2199_v40 = vld [vmem:[%s3352_s1 + $0x254] sm:$0xf0]  ;;  %v1671_v44 = vor.u32 %v2171_v36, %v1670_v35  ;;  %v2245_v7 = vld [vmem:[%s3352_s1 + $0x3cc] sm:$0xf] }
  0x57   :  { %1025 = vmatmul.bf16.vlgmr.msrb.gmra.mxu2 %v2804_v11  ;;  %v1526_v42 = vld [vmem:[%s3352_s1 + $0x48] sm:$0xf]  ;;  %v2135_v43 = vld [vmem:[%s3352_s1 + $0x54] sm:$0xf0]  ;;  %v1783_v50 = vor.u32 %v2199_v40, %v1782_v39  ;;  %v1976_v34 = vld [vmem:[%s3352_s1 + $0x3d8] sm:$0xf0] }
  0x58   :  { %1083 = vmatpush.bf16.msra.mxu3 %v1975_v5  ;;  %1045 = vmatpush.bf16.msra.mxu0 %v1575_v10  ;;  %v1910_v45 = vld [vmem:[%s3352_s1 + $0x348] sm:$0xf]  ;;  %v2231_v46 = vld [vmem:[%s3352_s1 + $0x354] sm:$0xf0]  ;;  %v1527_v51 = vor.u32 %v2135_v43, %v1526_v42  ;;  %v1864_v10 = vld [vmem:[%s3352_s1 + $0x2f8] sm:$0xf0]  ;;  %v1979_v40 = vor.u32 %v2245_v7, %v1976_v34 }
  0x59   :  { %v1654_v47 = vld [vmem:[%s3352_s1 + $0x148] sm:$0xf]  ;;  %v2167_v49 = vld [vmem:[%s3352_s1 + $0x154] sm:$0xf0]  ;;  %v1911_v54 = vor.u32 %v2231_v46, %v1910_v45  ;;  %v1867_v23 = vor.u32 %v2217_v9, %v1864_v10  ;;  %v2181_v35 = vld [vmem:[%s3352_s1 + $0x1cc] sm:$0xf] }
  0x5a   :  { %1071 = vmatpush.bf16.msra.mxu2 %v1831_v14  ;;  %1058 = vmatpush.bf16.msra.mxu1 %v1703_v20  ;;  %v1766_v52 = vld [vmem:[%s3352_s1 + $0x228] sm:$0xf]  ;;  %v2195_v53 = vld [vmem:[%s3352_s1 + $0x234] sm:$0xf0]  ;;  %v1655_v57 = vor.u32 %v2167_v49, %v1654_v47  ;;  %v2153_v14 = vld [vmem:[%s3352_s1 + $0xec] sm:$0xf] }
  0x5b   :  { %999 = vmatmul.bf16.vlgmr.msrb.gmra.mxu0 %v2836_v31  ;;  %v1510_v55 = vld [vmem:[%s3352_s1 + $0x28] sm:$0xf]  ;;  %v2131_v56 = vld [vmem:[%s3352_s1 + $0x34] sm:$0xf0]  ;;  %v1767_v63 = vor.u32 %v2195_v53, %v1766_v52  ;;  %v1720_v36 = vld [vmem:[%s3352_s1 + $0x1d8] sm:$0xf0] }
  0x5c   :  { %1084 = vmatpush.bf16.msra.mxu3 %v1959_v17  ;;  %1046 = vmatpush.bf16.msra.mxu0 %v1559_v26  ;;  %v1894_v58 = vld [vmem:[%s3352_s1 + $0x328] sm:$0xf]  ;;  %v2227_v59 = vld [vmem:[%s3352_s1 + $0x334] sm:$0xf0]  ;;  %v1511_v1 = vor.u32 %v2131_v56, %v1510_v55  ;;  %v2149_v26 = vld [vmem:[%s3352_s1 + $0xcc] sm:$0xf] }
  0x5d   :  { %1038 = vmatmul.bf16.vlgmr.msrb.gmra.mxu3 %v2864_v48  ;;  %v1638_v61 = vld [vmem:[%s3352_s1 + $0x128] sm:$0xf]  ;;  %v2163_v62 = vld [vmem:[%s3352_s1 + $0x134] sm:$0xf0]  ;;  %v1895_v5 = vor.u32 %v2227_v59, %v1894_v58  ;;  %v2145_v39 = vld [vmem:[%s3352_s1 + $0xac] sm:$0xf] }
  0x5e   :  { %1072 = vmatpush.bf16.msra.mxu2 %v1815_v25  ;;  %1059 = vmatpush.bf16.msra.mxu1 %v1687_v33  ;;  %v1494_v0 = vld [vmem:[%s3352_s1 + $0x8] sm:$0xf]  ;;  %v2127_v2 = vld [vmem:[%s3352_s1 + $0x14] sm:$0xf0]  ;;  %v1639_v12 = vor.u32 %v2163_v62, %v1638_v61  ;;  %v1611_v25 = vor.u32 %v2153_v14, %v1608_v15  ;;  %v1739_v33 = vor.u32 %v2185_v21, %v1736_v22  ;;  %v2209_v42 = vld [vmem:[%s3352_s1 + $0x2ac] sm:$0xf] }
  0x5f   :  { %v1750_v3 = vld [vmem:[%s3352_s1 + $0x208] sm:$0xf]  ;;  %v2191_v4 = vld [vmem:[%s3352_s1 + $0x214] sm:$0xf0]  ;;  %v1495_v20 = vor.u32 %v2127_v2, %v1494_v0  ;;  %v1832_v43 = vld [vmem:[%s3352_s1 + $0x2b8] sm:$0xf0] }
  0x60   :  { %1085 = vmatpush.bf16.msra.mxu3 %v1943_v29  ;;  %1047 = vmatpush.bf16.msra.mxu0 %v1543_v38  ;;  %v1622_v6 = vld [vmem:[%s3352_s1 + $0x108] sm:$0xf]  ;;  %v2223_v13 = vld [vmem:[%s3352_s1 + $0x314] sm:$0xf0]  ;;  %v1751_v17 = vor.u32 %v2191_v4, %v1750_v3  ;;  %v1592_v29 = vld [vmem:[%s3352_s1 + $0xd8] sm:$0xf0]  ;;  %v1851_v38 = vor.u32 %v2213_v30, %v1848_v32 }
  0x61   :  { %1012 = vmatmul.bf16.vlgmr.msrb.gmra.mxu1 %v2883_v60  ;;  %v1878_v8 = vld [vmem:[%s3352_s1 + $0x308] sm:$0xf]  ;;  %v2159_v16 = vld [vmem:[%s3352_s1 + $0x114] sm:$0xf0]  ;;  %v2241_v45 = vld [vmem:[%s3352_s1 + $0x3ac] sm:$0xf] }
  0x62   :  { %1073 = vmatpush.bf16.msra.mxu2 %v1799_v37  ;;  %1060 = vmatpush.bf16.msra.mxu1 %v1671_v44  ;;  %v1879_v24 = vor.u32 %v2223_v13, %v1878_v8  ;;  %v1623_v27 = vor.u32 %v2159_v16, %v1622_v6  ;;  %v1595_v37 = vor.u32 %v2149_v26, %v1592_v29  ;;  %v1960_v46 = vld [vmem:[%s3352_s1 + $0x3b8] sm:$0xf0]  ;;  %v2177_v47 = vld [vmem:[%s3352_s1 + $0x1ac] sm:$0xf] }
  0x63   :  { %v1723_v44 = vor.u32 %v2181_v35, %v1720_v36  ;;  %v1704_v49 = vld [vmem:[%s3352_s1 + $0x1b8] sm:$0xf0]  ;;  %v2141_v52 = vld [vmem:[%s3352_s1 + $0x8c] sm:$0xf]  ;;  %v1963_v53 = vor.u32 %v2241_v45, %v1960_v46 }
  0x64   :  { %1086 = vmatpush.bf16.msra.mxu3 %v1927_v41  ;;  %1048 = vmatpush.bf16.msra.mxu0 %v1527_v51  ;;  %v1576_v41 = vld [vmem:[%s3352_s1 + $0xb8] sm:$0xf0]  ;;  %v1835_v51 = vor.u32 %v2209_v42, %v1832_v43  ;;  %v2205_v55 = vld [vmem:[%s3352_s1 + $0x28c] sm:$0xf] }
  0x65   :  { %v1816_v56 = vld [vmem:[%s3352_s1 + $0x298] sm:$0xf0]  ;;  %v2237_v58 = vld [vmem:[%s3352_s1 + $0x38c] sm:$0xf] }
  0x66   :  { %1074 = vmatpush.bf16.msra.mxu2 %v1783_v50  ;;  %1061 = vmatpush.bf16.msra.mxu1 %v1655_v57  ;;  %v1579_v50 = vor.u32 %v2145_v39, %v1576_v41  ;;  %v1707_v57 = vor.u32 %v2177_v47, %v1704_v49  ;;  %v1944_v59 = vld [vmem:[%s3352_s1 + $0x398] sm:$0xf0]  ;;  %v2173_v61 = vld [vmem:[%s3352_s1 + $0x18c] sm:$0xf]  ;;  %v1819_v0 = vor.u32 %v2205_v55, %v1816_v56  ;;  %v2258_v56 = vld [vmem:[%s3354_s3 + $0x30] sm:$0xff] }
  0x67   :  { %v1688_v62 = vld [vmem:[%s3352_s1 + $0x198] sm:$0xf0]  ;;  %v1947_v2 = vor.u32 %v2237_v58, %v1944_v59  ;;  %v2201_v4 = vld [vmem:[%s3352_s1 + $0x26c] sm:$0xf]  ;;  %v2256_v58 = vld [vmem:[%s3354_s3 + $0x20] sm:$0xff] }
  0x68   :  { %1087 = vmatpush.bf16.msra.mxu3 %v1911_v54  ;;  %1049 = vmatpush.bf16.msra.mxu0 %v1511_v1  ;;  %v1560_v54 = vld [vmem:[%s3352_s1 + $0x98] sm:$0xf0]  ;;  %v2137_v1 = vld [vmem:[%s3352_s1 + $0x6c] sm:$0xf]  ;;  %v1691_v6 = vor.u32 %v2173_v61, %v1688_v62  ;;  %v2264_v59 = vld [vmem:[%s3354_s3 + $0x60] sm:$0xff] }
  0x69   :  { %v1544_v3 = vld [vmem:[%s3352_s1 + $0x78] sm:$0xf0]  ;;  %v2233_v8 = vld [vmem:[%s3352_s1 + $0x36c] sm:$0xf] }
  0x6a   :  { %1075 = vmatpush.bf16.msra.mxu2 %v1767_v63  ;;  %1062 = vmatpush.bf16.msra.mxu1 %v1639_v12  ;;  %v1563_v63 = vor.u32 %v2141_v52, %v1560_v54  ;;  %v1928_v9 = vld [vmem:[%s3352_s1 + $0x378] sm:$0xf0]  ;;  %v2169_v10 = vld [vmem:[%s3352_s1 + $0x16c] sm:$0xf]  ;;  %v1547_v13 = vor.u32 %v2137_v1, %v1544_v3  ;;  %v2260_v3 = vld [vmem:[%s3354_s3 + $0x40] sm:$0xff] }
  0x6b   :  { %v1672_v12 = vld [vmem:[%s3352_s1 + $0x178] sm:$0xf0]  ;;  %v2133_v15 = vld [vmem:[%s3352_s1 + $0x4c] sm:$0xf]  ;;  %v1931_v16 = vor.u32 %v2233_v8, %v1928_v9  ;;  %v2274_v8 = vld [vmem:[%s3354_s3 + $0xb0] sm:$0xff] }
  0x6c   :  { %1088 = vmatpush.bf16.msra.mxu3 %v1895_v5  ;;  %1050 = vmatpush.bf16.msra.mxu0 %v1495_v20  ;;  %v1800_v5 = vld [vmem:[%s3352_s1 + $0x278] sm:$0xf0]  ;;  %v2197_v18 = vld [vmem:[%s3352_s1 + $0x24c] sm:$0xf]  ;;  %v1675_v20 = vor.u32 %v2169_v10, %v1672_v12 }
  0x6d   :  { %v1803_v14 = vor.u32 %v2201_v4, %v1800_v5  ;;  %v1784_v19 = vld [vmem:[%s3352_s1 + $0x258] sm:$0xf0]  ;;  %v2229_v21 = vld [vmem:[%s3352_s1 + $0x34c] sm:$0xf] }
  0x6e   :  { %1076 = vmatpush.bf16.msra.mxu2 %v1751_v17  ;;  %1063 = vmatpush.bf16.msra.mxu1 %v1623_v27  ;;  %v1528_v17 = vld [vmem:[%s3352_s1 + $0x58] sm:$0xf0]  ;;  %v1787_v26 = vor.u32 %v2197_v18, %v1784_v19  ;;  %v2129_v27 = vld [vmem:[%s3352_s1 + $0x2c] sm:$0xf] }
  0x6f   :  { %1051 = vmatmul.bf16.vlgmr.msra.gmra.mxu0 %v2836_v31  ;;  %v1912_v22 = vld [vmem:[%s3352_s1 + $0x358] sm:$0xf0]  ;;  %v2193_v30 = vld [vmem:[%s3352_s1 + $0x22c] sm:$0xf] }
  0x70   :  { %1089 = vmatpush.bf16.msra.mxu3 %v1879_v24  ;;  %1095 = vmatpush.bf16.msrb.mxu0 %v1611_v25  ;;  %v1656_v24 = vld [vmem:[%s3352_s1 + $0x158] sm:$0xf0]  ;;  %v1531_v25 = vor.u32 %v2133_v15, %v1528_v17  ;;  %v2225_v7 = vld [vmem:[%s3352_s1 + $0x32c] sm:$0xf]  ;;  %v2272_v15 = vld [vmem:[%s3354_s3 + $0xa0] sm:$0xff] }
  0x71   :  { %1077 = vmatmul.bf16.vlgmr.msra.gmra.mxu2 %v2804_v11  ;;  %1064 = vmatmul.bf16.vlgmr.msra.gmra.mxu1 %v2883_v60  ;;  %v1512_v29 = vld [vmem:[%s3352_s1 + $0x38] sm:$0xf0]  ;;  %v2161_v35 = vld [vmem:[%s3352_s1 + $0x12c] sm:$0xf] }
  0x72   :  { %1121 = vmatpush.bf16.msrb.mxu2 %v1867_v23  ;;  %1108 = vmatpush.bf16.msrb.mxu1 %v1739_v33  ;;  %v2165_v23 = vld [vmem:[%s3352_s1 + $0x14c] sm:$0xf]  ;;  %v1768_v32 = vld [vmem:[%s3352_s1 + $0x238] sm:$0xf0] }
  0x73   :  { %1090 = vmatmul.bf16.vlgmr.msra.gmra.mxu3 %v2864_v48  ;;  %v1659_v33 = vor.u32 %v2165_v23, %v1656_v24  ;;  %v1896_v34 = vld [vmem:[%s3352_s1 + $0x338] sm:$0xf0]  ;;  %v2125_v39 = vld [vmem:[%s3352_s1 + $0xc] sm:$0xf] }
  0x74   :  { %1134 = vmatpush.bf16.msrb.mxu3 %v1995_v28  ;;  %1096 = vmatpush.bf16.msrb.mxu0 %v1595_v37  ;;  %v1915_v28 = vor.u32 %v2229_v21, %v1912_v22  ;;  %v1640_v36 = vld [vmem:[%s3352_s1 + $0x138] sm:$0xf0]  ;;  %v1515_v37 = vor.u32 %v2129_v27, %v1512_v29  ;;  %v2189_v42 = vld [vmem:[%s3352_s1 + $0x20c] sm:$0xf] }
  0x75   :  { %v1496_v41 = vld [vmem:[%s3352_s1 + $0x18] sm:$0xf0]  ;;  %v2221_v45 = vld [vmem:[%s3352_s1 + $0x30c] sm:$0xf] }
  0x76   :  { %1122 = vmatpush.bf16.msrb.mxu2 %v1851_v38  ;;  %1109 = vmatpush.bf16.msrb.mxu1 %v1723_v44  ;;  %v1771_v38 = vor.u32 %v2193_v30, %v1768_v32  ;;  %v1752_v43 = vld [vmem:[%s3352_s1 + $0x218] sm:$0xf0]  ;;  %v1643_v44 = vor.u32 %v2161_v35, %v1640_v36  ;;  %v2157_v47 = vld [vmem:[%s3352_s1 + $0x10c] sm:$0xf]  ;;  %v2268_v36 = vld [vmem:[%s3354_s3 + $0x80] sm:$0xff] }
  0x77   :  { %v1880_v46 = vld [vmem:[%s3352_s1 + $0x318] sm:$0xf0]  ;;  %v2253_v61 = vld [vmem:[%s3354_s3 + $0x8] sm:$0xff] }
  0x78   :  { %1135 = vmatpush.bf16.msrb.mxu3 %v1979_v40  ;;  %1097 = vmatpush.bf16.msrb.mxu0 %v1579_v50  ;;  %v1899_v40 = vor.u32 %v2225_v7, %v1896_v34  ;;  %v1624_v49 = vld [vmem:[%s3352_s1 + $0x118] sm:$0xf0]  ;;  %v1499_v50 = vor.u32 %v2125_v39, %v1496_v41  ;;  %v1883_v52 = vor.u32 %v2221_v45, %v1880_v46  ;;  %v2261_v1 = vld [vmem:[%s3354_s3 + $0x48] sm:$0xff]  ;;  %v2282_v7 = vld [vmem:[%s3354_s3 + $0xf0] sm:$0xff] }
  0x79   :  { %v1627_v54 = vor.u32 %v2157_v47, %v1624_v49  ;;  %v2267_v55 = vld [vmem:[%s3354_s3 + $0x78] sm:$0xff]  ;;  %v2273_v12 = vld [vmem:[%s3354_s3 + $0xa8] sm:$0xff] }
  0x7a   :  { %1123 = vmatpush.bf16.msrb.mxu2 %v1835_v51  ;;  %1110 = vmatpush.bf16.msrb.mxu1 %v1707_v57  ;;  %v1755_v51 = vor.u32 %v2189_v42, %v1752_v43  ;;  %v2257_v57 = vld [vmem:[%s3354_s3 + $0x28] sm:$0xff]  ;;  %v2263_v62 = vld [vmem:[%s3354_s3 + $0x58] sm:$0xff]  ;;  %v2280_v43 = vld [vmem:[%s3354_s3 + $0xe0] sm:$0xff] }
  0x7b   :  { %v2275_v4 = vld [vmem:[%s3354_s3 + $0xb8] sm:$0xff] }
  0x7c   :  { %1136 = vmatpush.bf16.msrb.mxu3 %v1963_v53  ;;  %1098 = vmatpush.bf16.msrb.mxu0 %v1563_v63  ;;  %v2259_v53 = vld [vmem:[%s3354_s3 + $0x38] sm:$0xff]  ;;  %v2252_v63 = vld [vmem:[%s3354_s3] sm:$0xff] }
  0x7d   :  { %v2271_v21 = vld [vmem:[%s3354_s3 + $0x98] sm:$0xff] }
  0x7e   :  { %1124 = vmatpush.bf16.msrb.mxu2 %v1819_v0  ;;  %1111 = vmatpush.bf16.msrb.mxu1 %v1691_v6  ;;  %v2262_v0 = vld [vmem:[%s3354_s3 + $0x50] sm:$0xff]  ;;  %v2283_v29 = vld [vmem:[%s3354_s3 + $0xf8] sm:$0xff] }
  0x80   :  { %1137 = vmatpush.bf16.msrb.mxu3 %v1947_v2  ;;  %1099 = vmatpush.bf16.msrb.mxu0 %v1547_v13  ;;  %v3288_v2 = vld [vmem:[%s3353_s2] sm:$0xf] }
  0x81   :  { %v262_v5 = vperm.slane %v3288_v2, 0  ;;  %v264_v49 = vperm.slane %v3288_v2, 2 }
  0x82   :  { %1125 = vmatpush.bf16.msrb.mxu2 %v1803_v14  ;;  %1112 = vmatpush.bf16.msrb.mxu1 %v1675_v20 }
  0x84   :  { %1138 = vmatpush.bf16.msrb.mxu3 %v1931_v16  ;;  %1100 = vmatpush.bf16.msrb.mxu0 %v1531_v25  ;;  %v263_v25 = vperm.slane %v3288_v2, 1 }
  0x86   :  { %1126 = vmatpush.bf16.msrb.mxu2 %v1787_v26  ;;  %1113 = vmatpush.bf16.msrb.mxu1 %v1659_v33  ;;  %v2270_v26 = vld [vmem:[%s3354_s3 + $0x90] sm:$0xff]  ;;  %v2269_v33 = vld [vmem:[%s3354_s3 + $0x88] sm:$0xff] }
  0x88   :  { %1139 = vmatpush.bf16.msrb.mxu3 %v1915_v28  ;;  %1101 = vmatpush.bf16.msrb.mxu0 %v1515_v37  ;;  %v2281_v37 = vld [vmem:[%s3354_s3 + $0xe8] sm:$0xff] }
  0x8a   :  { %1127 = vmatpush.bf16.msrb.mxu2 %v1771_v38  ;;  %1114 = vmatpush.bf16.msrb.mxu1 %v1643_v44 }
  0x8c   :  { %1140 = vmatpush.bf16.msrb.mxu3 %v1899_v40  ;;  %1102 = vmatpush.bf16.msrb.mxu0 %v1499_v50  ;;  %v2279_v50 = vld [vmem:[%s3354_s3 + $0xd8] sm:$0xff] }
  0x8e   :  { %1128 = vmatpush.bf16.msrb.mxu2 %v1755_v51  ;;  %1115 = vmatpush.bf16.msrb.mxu1 %v1627_v54 }
  0x8f   :  { %1103 = vmatmul.bf16.vlgmr.msrb.gmra.mxu0 %v2836_v31  ;;  %v2255_v31 = vld [vmem:[%s3354_s3 + $0x18] sm:$0xff] }
  0x90   :  { %1141 = vmatpush.bf16.msrb.mxu3 %v1883_v52  ;;  %1415 = vmatpush.bf16.msra.mxu0 %v2259_v53  ;;  %v2278_v53 = vld [vmem:[%s3354_s3 + $0xd0] sm:$0xff] }
  0x91   :  { %1129 = vmatmul.bf16.vlgmr.msrb.gmra.mxu2 %v2804_v11  ;;  %1116 = vmatmul.bf16.vlgmr.msrb.gmra.mxu1 %v2883_v60  ;;  %v2266_v11 = vld [vmem:[%s3354_s3 + $0x70] sm:$0xff] }
  0x92   :  { %1428 = vmatpush.bf16.msra.mxu1 %v2267_v55  ;;  %v2254_v60 = vld [vmem:[%s3354_s3 + $0x10] sm:$0xff]  ;;  %1441 = vmatpush.bf16.msra.mxu2 %v2275_v4 }
  0x93   :  { %1142 = vmatmul.bf16.vlgmr.msrb.gmra.mxu3 %v2864_v48  ;;  %v2265_v48 = vld [vmem:[%s3354_s3 + $0x68] sm:$0xff] }
  0x94   :  { %1416 = vmatpush.bf16.msra.mxu0 %v2258_v56  ;;  %1454 = vmatpush.bf16.msra.mxu3 %v2283_v29 }
  0x96   :  { %1429 = vmatpush.bf16.msra.mxu1 %v2266_v11  ;;  %1442 = vmatpush.bf16.msra.mxu2 %v2274_v8 }
  0x98   :  { %1417 = vmatpush.bf16.msra.mxu0 %v2257_v57  ;;  %1455 = vmatpush.bf16.msra.mxu3 %v2282_v7 }
  0x9a   :  { %1430 = vmatpush.bf16.msra.mxu1 %v2265_v48  ;;  %1443 = vmatpush.bf16.msra.mxu2 %v2273_v12  ;;  %v2277_v48 = vld [vmem:[%s3354_s3 + $0xc8] sm:$0xff] }
  0x9c   :  { %1418 = vmatpush.bf16.msra.mxu0 %v2256_v58  ;;  %1456 = vmatpush.bf16.msra.mxu3 %v2281_v37 }
  0x9e   :  { %1431 = vmatpush.bf16.msra.mxu1 %v2264_v59  ;;  %1444 = vmatpush.bf16.msra.mxu2 %v2272_v15 }
  0xa0   :  { %1419 = vmatpush.bf16.msra.mxu0 %v2255_v31  ;;  %1457 = vmatpush.bf16.msra.mxu3 %v2280_v43 }
  0xa2   :  { %1432 = vmatpush.bf16.msra.mxu1 %v2263_v62  ;;  %1445 = vmatpush.bf16.msra.mxu2 %v2271_v21 }
  0xa4   :  { %1420 = vmatpush.bf16.msra.mxu0 %v2254_v60  ;;  %1458 = vmatpush.bf16.msra.mxu3 %v2279_v50 }
  0xa6   :  { %1433 = vmatpush.bf16.msra.mxu1 %v2262_v0  ;;  %1446 = vmatpush.bf16.msra.mxu2 %v2270_v26 }
  0xa8   :  { %1421 = vmatpush.bf16.msra.mxu0 %v2253_v61  ;;  %1459 = vmatpush.bf16.msra.mxu3 %v2278_v53  ;;  %v2276_v61 = vld [vmem:[%s3354_s3 + $0xc0] sm:$0xff] }
  0xaa   :  { %1434 = vmatpush.bf16.msra.mxu1 %v2261_v1  ;;  %1447 = vmatpush.bf16.msra.mxu2 %v2269_v33  ;;  %v265_v1 = vperm.slane %v3288_v2, 3 }
  0xac   :  { %1422 = vmatpush.bf16.msra.mxu0 %v2252_v63  ;;  %1460 = vmatpush.bf16.msra.mxu3 %v2277_v48 }
  0xae   :  { %1435 = vmatpush.bf16.msra.mxu1 %v2260_v3  ;;  %1448 = vmatpush.bf16.msra.mxu2 %v2268_v36 }
  0xb0   :  { %1461 = vmatpush.bf16.msra.mxu3 %v2276_v61 }
  0xc8   :  { %v948_v6 = vpop.f32.mrf.mxu0 }
  0xc9   :  { %v949_v9 = vadd.f32 %v948_v6, %v262_v5 }
  0xca   :  { %v974_v10 = vpop.f32.mrf.mxu2 }
  0xce   :  { %v961_v13 = vpop.f32.mrf.mxu1 }
  0xcf   :  { %v962_v14 = vadd.f32 %v961_v13, %v949_v9 }
  0xd0   :  { %v950_v16 = vpop.f32.mrf.mxu0  ;;  %v987_v18 = vpop.f32.mrf.mxu3 }
  0xd1   :  { %v975_v17 = vadd.f32 %v974_v10, %v962_v14 }
  0xd2   :  { %v976_v20 = vpop.f32.mrf.mxu2 }
  0xd3   :  { %v988_v19 = vadd.f32 %v987_v18, %v975_v17 }
  0xd5   :  { %v1147_v22 = vmax.f32 %v988_v19, 0.0 }
  0xd6   :  { %v963_v23 = vpop.f32.mrf.mxu1 }
  0xd7   :  { %v1151_v24 = vpack.c.bf16 %v1147_v22, %v1147_v22 }
  0xd8   :  { %v1000_v27 = vpop.f32.mrf.mxu0  ;;  %v989_v28 = vpop.f32.mrf.mxu3 }
  0xd9   :  { %1423 = vmatmul.bf16.vlgmr.msra.gmra.mxu0 %v1151_v24  ;;  %v1001_v30 = vadd.f32 %v1000_v27, %v263_v25  ;;  %v2286_v24 = vld [vmem:[%s3355_s4] ss:$0 sm:$0xff] }
  0xda   :  { %v1026_v32 = vpop.f32.mrf.mxu2 }
  0xde   :  { %v1013_v34 = vpop.f32.mrf.mxu1 }
  0xdf   :  { %v1014_v35 = vadd.f32 %v1013_v34, %v1001_v30 }
  0xe0   :  { %v1002_v38 = vpop.f32.mrf.mxu0  ;;  %v1039_v40 = vpop.f32.mrf.mxu3 }
  0xe1   :  { %v1027_v39 = vadd.f32 %v1026_v32, %v1014_v35 }
  0xe2   :  { %v1028_v42 = vpop.f32.mrf.mxu2 }
  0xe3   :  { %v1040_v41 = vadd.f32 %v1039_v40, %v1027_v39 }
  0xe5   :  { %v1148_v44 = vmax.f32 %v1040_v41, 0.0 }
  0xe6   :  { %v1015_v45 = vpop.f32.mrf.mxu1 }
  0xe7   :  { %v1152_v46 = vpack.c.bf16 %v1148_v44, %v1148_v44 }
  0xe8   :  { %v1041_v47 = vpop.f32.mrf.mxu3 }
  0xe9   :  { %1436 = vmatmul.bf16.vlgmr.msra.gmra.mxu1 %v1152_v46 }
  0xec   :  { %v1052_v51 = vpop.f32.mrf.mxu0 }
  0xed   :  { %v1053_v52 = vadd.f32 %v1052_v51, %v264_v49 }
  0xee   :  { %v1065_v54 = vpop.f32.mrf.mxu1 }
  0xef   :  { %v1066_v55 = vadd.f32 %v1065_v54, %v1053_v52 }
  0xf4   :  { %v1078_v56 = vpop.f32.mrf.mxu2  ;;  %v1054_v31 = vpop.f32.mrf.mxu0 }
  0xf5   :  { %v1079_v57 = vadd.f32 %v1078_v56, %v1066_v55 }
  0xf6   :  { %v1091_v58 = vpop.f32.mrf.mxu3  ;;  %v1067_v59 = vpop.f32.mrf.mxu1 }
  0xf7   :  { %v1092_v11 = vadd.f32 %v1091_v58, %v1079_v57 }
  0xf9   :  { %v1149_v60 = vmax.f32 %v1092_v11, 0.0 }
  0xfb   :  { %v1153_v62 = vpack.c.bf16 %v1149_v60, %v1149_v60 }
  0xfc   :  { %v1080_v63 = vpop.f32.mrf.mxu2 }
  0xfd   :  { %1449 = vmatmul.bf16.vlgmr.msra.gmra.mxu2 %v1153_v62 }
  0xfe   :  { %v1093_v0 = vpop.f32.mrf.mxu3 }
 0x10c   :  { %v1104_v3 = vpop.f32.mrf.mxu0 }
 0x10d   :  { %v1105_v4 = vadd.f32 %v1104_v3, %v265_v1 }
 0x10e   :  { %v1117_v5 = vpop.f32.mrf.mxu1 }
 0x10f   :  { %v1118_v6 = vadd.f32 %v1117_v5, %v1105_v4 }
 0x114   :  { %v1130_v8 = vpop.f32.mrf.mxu2  ;;  %v1106_v12 = vpop.f32.mrf.mxu0 }
 0x115   :  { %v1131_v9 = vadd.f32 %v1130_v8, %v1118_v6 }
 0x116   :  { %v1143_v10 = vpop.f32.mrf.mxu3  ;;  %v1119_v14 = vpop.f32.mrf.mxu1 }
 0x117   :  { %v1144_v13 = vadd.f32 %v1143_v10, %v1131_v9 }
 0x119   :  { %v1150_v15 = vmax.f32 %v1144_v13, 0.0 }
 0x11b   :  { %v1154_v16 = vpack.c.bf16 %v1150_v15, %v1150_v15 }
 0x11c   :  { %v1132_v17 = vpop.f32.mrf.mxu2 }
 0x11d   :  { %1462 = vmatmul.bf16.vlgmr.msra.gmra.mxu3 %v1154_v16 }
 0x11e   :  { %v1145_v18 = vpop.f32.mrf.mxu3 }
 0x156   :  { %v1424_v19 = vpop.f32.mrf.mxu0 }
 0x157   :  { %v1425_v25 = vadd.f32 %v2286_v24, %v1424_v19 }
 0x15e   :  { %v1426_v20 = vpop.f32.mrf.mxu0 }
 0x166   :  { %v1437_v21 = vpop.f32.mrf.mxu1 }
 0x167   :  { %v1438_v26 = vadd.f32 %v1437_v21, %v1425_v25 }
 0x16e   :  { %v1439_v22 = vpop.f32.mrf.mxu1 }
 0x180   :  { %v1450_v2 = vpop.f32.mrf.mxu2 }
 0x181   :  { %v1451_v27 = vadd.f32 %v1450_v2, %v1438_v26 }
 0x188   :  { %v1452_v23 = vpop.f32.mrf.mxu2 }
 0x1a0   :  { %v1463_v28 = vpop.f32.mrf.mxu3 }
 0x1a1   :  { %v1464_v29 = vadd.f32 %v1463_v28, %v1451_v27 }
 0x1a3   :  { %1467 = vst [vmem:[#allocation2] sm:$0x3] %v1464_v29 }
 0x1a4   :  { %1478 = dma.vmem_to_hbm [thread:$0]  %s1474_s11, 32, %s1476_s14, [#allocation3]  }
 0x1a8   :  { %v1465_v30 = vpop.f32.mrf.mxu3 }
 0x1a9   :  { %2313 = dma.done.wait [#allocation3], 32  }
 0x1aa   :  { %2314 = vsyncadd [#allocation3], 4294967264 }
 0x1ab   :  { %1483 = vsyncpa [#allocation3], 1 }

// kernel: encoder_forward.12
= control target key start
LH: loop header
LB: loop body
LE: loop exit
PB: predicated region body
PF: predicated region fallthrough
CT: control target
= control target key end

     0   :  { %s1101_s12 = smov 0   ;;  %s1103_s13 = smov 0   ;;  %s1306_s0 = inlined_call_operand.vmem [shape: bf16[8,256], index: 0, kind: input, shape index: {}]   ;;  %s1307_s1 = inlined_call_operand.vmem [shape: bf16[256,512], index: 1, kind: input, shape index: {}]   ;;  %s1308_s2 = inlined_call_operand.vmem [shape: f32[1,512], index: 2, kind: input, shape index: {}]   ;;  %s1309_s3 = inlined_call_operand.vmem [shape: f32[8,512], index: 3, kind: output, shape index: {}]  }
   0x1   :  { %s1105_s14 = smov 0   ;;  %s1107_s15 = smov 0  }
   0x2   :  { %s1109_s16 = smov 0  }
   0x3 LB: > { %s28_s17 = sadd.s32 1, %s1075_s15  ;;  %p76_p1 = scmp.ne.s32.totalorder %s1067_s13, %s1063_s12  ;;  %s1079_s16 = sphi %s1109_s16, %s13_s16   ;;  %s1075_s15 = sphi %s1107_s15, %s1313_s15   ;;  %s1071_s14 = sphi %s1105_s14, %s1312_s14   ;;  %s1067_s13 = sphi %s1103_s13, %s1311_s13   ;;  %s1063_s12 = sphi %s1101_s12, %s1310_s12  }
   0x4   : > { %p30_p0 = scmp.ge.s32.totalorder %s28_s17, 2  ;;  %p77_p2 = scmp.eq.s32.totalorder %s1079_s16, 0 }
   0x5   : > { %s69_s19 = sadd.s32 1, %s1067_s13  ;;  %p829_p5 = scmp.ge.s32.totalorder %s1079_s16, 2 }
   0x6   : > { %s1315_s17 = smov (%p30_p0, %s28_s17), 0  ;;  %p78_p3 = por %p77_p2, %p76_p1 }
   0x7   : > { %s65_s18 = ssub.s32 %s1075_s15, %s1315_s17  ;;  %169 = sbr.rel (%p829_p5) target bundleno = 48 (0x30), region = 20 }
   0x8   : > { %p67_p4 = scmp.eq.s32.totalorder %s65_s18, 0 }
   0xa   : > { %s1136_s20 = scalar_select %p67_p4, %s1067_s13, %s69_s19  }
   0xc   : > { %172 = sbr.rel (!%p78_p3) target bundleno = 48 (0x30), region = 24  ;;  %s174_s21 = sand.u32 (%p78_p3), 1, %s1067_s13  }
   0xd   : > { %s968_s22 = sshll.u32 (%p78_p3), %s1075_s15, 3  ;;  %s830_s23 = sshll.u32 (%p78_p3), %s174_s21, 8 }
   0xe   : > { %s1144_s26 = scalar_lea.vmem (%p78_p3), %s1307_s1, %s968_s22  ;;  %s1149_s27 = scalar_lea.vmem (%p78_p3), [#allocation3], %s830_s23 }
   0xf   : > { %v273_v0 = vld [vmem:[%s1144_s26] sm:$0xff] (%p78_p3)  ;;  %v275_v1 = vld [vmem:[%s1144_s26 + $0x10] sm:$0xff] (%p78_p3) }
  0x10   : > { %v277_v2 = vld [vmem:[%s1144_s26 + $0x20] sm:$0xff] (%p78_p3)  ;;  %274 = vst [vmem:[%s1149_s27] sm:$0xff] (%p78_p3), %v273_v0  ;;  %v279_v3 = vld [vmem:[%s1144_s26 + $0x30] sm:$0xff] (%p78_p3) }
  0x11   : > { %276 = vst [vmem:[%s1149_s27 + $0x8] sm:$0xff] %v275_v1  ;;  %v281_v4 = vld [vmem:[%s1144_s26 + $0x40] sm:$0xff]  ;;  %v283_v5 = vld [vmem:[%s1144_s26 + $0x50] sm:$0xff] }
  0x12   : > { %278 = vst [vmem:[%s1149_s27 + $0x10] sm:$0xff] %v277_v2  ;;  %v285_v6 = vld [vmem:[%s1144_s26 + $0x60] sm:$0xff]  ;;  %v287_v7 = vld [vmem:[%s1144_s26 + $0x70] sm:$0xff] }
  0x13   : > { %280 = vst [vmem:[%s1149_s27 + $0x18] sm:$0xff] %v279_v3  ;;  %v289_v8 = vld [vmem:[%s1144_s26 + $0x80] sm:$0xff]  ;;  %v291_v9 = vld [vmem:[%s1144_s26 + $0x90] sm:$0xff] }
  0x14   : > { %282 = vst [vmem:[%s1149_s27 + $0x20] sm:$0xff] %v281_v4  ;;  %v293_v10 = vld [vmem:[%s1144_s26 + $0xa0] sm:$0xff]  ;;  %v295_v11 = vld [vmem:[%s1144_s26 + $0xb0] sm:$0xff] }
  0x15   : > { %284 = vst [vmem:[%s1149_s27 + $0x28] sm:$0xff] %v283_v5  ;;  %v297_v12 = vld [vmem:[%s1144_s26 + $0xc0] sm:$0xff]  ;;  %v299_v13 = vld [vmem:[%s1144_s26 + $0xd0] sm:$0xff] }
  0x16   : > { %286 = vst [vmem:[%s1149_s27 + $0x30] sm:$0xff] %v285_v6  ;;  %v301_v14 = vld [vmem:[%s1144_s26 + $0xe0] sm:$0xff]  ;;  %v303_v15 = vld [vmem:[%s1144_s26 + $0xf0] sm:$0xff] }
  0x17   : > { %288 = vst [vmem:[%s1149_s27 + $0x38] sm:$0xff] %v287_v7  ;;  %v305_v16 = vld [vmem:[%s1144_s26 + $0x100] sm:$0xff]  ;;  %v307_v17 = vld [vmem:[%s1144_s26 + $0x110] sm:$0xff] }
  0x18   : > { %290 = vst [vmem:[%s1149_s27 + $0x40] sm:$0xff] %v289_v8  ;;  %v309_v18 = vld [vmem:[%s1144_s26 + $0x120] sm:$0xff]  ;;  %v311_v19 = vld [vmem:[%s1144_s26 + $0x130] sm:$0xff] }
  0x19   : > { %292 = vst [vmem:[%s1149_s27 + $0x48] sm:$0xff] %v291_v9  ;;  %v313_v20 = vld [vmem:[%s1144_s26 + $0x140] sm:$0xff]  ;;  %v315_v21 = vld [vmem:[%s1144_s26 + $0x150] sm:$0xff] }
  0x1a   : > { %294 = vst [vmem:[%s1149_s27 + $0x50] sm:$0xff] %v293_v10  ;;  %v317_v22 = vld [vmem:[%s1144_s26 + $0x160] sm:$0xff]  ;;  %v319_v23 = vld [vmem:[%s1144_s26 + $0x170] sm:$0xff] }
  0x1b   : > { %296 = vst [vmem:[%s1149_s27 + $0x58] sm:$0xff] %v295_v11  ;;  %v321_v24 = vld [vmem:[%s1144_s26 + $0x180] sm:$0xff]  ;;  %v323_v25 = vld [vmem:[%s1144_s26 + $0x190] sm:$0xff] }
  0x1c   : > { %298 = vst [vmem:[%s1149_s27 + $0x60] sm:$0xff] %v297_v12  ;;  %v325_v26 = vld [vmem:[%s1144_s26 + $0x1a0] sm:$0xff]  ;;  %v327_v27 = vld [vmem:[%s1144_s26 + $0x1b0] sm:$0xff] }
  0x1d   : > { %300 = vst [vmem:[%s1149_s27 + $0x68] sm:$0xff] %v299_v13  ;;  %v329_v28 = vld [vmem:[%s1144_s26 + $0x1c0] sm:$0xff]  ;;  %v331_v29 = vld [vmem:[%s1144_s26 + $0x1d0] sm:$0xff] }
  0x1e   : > { %302 = vst [vmem:[%s1149_s27 + $0x70] sm:$0xff] %v301_v14  ;;  %v333_v30 = vld [vmem:[%s1144_s26 + $0x1e0] sm:$0xff]  ;;  %v335_v31 = vld [vmem:[%s1144_s26 + $0x1f0] sm:$0xff] }
  0x1f   : > { %304 = vst [vmem:[%s1149_s27 + $0x78] sm:$0xff] %v303_v15 }
  0x20   : > { %306 = vst [vmem:[%s1149_s27 + $0x80] sm:$0xff] %v305_v16 }
  0x21   : > { %308 = vst [vmem:[%s1149_s27 + $0x88] sm:$0xff] %v307_v17 }
  0x22   : > { %310 = vst [vmem:[%s1149_s27 + $0x90] sm:$0xff] %v309_v18 }
  0x23   : > { %312 = vst [vmem:[%s1149_s27 + $0x98] sm:$0xff] %v311_v19 }
  0x24   : > { %314 = vst [vmem:[%s1149_s27 + $0xa0] sm:$0xff] %v313_v20 }
  0x25   : > { %316 = vst [vmem:[%s1149_s27 + $0xa8] sm:$0xff] %v315_v21 }
  0x26   : > { %318 = vst [vmem:[%s1149_s27 + $0xb0] sm:$0xff] %v317_v22 }
  0x27   : > { %320 = vst [vmem:[%s1149_s27 + $0xb8] sm:$0xff] %v319_v23 }
  0x28   : > { %322 = vst [vmem:[%s1149_s27 + $0xc0] sm:$0xff] %v321_v24 }
  0x29   : > { %324 = vst [vmem:[%s1149_s27 + $0xc8] sm:$0xff] %v323_v25 }
  0x2a   : > { %326 = vst [vmem:[%s1149_s27 + $0xd0] sm:$0xff] %v325_v26 }
  0x2b   : > { %328 = vst [vmem:[%s1149_s27 + $0xd8] sm:$0xff] %v327_v27 }
  0x2c   : > { %330 = vst [vmem:[%s1149_s27 + $0xe0] sm:$0xff] %v329_v28 }
  0x2d   : > { %332 = vst [vmem:[%s1149_s27 + $0xe8] sm:$0xff] %v331_v29 }
  0x2e   : > { %334 = vst [vmem:[%s1149_s27 + $0xf0] sm:$0xff] %v333_v30 }
  0x2f   : > { %336 = vst [vmem:[%s1149_s27 + $0xf8] sm:$0xff] %v335_v31 }
  0x30 PF: > { %p833_p6 = scmp.ge.s32.totalorder %s1079_s16, 1  ;;  %p349_p7 = scmp.lt.s32.totalorder %s1079_s16, 3 }
  0x32   : > { %p350_p8 = pnand %p833_p6, %p349_p7 }
  0x33   : > { %s356_s28 = sand.u32 (!%p350_p8), 1, %s1063_s12   ;;  %s835_s6 = sshll.u32 (!%p350_p8), %s1071_s14, 1 }
  0x34   : > { %353 = sbr.rel (%p350_p8) target bundleno = 233 (0xe9), region = 66  ;;  %s834_s29 = sshll.u32 (!%p350_p8), %s356_s28, 8 }
  0x35   : > { %s1215_s30 = scalar_lea.vmem (!%p350_p8), [#allocation3], %s834_s29  ;;  %p409_p9 = scmp.lt.s32.totalorder (!%p350_p8), %s835_s6, 3 }
  0x39   : > { %v896_v32 = vld [vmem:[%s1215_s30 + $0x70] sm:$0xf]  ;;  %v984_v33 = vld [vmem:[%s1215_s30 + $0x74] sm:$0xf0]  ;;  %v983_v37 = vld [vmem:[%s1215_s30 + $0x74] sm:$0xf] }
  0x3a   : > { %v960_v34 = vld [vmem:[%s1215_s30 + $0xf0] sm:$0xf]  ;;  %v897_v35 = vor.u32 %v984_v33, %v896_v32  ;;  %v1000_v36 = vld [vmem:[%s1215_s30 + $0xf4] sm:$0xf0]  ;;  %v898_v38 = vld [vmem:[%s1215_s30 + $0x78] sm:$0xf0] }
  0x3b   : > { %v961_v39 = vor.u32 %v1000_v36, %v960_v34  ;;  %v901_v40 = vor.u32 %v983_v37, %v898_v38  ;;  %v999_v41 = vld [vmem:[%s1215_s30 + $0xf4] sm:$0xf]  ;;  %v962_v42 = vld [vmem:[%s1215_s30 + $0xf8] sm:$0xf0]  ;;  %v888_v43 = vld [vmem:[%s1215_s30 + $0x60] sm:$0xf] }
  0x3c   : > { %631 = vmatpush.bf16.msra.mxu0 %v897_v35  ;;  %v965_v44 = vor.u32 %v999_v41, %v962_v42  ;;  %v982_v45 = vld [vmem:[%s1215_s30 + $0x64] sm:$0xf0]  ;;  %v952_v46 = vld [vmem:[%s1215_s30 + $0xe0] sm:$0xf]  ;;  %v981_v50 = vld [vmem:[%s1215_s30 + $0x64] sm:$0xf] }
  0x3d   : > { %v998_v47 = vld [vmem:[%s1215_s30 + $0xe4] sm:$0xf0]  ;;  %644 = vmatpush.bf16.msra.mxu1 %v961_v39  ;;  %657 = vmatpush.bf16.msra.mxu2 %v901_v40  ;;  %v889_v48 = vor.u32 %v982_v45, %v888_v43  ;;  %v890_v51 = vld [vmem:[%s1215_s30 + $0x68] sm:$0xf0]  ;;  %v997_v52 = vld [vmem:[%s1215_s30 + $0xe4] sm:$0xf] }
  0x3e   : > { %v953_v49 = vor.u32 %v998_v47, %v952_v46  ;;  %670 = vmatpush.bf16.msra.mxu3 %v965_v44  ;;  %v893_v53 = vor.u32 %v981_v50, %v890_v51  ;;  %v954_v54 = vld [vmem:[%s1215_s30 + $0xe8] sm:$0xf0]  ;;  %v880_v55 = vld [vmem:[%s1215_s30 + $0x50] sm:$0xf]  ;;  %v980_v56 = vld [vmem:[%s1215_s30 + $0x54] sm:$0xf0] }
  0x3f   : > { %v957_v57 = vor.u32 %v997_v52, %v954_v54  ;;  %v944_v58 = vld [vmem:[%s1215_s30 + $0xd0] sm:$0xf]  ;;  %v996_v59 = vld [vmem:[%s1215_s30 + $0xd4] sm:$0xf0]  ;;  %v979_v60 = vld [vmem:[%s1215_s30 + $0x54] sm:$0xf]  ;;  %v881_v61 = vor.u32 %v980_v56, %v880_v55 }
  0x40   : > { %632 = vmatpush.bf16.msra.mxu0 %v889_v48  ;;  %v882_v62 = vld [vmem:[%s1215_s30 + $0x58] sm:$0xf0]  ;;  %v995_v63 = vld [vmem:[%s1215_s30 + $0xd4] sm:$0xf]  ;;  %v945_v1 = vor.u32 %v996_v59, %v944_v58  ;;  %v872_v3 = vld [vmem:[%s1215_s30 + $0x40] sm:$0xf] }
  0x41   : > { %v946_v0 = vld [vmem:[%s1215_s30 + $0xd8] sm:$0xf0]  ;;  %645 = vmatpush.bf16.msra.mxu1 %v953_v49  ;;  %658 = vmatpush.bf16.msra.mxu2 %v893_v53  ;;  %v885_v2 = vor.u32 %v979_v60, %v882_v62  ;;  %v978_v4 = vld [vmem:[%s1215_s30 + $0x44] sm:$0xf0]  ;;  %v936_v5 = vld [vmem:[%s1215_s30 + $0xc0] sm:$0xf] }
  0x42   : > { %671 = vmatpush.bf16.msra.mxu3 %v957_v57  ;;  %v949_v6 = vor.u32 %v995_v63, %v946_v0  ;;  %v994_v7 = vld [vmem:[%s1215_s30 + $0xc4] sm:$0xf0]  ;;  %v977_v8 = vld [vmem:[%s1215_s30 + $0x44] sm:$0xf]  ;;  %v874_v9 = vld [vmem:[%s1215_s30 + $0x48] sm:$0xf0]  ;;  %v873_v12 = vor.u32 %v978_v4, %v872_v3 }
  0x43   : > { %v993_v10 = vld [vmem:[%s1215_s30 + $0xc4] sm:$0xf]  ;;  %v938_v11 = vld [vmem:[%s1215_s30 + $0xc8] sm:$0xf0]  ;;  %v937_v13 = vor.u32 %v994_v7, %v936_v5  ;;  %v877_v14 = vor.u32 %v977_v8, %v874_v9  ;;  %v864_v15 = vld [vmem:[%s1215_s30 + $0x30] sm:$0xf] }
  0x44   : > { %633 = vmatpush.bf16.msra.mxu0 %v881_v61  ;;  %v976_v16 = vld [vmem:[%s1215_s30 + $0x34] sm:$0xf0]  ;;  %v928_v17 = vld [vmem:[%s1215_s30 + $0xb0] sm:$0xf]  ;;  %v941_v18 = vor.u32 %v993_v10, %v938_v11  ;;  %v975_v20 = vld [vmem:[%s1215_s30 + $0x34] sm:$0xf] }
  0x45   : > { %646 = vmatpush.bf16.msra.mxu1 %v945_v1  ;;  %659 = vmatpush.bf16.msra.mxu2 %v885_v2  ;;  %v992_v19 = vld [vmem:[%s1215_s30 + $0xb4] sm:$0xf0]  ;;  %v866_v21 = vld [vmem:[%s1215_s30 + $0x38] sm:$0xf0]  ;;  %v991_v22 = vld [vmem:[%s1215_s30 + $0xb4] sm:$0xf]  ;;  %v865_v24 = vor.u32 %v976_v16, %v864_v15 }
  0x46   : > { %672 = vmatpush.bf16.msra.mxu3 %v949_v6  ;;  %v930_v23 = vld [vmem:[%s1215_s30 + $0xb8] sm:$0xf0]  ;;  %v929_v25 = vor.u32 %v992_v19, %v928_v17  ;;  %v869_v26 = vor.u32 %v975_v20, %v866_v21  ;;  %v856_v27 = vld [vmem:[%s1215_s30 + $0x20] sm:$0xf]  ;;  %v974_v28 = vld [vmem:[%s1215_s30 + $0x24] sm:$0xf0] }
  0x47   : > { %v920_v29 = vld [vmem:[%s1215_s30 + $0xa0] sm:$0xf]  ;;  %v933_v30 = vor.u32 %v991_v22, %v930_v23  ;;  %v990_v31 = vld [vmem:[%s1215_s30 + $0xa4] sm:$0xf0]  ;;  %v973_v32 = vld [vmem:[%s1215_s30 + $0x24] sm:$0xf]  ;;  %v857_v36 = vor.u32 %v974_v28, %v856_v27 }
  0x48   : > { %634 = vmatpush.bf16.msra.mxu0 %v873_v12  ;;  %v858_v33 = vld [vmem:[%s1215_s30 + $0x28] sm:$0xf0]  ;;  %v989_v34 = vld [vmem:[%s1215_s30 + $0xa4] sm:$0xf]  ;;  %v921_v37 = vor.u32 %v990_v31, %v920_v29  ;;  %v848_v39 = vld [vmem:[%s1215_s30 + $0x10] sm:$0xf] }
  0x49   : > { %647 = vmatpush.bf16.msra.mxu1 %v937_v13  ;;  %660 = vmatpush.bf16.msra.mxu2 %v877_v14  ;;  %v922_v35 = vld [vmem:[%s1215_s30 + $0xa8] sm:$0xf0]  ;;  %v861_v38 = vor.u32 %v973_v32, %v858_v33  ;;  %v972_v40 = vld [vmem:[%s1215_s30 + $0x14] sm:$0xf0]  ;;  %v912_v41 = vld [vmem:[%s1215_s30 + $0x90] sm:$0xf] }
  0x4a   : > { %673 = vmatpush.bf16.msra.mxu3 %v941_v18  ;;  %v925_v42 = vor.u32 %v989_v34, %v922_v35  ;;  %v988_v43 = vld [vmem:[%s1215_s30 + $0x94] sm:$0xf0]  ;;  %v971_v44 = vld [vmem:[%s1215_s30 + $0x14] sm:$0xf]  ;;  %v850_v45 = vld [vmem:[%s1215_s30 + $0x18] sm:$0xf0]  ;;  %v849_v48 = vor.u32 %v972_v40, %v848_v39 }
  0x4b   : > { %v987_v46 = vld [vmem:[%s1215_s30 + $0x94] sm:$0xf]  ;;  %v914_v47 = vld [vmem:[%s1215_s30 + $0x98] sm:$0xf0]  ;;  %v431_v49 = vld [vmem:[%s1306_s0] sm:$0xff]  ;;  %v913_v50 = vor.u32 %v988_v43, %v912_v41  ;;  %v853_v51 = vor.u32 %v971_v44, %v850_v45  ;;  %s1317_s6 = smov (!%p409_p9, %s835_s6), 3 }
  0x4c   : > { %635 = vmatpush.bf16.msra.mxu0 %v865_v24  ;;  %v840_v52 = vld [vmem:[%s1215_s30] sm:$0xf]  ;;  %v970_v53 = vld [vmem:[%s1215_s30 + $0x4] sm:$0xf0]  ;;  %v917_v55 = vor.u32 %v987_v46, %v914_v47  ;;  %v969_v57 = vld [vmem:[%s1215_s30 + $0x4] sm:$0xf]  ;;  %v465_v61 = vunpack.c.l.b16 %v431_v49  ;;  %v466_v63 = vunpack.c.h.b16 %v431_v49  ;;  %s411_s9 = scalar_lea.vmem %s1308_s2, %s1317_s6 }
  0x4d   : > { %648 = vmatpush.bf16.msra.mxu1 %v929_v25  ;;  %661 = vmatpush.bf16.msra.mxu2 %v869_v26  ;;  %v904_v54 = vld [vmem:[%s1215_s30 + $0x80] sm:$0xf]  ;;  %v986_v56 = vld [vmem:[%s1215_s30 + $0x84] sm:$0xf0]  ;;  %v842_v58 = vld [vmem:[%s1215_s30 + $0x8] sm:$0xf0]  ;;  %v841_v62 = vor.u32 %v970_v53, %v840_v52 }
  0x4e   : > { %674 = vmatpush.bf16.msra.mxu3 %v933_v30  ;;  %v985_v59 = vld [vmem:[%s1215_s30 + $0x84] sm:$0xf]  ;;  %v906_v60 = vld [vmem:[%s1215_s30 + $0x88] sm:$0xf0]  ;;  %v905_v0 = vor.u32 %v986_v56, %v904_v54  ;;  %v845_v1 = vor.u32 %v969_v57, %v842_v58  ;;  %v467_v3 = vpack.c.b16 %v465_v61, %v465_v61  ;;  %v468_v4 = vpack.c.b16 %v466_v63, %v466_v63  ;;  %v692_v5 = vld [vmem:[%s411_s9] sm:$0x3] }
  0x4f   : > { %v909_v2 = vor.u32 %v985_v59, %v906_v60  ;;  %s837_s10 = sshll.u32 %s1317_s6, 3  ;;  %v694_v7 = vperm.slane %v692_v5, 0  ;;  %v695_v12 = vperm.slane %v692_v5, 1 }
  0x50   : > { %636 = vmatpush.bf16.msra.mxu0 %v857_v36  ;;  %s421_s18 = scalar_lea.vmem %s1309_s3, %s837_s10 }
  0x51   : > { %649 = vmatpush.bf16.msra.mxu1 %v921_v37  ;;  %662 = vmatpush.bf16.msra.mxu2 %v861_v38 }
  0x52   : > { %675 = vmatpush.bf16.msra.mxu3 %v925_v42 }
  0x54   : > { %637 = vmatpush.bf16.msra.mxu0 %v849_v48 }
  0x55   : > { %650 = vmatpush.bf16.msra.mxu1 %v913_v50  ;;  %663 = vmatpush.bf16.msra.mxu2 %v853_v51 }
  0x56   : > { %676 = vmatpush.bf16.msra.mxu3 %v917_v55 }
  0x58   : > { %638 = vmatpush.bf16.msra.mxu0 %v841_v62 }
  0x59   : > { %651 = vmatpush.bf16.msra.mxu1 %v905_v0  ;;  %664 = vmatpush.bf16.msra.mxu2 %v845_v1 }
  0x5a   : > { %677 = vmatpush.bf16.msra.mxu3 %v909_v2 }
  0x5b   : > { %639 = vmatmul.bf16.vlgmr.msra.gmra.mxu0 %v467_v3 }
  0x5c   : > { %652 = vmatmul.bf16.vlgmr.msra.gmra.mxu1 %v468_v4  ;;  %665 = vmatmul.bf16.vlgmr.msra.gmra.mxu2 %v467_v3 }
  0x5d   : > { %678 = vmatmul.bf16.vlgmr.msra.gmra.mxu3 %v468_v4 }
  0xd8   : > { %v640_v6 = vpop.f32.mrf.mxu0 }
  0xd9   : > { %v653_v8 = vpop.f32.mrf.mxu1 }
  0xda   : > { %v654_v9 = vadd.f32 %v653_v8, %v640_v6 }
  0xdc   : > { %v698_v10 = vadd.f32 %v694_v7, %v654_v9 }
  0xde   : > { %700 = vst [vmem:[%s421_s18] sm:$0xff] %v698_v10 }
  0xdf   : > { %v666_v11 = vpop.f32.mrf.mxu2 }
  0xe0   : > { %v679_v13 = vpop.f32.mrf.mxu3  ;;  %v642_v14 = vpop.f32.mrf.mxu0 }
  0xe1   : > { %v680_v15 = vadd.f32 %v679_v13, %v666_v11  ;;  %v655_v16 = vpop.f32.mrf.mxu1 }
  0xe3   : > { %v699_v17 = vadd.f32 %v695_v12, %v680_v15 }
  0xe5   : > { %701 = vst [vmem:[%s421_s18 + $0x8] sm:$0xff] %v699_v17 }
  0xe7   : > { %v668_v18 = vpop.f32.mrf.mxu2 }
  0xe8   : > { %v681_v19 = vpop.f32.mrf.mxu3 }
  0xe9 PF: > { %s13_s16 = sadd.s32 1, %s1079_s16   ;;  %s1310_s12 = smov %s1067_s13 }
  0xea   : > { %p10_p10 = scmp.ge.s32.totalorder %s13_s16, 4   ;;  %s1311_s13 = smov %s1136_s20 }
  0xeb   : > { %s1312_s14 = smov %s1075_s15  ;;  %s1313_s15 = smov %s1315_s17 }
  0xec   :  { %12 = sbr.rel (!%p10_p10) target bundleno = 3 (0x3), region = 119 }

// kernel: encoder_forward.11
= control target key start
LH: loop header
LB: loop body
LE: loop exit
PB: predicated region body
PF: predicated region fallthrough
CT: control target
= control target key end

     0   :  { %vm283_vm0 = vcmask 27648   ;;  %vm322_vm1 = vcmask 1041408   ;;  %vm318_vm2 = vcmask 31744   ;;  %vm609_vm3 = vcmask 1045508   ;;  %s3111_s0 = inlined_call_operand.vmem [shape: f32[2,4,1536], index: 0, kind: input, shape index: {}]   ;;  %s3112_s2 = inlined_call_operand.vmem [shape: bf16[512,512], index: 2, kind: input, shape index: {}]   ;;  %s3113_s3 = inlined_call_operand.vmem [shape: f32[1,512], index: 3, kind: input, shape index: {}]   ;;  %s3114_s1 = inlined_call_operand.vmem [shape: f32[2,4,512], index: 1, kind: input, shape index: {}]   ;;  %s3115_s4 = inlined_call_operand.vmem [shape: f32[2,4,512], index: 4, kind: output, shape index: {}]  }
   0x1   :  { %v18_v0 = vld [vmem:[%s3111_s0] sm:$0xff]  ;;  %v19_v1 = vld [vmem:[%s3111_s0 + $0x8] sm:$0xff]  ;;  %v24_v2 = vld [vmem:[%s3111_s0 + $0x30] sm:$0xff]  ;;  %vm613_vm4 = vcmask 1043456  }
   0x2   :  { %34 = vst [vmem:[#allocation1] ss:$2 sm:$0xff] %v18_v0  ;;  %v25_v3 = vld [vmem:[%s3111_s0 + $0x38] sm:$0xff]  ;;  %v20_v4 = vld [vmem:[%s3111_s0 + $0x10] sm:$0xff]  ;;  %v26_v9 = vld [vmem:[%s3111_s0 + $0x40] sm:$0xff] }
   0x3   :  { %36 = vst [vmem:[#allocation1 + $0x10] ss:$2 sm:$0xff] %v19_v1  ;;  %v21_v5 = vld [vmem:[%s3111_s0 + $0x18] sm:$0xff]  ;;  %v27_v13 = vld [vmem:[%s3111_s0 + $0x48] sm:$0xff]  ;;  %v22_v16 = vld [vmem:[%s3111_s0 + $0x20] sm:$0xff] }
   0x4   :  { %42 = vst [vmem:[#allocation1 + $0x20] ss:$2 sm:$0xff] %v24_v2  ;;  %v23_v17 = vld [vmem:[%s3111_s0 + $0x28] sm:$0xff]  ;;  %v28_v21 = vld [vmem:[%s3111_s0 + $0x50] sm:$0xff]  ;;  %v29_v31 = vld [vmem:[%s3111_s0 + $0x58] sm:$0xff] }
   0x5   :  { %44 = vst [vmem:[#allocation1 + $0x30] ss:$2 sm:$0xff] %v25_v3 }
   0x9   :  { %v37_v6 = vld.sshfl [vmem:[#allocation1] sm:$0xff pattern:$0x75316420]  ;;  %v38_v7 = vld.sshfl [vmem:[#allocation1 + $0x8] sm:$0xff pattern:$0x75316420] }
   0xa   :  { %65 = vst [vmem:[#allocation1] ss:$2 sm:$0xff] %v20_v4  ;;  %v39_v8 = vld.sshfl [vmem:[#allocation1 + $0x10] sm:$0xff pattern:$0x75316420]  ;;  %v57_v24 = vpack.c.bf16 %v38_v7, %v37_v6 }
   0xb   :  { %v40_v10 = vld.sshfl [vmem:[#allocation1 + $0x18] sm:$0xff pattern:$0x75316420]  ;;  %v2231_v11 = vld.sshfl [vmem:[#allocation1 + $0x20] sm:$0xff pattern:$0x75316420] }
   0xc   :  { %67 = vst [vmem:[#allocation1 + $0x10] ss:$2 sm:$0xff] %v21_v5  ;;  %v2233_v12 = vld.sshfl [vmem:[#allocation1 + $0x28] sm:$0xff pattern:$0x75316420]  ;;  %v58_v29 = vpack.c.bf16 %v40_v10, %v39_v8  ;;  %v125_v37 = vunpack.c.l.b16 %v57_v24  ;;  %v126_v38 = vunpack.c.h.b16 %v57_v24 }
   0xd   :  { %73 = vst [vmem:[#allocation1 + $0x20] ss:$2 sm:$0xff] %v26_v9  ;;  %v47_v14 = vld.sshfl [vmem:[#allocation1 + $0x30] sm:$0xff pattern:$0x75316420]  ;;  %v59_v58 = vpack.c.bf16 %v2233_v12, %v2231_v11 }
   0xe   :  { %v48_v15 = vld.sshfl [vmem:[#allocation1 + $0x38] sm:$0xff pattern:$0x75316420]  ;;  %v127_v44 = vunpack.c.l.b16 %v58_v29  ;;  %v128_v45 = vunpack.c.h.b16 %v58_v29  ;;  %v129_v50 = vpack.c.b16 %v125_v37, %v125_v37  ;;  %v130_v51 = vpack.c.b16 %v126_v38, %v126_v38 }
   0xf   :  { %75 = vst [vmem:[#allocation1 + $0x30] ss:$2 sm:$0xff] %v27_v13  ;;  %v60_v59 = vpack.c.bf16 %v48_v15, %v47_v14  ;;  %v205_v60 = vunpack.c.l.b16 %v59_v58  ;;  %v206_v61 = vunpack.c.h.b16 %v59_v58 }
  0x10   :  { %v131_v56 = vpack.c.b16 %v127_v44, %v127_v44  ;;  %v132_v57 = vpack.c.b16 %v128_v45, %v128_v45 }
  0x11   :  { %v68_v18 = vld.sshfl [vmem:[#allocation1] sm:$0xff pattern:$0x75316420]  ;;  %v69_v19 = vld.sshfl [vmem:[#allocation1 + $0x8] sm:$0xff pattern:$0x75316420]  ;;  %v207_v62 = vunpack.c.l.b16 %v60_v59  ;;  %v208_v63 = vunpack.c.h.b16 %v60_v59  ;;  %v209_v0 = vpack.c.b16 %v205_v60, %v205_v60  ;;  %v210_v1 = vpack.c.b16 %v206_v61, %v206_v61 }
  0x12   :  { %v88_v20 = vpack.c.bf16 %v69_v19, %v68_v18  ;;  %96 = vst [vmem:[#allocation1] ss:$2 sm:$0xff] %v22_v16 }
  0x13   :  { %v70_v22 = vld.sshfl [vmem:[#allocation1 + $0x10] sm:$0xff pattern:$0x75316420]  ;;  %v71_v23 = vld.sshfl [vmem:[#allocation1 + $0x18] sm:$0xff pattern:$0x75316420]  ;;  %v211_v2 = vpack.c.b16 %v207_v62, %v207_v62  ;;  %v212_v3 = vpack.c.b16 %v208_v63, %v208_v63 }
  0x14   :  { %v139_v25 = vunpack.c.l.b16 %v88_v20  ;;  %v140_v26 = vunpack.c.h.b16 %v88_v20  ;;  %v89_v27 = vpack.c.bf16 %v71_v23, %v70_v22  ;;  %98 = vst [vmem:[#allocation1 + $0x10] ss:$2 sm:$0xff] %v23_v17  ;;  %v76_v28 = vld.sshfl [vmem:[#allocation1 + $0x20] sm:$0xff pattern:$0x75316420] }
  0x15   :  { %v77_v30 = vld.sshfl [vmem:[#allocation1 + $0x28] sm:$0xff pattern:$0x75316420] }
  0x16   :  { %v143_v32 = vpack.c.b16 %v139_v25, %v139_v25  ;;  %v144_v33 = vpack.c.b16 %v140_v26, %v140_v26  ;;  %v141_v34 = vunpack.c.l.b16 %v89_v27  ;;  %v142_v35 = vunpack.c.h.b16 %v89_v27  ;;  %104 = vst [vmem:[#allocation1 + $0x20] ss:$2 sm:$0xff] %v28_v21  ;;  %v78_v36 = vld.sshfl [vmem:[#allocation1 + $0x30] sm:$0xff pattern:$0x75316420] }
  0x17   :  { %v90_v39 = vpack.c.bf16 %v77_v30, %v76_v28  ;;  %v79_v40 = vld.sshfl [vmem:[#allocation1 + $0x38] sm:$0xff pattern:$0x75316420] }
  0x18   :  { %158 = vmatpush.bf16.xpose.msra.mxu0 %v143_v32  ;;  %171 = vmatpush.bf16.xpose.msra.mxu1 %v144_v33  ;;  %v145_v41 = vpack.c.b16 %v141_v34, %v141_v34  ;;  %v146_v42 = vpack.c.b16 %v142_v35, %v142_v35  ;;  %v91_v43 = vpack.c.bf16 %v79_v40, %v78_v36 }
  0x19   :  { %106 = vst [vmem:[#allocation1 + $0x30] ss:$2 sm:$0xff] %v29_v31  ;;  %v219_v46 = vunpack.c.l.b16 %v90_v39  ;;  %v220_v47 = vunpack.c.h.b16 %v90_v39 }
  0x1a   :  { %184 = vmatpush.bf16.xpose.msra.mxu2 %v145_v41  ;;  %197 = vmatpush.bf16.xpose.msra.mxu3 %v146_v42  ;;  %v221_v48 = vunpack.c.l.b16 %v91_v43  ;;  %v222_v49 = vunpack.c.h.b16 %v91_v43  ;;  %v99_v41 = vld.sshfl [vmem:[#allocation1] sm:$0xff pattern:$0x75316420]  ;;  %v100_v42 = vld.sshfl [vmem:[#allocation1 + $0x8] sm:$0xff pattern:$0x75316420] }
  0x1b   :  { %v223_v52 = vpack.c.b16 %v219_v46, %v219_v46  ;;  %v224_v53 = vpack.c.b16 %v220_v47, %v220_v47  ;;  %v101_v38 = vld.sshfl [vmem:[#allocation1 + $0x10] sm:$0xff pattern:$0x75316420]  ;;  %v102_v39 = vld.sshfl [vmem:[#allocation1 + $0x18] sm:$0xff pattern:$0x75316420]  ;;  %v119_v43 = vpack.c.bf16 %v100_v42, %v99_v41 }
  0x1c   :  { %v225_v54 = vpack.c.b16 %v221_v48, %v221_v48  ;;  %v226_v55 = vpack.c.b16 %v222_v49, %v222_v49  ;;  %v120_v40 = vpack.c.bf16 %v102_v39, %v101_v38  ;;  %v2071_v38 = vld [vmem:[%s3112_s2 + $0xac] sm:$0xf0]  ;;  %v1747_v41 = vld [vmem:[%s3112_s2 + $0x1a0] sm:$0xf] }
  0x1d   :  { %v310_v46 = vunpack.c.l.b16 %v119_v43  ;;  %v311_v47 = vunpack.c.h.b16 %v119_v43  ;;  %v107_v59 = vld.sshfl [vmem:[#allocation1 + $0x20] sm:$0xff pattern:$0x75316420]  ;;  %v108_v60 = vld.sshfl [vmem:[#allocation1 + $0x28] sm:$0xff pattern:$0x75316420] }
  0x1e   :  { %v312_v44 = vunpack.c.l.b16 %v120_v40  ;;  %v313_v45 = vunpack.c.h.b16 %v120_v40  ;;  %v121_v61 = vpack.c.bf16 %v108_v60, %v107_v59  ;;  %v2103_v42 = vld [vmem:[%s3112_s2 + $0x1ac] sm:$0xf0]  ;;  %v1875_v43 = vld [vmem:[%s3112_s2 + $0x2a0] sm:$0xf] }
  0x1f   :  { %159 = vmatmul.bf16.vlgmr.msra.gmra.mxu0 %v129_v50  ;;  %172 = vmatmul.bf16.vlgmr.msra.gmra.mxu1 %v130_v51  ;;  %v314_v50 = vpack.c.b16 %v310_v46, %v310_v46  ;;  %v315_v51 = vpack.c.b16 %v311_v47, %v311_v47  ;;  %v2003_v46 = vld [vmem:[%s3112_s2 + $0x3a0] sm:$0xf]  ;;  %v2167_v47 = vld [vmem:[%s3112_s2 + $0x3ac] sm:$0xf0] }
  0x20   :  { %238 = vmatpush.bf16.xpose.msrb.mxu0 %v223_v52  ;;  %251 = vmatpush.bf16.xpose.msrb.mxu1 %v224_v53  ;;  %v316_v48 = vpack.c.b16 %v312_v44, %v312_v44  ;;  %v317_v49 = vpack.c.b16 %v313_v45, %v313_v45  ;;  %v2135_v45 = vld [vmem:[%s3112_s2 + $0x2ac] sm:$0xf0] }
  0x21   :  { %185 = vmatmul.bf16.vlgmr.msra.gmra.mxu2 %v131_v56  ;;  %198 = vmatmul.bf16.vlgmr.msra.gmra.mxu3 %v132_v57  ;;  %v109_v56 = vld.sshfl [vmem:[#allocation1 + $0x30] sm:$0xff pattern:$0x75316420]  ;;  %v110_v57 = vld.sshfl [vmem:[#allocation1 + $0x38] sm:$0xff pattern:$0x75316420] }
  0x22   :  { %264 = vmatpush.bf16.xpose.msrb.mxu2 %v225_v54  ;;  %277 = vmatpush.bf16.xpose.msrb.mxu3 %v226_v55  ;;  %v330_v52 = vsel %vm322_vm1, %v316_v48, 0  ;;  %v333_v53 = vsel %vm322_vm1, %v317_v49, 0  ;;  %v324_v54 = vsel %vm322_vm1, %v314_v50, 0  ;;  %v327_v55 = vsel %vm322_vm1, %v315_v51, 0  ;;  %v1603_v50 = vld [vmem:[%s3112_s2 + $0x80] sm:$0xf] }
  0x23   :  { %v122_v58 = vpack.c.bf16 %v110_v57, %v109_v56  ;;  %v1748_v49 = vor.u32 %v2103_v42, %v1747_v41  ;;  %v2067_v51 = vld [vmem:[%s3112_s2 + $0x8c] sm:$0xf0]  ;;  %v1859_v56 = vld [vmem:[%s3112_s2 + $0x280] sm:$0xf] }
  0x24   :  { %v2131_v57 = vld [vmem:[%s3112_s2 + $0x28c] sm:$0xf0]  ;;  %v1604_v60 = vor.u32 %v2067_v51, %v1603_v50  ;;  %v1667_v41 = vld [vmem:[%s3112_s2 + $0x100] sm:$0xf]  ;;  %v2077_v50 = vld [vmem:[%s3112_s2 + $0xe4] sm:$0xf] }
  0x25   :  { %v391_v62 = vunpack.c.l.b16 %v122_v58  ;;  %v392_v63 = vunpack.c.h.b16 %v122_v58  ;;  %v1987_v58 = vld [vmem:[%s3112_s2 + $0x380] sm:$0xf]  ;;  %v2163_v59 = vld [vmem:[%s3112_s2 + $0x38c] sm:$0xf0] }
  0x28   :  { %342 = vmatpush.bf16.msra.mxu0 %v324_v54  ;;  %355 = vmatpush.bf16.msra.mxu1 %v327_v55  ;;  %v1731_v54 = vld [vmem:[%s3112_s2 + $0x180] sm:$0xf]  ;;  %v2099_v55 = vld [vmem:[%s3112_s2 + $0x18c] sm:$0xf0] }
  0x2a   :  { %368 = vmatpush.bf16.msra.mxu2 %v330_v52  ;;  %381 = vmatpush.bf16.msra.mxu3 %v333_v53  ;;  %v1876_v52 = vor.u32 %v2135_v45, %v1875_v43  ;;  %v2004_v53 = vor.u32 %v2167_v47, %v2003_v46  ;;  %v2083_v43 = vld [vmem:[%s3112_s2 + $0x10c] sm:$0xf0] }
  0x2b   :  { %v2115_v45 = vld [vmem:[%s3112_s2 + $0x20c] sm:$0xf0]  ;;  %v1668_v46 = vor.u32 %v2083_v43, %v1667_v41  ;;  %v1845_v41 = vld [vmem:[%s3112_s2 + $0x270] sm:$0xf0] }
  0x2f   :  { %239 = vmatmul.bf16.vlgmr.msrb.gmra.mxu0 %v209_v0  ;;  %252 = vmatmul.bf16.vlgmr.msrb.gmra.mxu1 %v210_v1  ;;  %v389_v0 = vunpack.c.l.b16 %v121_v61  ;;  %v390_v1 = vunpack.c.h.b16 %v121_v61  ;;  %v1732_v61 = vor.u32 %v2099_v55, %v1731_v54  ;;  %v1781_v54 = vld [vmem:[%s3112_s2 + $0x1f0] sm:$0xf0] }
  0x31   :  { %265 = vmatmul.bf16.vlgmr.msrb.gmra.mxu2 %v211_v2  ;;  %278 = vmatmul.bf16.vlgmr.msrb.gmra.mxu3 %v212_v3  ;;  %v395_v2 = vpack.c.b16 %v391_v62, %v391_v62  ;;  %v396_v3 = vpack.c.b16 %v392_v63, %v392_v63  ;;  %v1587_v62 = vld [vmem:[%s3112_s2 + $0x60] sm:$0xf]  ;;  %v2063_v63 = vld [vmem:[%s3112_s2 + $0x6c] sm:$0xf0] }
  0x9c   :  { %v160_v4 = vpop.f32.mrf.mxu0  ;;  %v173_v5 = vpop.f32.mrf.mxu1 }
  0x9d   :  { %v174_v6 = vadd.f32 %v173_v5, %v160_v4  ;;  %v393_v4 = vpack.c.b16 %v389_v0, %v389_v0  ;;  %v394_v5 = vpack.c.b16 %v390_v1, %v390_v1  ;;  %v1860_v1 = vor.u32 %v2131_v57, %v1859_v56  ;;  %v2141_v57 = vld [vmem:[%s3112_s2 + $0x2e4] sm:$0xf] }
  0xa4   :  { %v186_v7 = vpop.f32.mrf.mxu2  ;;  %v199_v8 = vpop.f32.mrf.mxu3 }
  0xa5   :  { %v187_v9 = vadd.f32 %v186_v7, %v174_v6  ;;  %v162_v10 = vpop.f32.mrf.mxu0  ;;  %v175_v11 = vpop.f32.mrf.mxu1  ;;  %v407_v6 = vsel %vm322_vm1, %v395_v2, 0  ;;  %v410_v7 = vsel %vm322_vm1, %v396_v3, 0  ;;  %v1988_v2 = vor.u32 %v2163_v59, %v1987_v58  ;;  %v1715_v3 = vld [vmem:[%s3112_s2 + $0x160] sm:$0xf]  ;;  %v1909_v58 = vld [vmem:[%s3112_s2 + $0x2f0] sm:$0xf0] }
  0xa6   :  { %445 = vmatpush.bf16.msrb.mxu2 %v407_v6  ;;  %458 = vmatpush.bf16.msrb.mxu3 %v410_v7  ;;  %v1651_v11 = vld [vmem:[%s3112_s2 + $0xe0] sm:$0xf]  ;;  %v2127_v7 = vld [vmem:[%s3112_s2 + $0x26c] sm:$0xf0]  ;;  %v2173_v59 = vld [vmem:[%s3112_s2 + $0x3e4] sm:$0xf] }
  0xa7   :  { %v200_v12 = vadd.f32 %v199_v8, %v187_v9  ;;  %v401_v8 = vsel %vm322_vm1, %v393_v4, 0  ;;  %v404_v9 = vsel %vm322_vm1, %v394_v5, 0  ;;  %v2095_v4 = vld [vmem:[%s3112_s2 + $0x16c] sm:$0xf0]  ;;  %v1843_v5 = vld [vmem:[%s3112_s2 + $0x260] sm:$0xf] }
  0xa8   :  { %419 = vmatpush.bf16.msrb.mxu0 %v401_v8  ;;  %432 = vmatpush.bf16.msrb.mxu1 %v404_v9  ;;  %v1971_v8 = vld [vmem:[%s3112_s2 + $0x360] sm:$0xf]  ;;  %v2159_v9 = vld [vmem:[%s3112_s2 + $0x36c] sm:$0xf0] }
  0xa9   :  { %v284_v13 = vsel %vm283_vm0, %v200_v12, -inf }
  0xaa   :  { %285 = vmax.xlane.f32.xlu0 %v284_v13 }
  0xac   :  { %v188_v14 = vpop.f32.mrf.mxu2  ;;  %v201_v15 = vpop.f32.mrf.mxu3 }
  0xad   :  { %v240_v16 = vpop.f32.mrf.mxu0  ;;  %v253_v17 = vpop.f32.mrf.mxu1  ;;  %v1779_v14 = vld [vmem:[%s3112_s2 + $0x1e0] sm:$0xf]  ;;  %v2111_v15 = vld [vmem:[%s3112_s2 + $0x1ec] sm:$0xf0] }
  0xae   :  { %v254_v18 = vadd.f32 %v253_v17, %v240_v16  ;;  %v1907_v16 = vld [vmem:[%s3112_s2 + $0x2e0] sm:$0xf] }
  0xb4   :  { %v266_v19 = vpop.f32.mrf.mxu2  ;;  %v279_v20 = vpop.f32.mrf.mxu3 }
  0xb5   :  { %v267_v21 = vadd.f32 %v266_v19, %v254_v18  ;;  %v242_v22 = vpop.f32.mrf.mxu0  ;;  %v255_v23 = vpop.f32.mrf.mxu1  ;;  %v2143_v18 = vld [vmem:[%s3112_s2 + $0x2ec] sm:$0xf0]  ;;  %v2035_v19 = vld [vmem:[%s3112_s2 + $0x3e0] sm:$0xf] }
  0xb6   :  { %v1780_v23 = vor.u32 %v2111_v15, %v1779_v14  ;;  %v1844_v14 = vor.u32 %v2127_v7, %v1843_v5  ;;  %v1972_v15 = vor.u32 %v2159_v9, %v1971_v8  ;;  %v2137_v5 = vld [vmem:[%s3112_s2 + $0x2c4] sm:$0xf]  ;;  %v2021_v9 = vld [vmem:[%s3112_s2 + $0x3d0] sm:$0xf0] }
  0xb7   :  { %v280_v24 = vadd.f32 %v279_v20, %v267_v21  ;;  %v2175_v20 = vld [vmem:[%s3112_s2 + $0x3ec] sm:$0xf0]  ;;  %v2169_v8 = vld [vmem:[%s3112_s2 + $0x3c4] sm:$0xf] }
  0xb9   :  { %v287_v25 = vsel %vm283_vm0, %v280_v24, -inf }
  0xba   :  { %288 = vmax.xlane.f32.xlu0 %v287_v25  ;;  %v2075_v25 = vld [vmem:[%s3112_s2 + $0xcc] sm:$0xf0] }
  0xbc   :  { %v268_v26 = vpop.f32.mrf.mxu2  ;;  %v281_v27 = vpop.f32.mrf.mxu3 }
  0xbd   :  { %v1908_v26 = vor.u32 %v2143_v18, %v1907_v16  ;;  %v2036_v27 = vor.u32 %v2175_v20, %v2035_v19  ;;  %v1699_v16 = vld [vmem:[%s3112_s2 + $0x140] sm:$0xf]  ;;  %v2123_v19 = vld [vmem:[%s3112_s2 + $0x24c] sm:$0xf0] }
  0xbe   :  { %v1827_v18 = vld [vmem:[%s3112_s2 + $0x240] sm:$0xf] }
  0xbf   :  { %v1955_v20 = vld [vmem:[%s3112_s2 + $0x340] sm:$0xf] }
 0x11d   :  { %v286_v28 = vpop.xlane.xlu0 %285 }
 0x11e   :  { %v290_v29 = vsub.f32 %v200_v12, %v286_v28  ;;  %v2079_v12 = vld [vmem:[%s3112_s2 + $0xec] sm:$0xf0]  ;;  %v1763_v28 = vld [vmem:[%s3112_s2 + $0x1c0] sm:$0xf] }
 0x11f   :  { %v1652_v22 = vor.u32 %v2079_v12, %v1651_v11  ;;  %v1588_v11 = vor.u32 %v2063_v63, %v1587_v62  ;;  %v1716_v12 = vor.u32 %v2095_v4, %v1715_v3  ;;  %v2073_v62 = vld [vmem:[%s3112_s2 + $0xc4] sm:$0xf] }
 0x120   :  { %v292_v30 = vmul.f32 1.442695, %v290_v29  ;;  %v2107_v29 = vld [vmem:[%s3112_s2 + $0x1cc] sm:$0xf0] }
 0x122   :  { %2177 = vpow2.f32 %v292_v30  ;;  %v1891_v30 = vld [vmem:[%s3112_s2 + $0x2c0] sm:$0xf] }
 0x128   :  { %v2254_v31 = vpop.eup %2177 }
 0x129   :  { %v296_v32 = vsel %vm283_vm0, %v2254_v31, 0.0 }
 0x12a   :  { %297 = vadd.xlane.f32.xlu1 %v296_v32  ;;  %v2019_v32 = vld [vmem:[%s3112_s2 + $0x3c0] sm:$0xf] }
 0x12d   :  { %v289_v33 = vpop.xlane.xlu0 %288 }
 0x12e   :  { %v291_v34 = vsub.f32 %v280_v24, %v289_v33  ;;  %v1635_v24 = vld [vmem:[%s3112_s2 + $0xc0] sm:$0xf]  ;;  %v2171_v33 = vld [vmem:[%s3112_s2 + $0x3cc] sm:$0xf0] }
 0x12f   :  { %v2020_v40 = vor.u32 %v2171_v33, %v2019_v32  ;;  %v2119_v32 = vld [vmem:[%s3112_s2 + $0x22c] sm:$0xf0] }
 0x130   :  { %v294_v35 = vmul.f32 1.442695, %v291_v34  ;;  %v1636_v34 = vor.u32 %v2075_v25, %v1635_v24  ;;  %v1828_v24 = vor.u32 %v2123_v19, %v1827_v18  ;;  %v2165_v19 = vld [vmem:[%s3112_s2 + $0x3a4] sm:$0xf] }
 0x132   :  { %2179 = vpow2.f32 %v294_v35  ;;  %v1764_v35 = vor.u32 %v2107_v29, %v1763_v28  ;;  %v1683_v28 = vld [vmem:[%s3112_s2 + $0x120] sm:$0xf] }
 0x138   :  { %v2258_v36 = vpop.eup %2179 }
 0x139   :  { %v299_v37 = vsel %vm283_vm0, %v2258_v36, 0.0 }
 0x13a   :  { %300 = vadd.xlane.f32.xlu1 %v299_v37  ;;  %v1619_v37 = vld [vmem:[%s3112_s2 + $0xa0] sm:$0xf] }
 0x13b   :  { %v1620_v48 = vor.u32 %v2071_v38, %v1619_v37  ;;  %v2151_v37 = vld [vmem:[%s3112_s2 + $0x32c] sm:$0xf0] }
 0x19d   :  { %v298_v10 = vpop.xlane.xlu1 %297 }
 0x19e   :  { %2181 = vrcp.f32 %v298_v10 }
 0x1a4   :  { %v2182_v13 = vpop.eup %2181 }
 0x1a5   :  { %v304_v17 = vmul.f32 %v2182_v13, %v2254_v31  ;;  %v2139_v31 = vld [vmem:[%s3112_s2 + $0x2cc] sm:$0xf0] }
 0x1a6   :  { %v1892_v39 = vor.u32 %v2139_v31, %v1891_v30  ;;  %v2059_v13 = vld [vmem:[%s3112_s2 + $0x4c] sm:$0xf0]  ;;  %v1811_v31 = vld [vmem:[%s3112_s2 + $0x220] sm:$0xf] }
 0x1a7   :  { %v306_v21 = vpack.c.bf16 %v304_v17, %v304_v17  ;;  %v2091_v17 = vld [vmem:[%s3112_s2 + $0x14c] sm:$0xf0] }
 0x1a8   :  { %v2087_v30 = vld [vmem:[%s3112_s2 + $0x12c] sm:$0xf0] }
 0x1a9   :  { %1529 = vmatmul.msk.bf16.vlgmr.msra.gmra.mxu0 %vm318_vm2, %v306_v21  ;;  %1530 = vmatmul.msk.bf16.vlgmr.msra.gmra.mxu1 %vm318_vm2, %v306_v21  ;;  %v1684_v33 = vor.u32 %v2087_v30, %v1683_v28  ;;  %v1861_v28 = vld [vmem:[%s3112_s2 + $0x290] sm:$0xf0] }
 0x1aa   :  { %1531 = vmatmul.msk.bf16.vlgmr.msra.gmra.mxu2 %vm318_vm2, %v306_v21  ;;  %1532 = vmatmul.msk.bf16.vlgmr.msra.gmra.mxu3 %vm318_vm2, %v306_v21  ;;  %v2155_v21 = vld [vmem:[%s3112_s2 + $0x34c] sm:$0xf0] }
 0x1ab   :  { %1273 = vmatpush.bf16.msra.mxu0 %v1652_v22  ;;  %1286 = vmatpush.bf16.msra.mxu1 %v1780_v23  ;;  %v1700_v23 = vor.u32 %v2091_v17, %v1699_v16  ;;  %v1956_v25 = vor.u32 %v2155_v21, %v1955_v20  ;;  %v1877_v16 = vld [vmem:[%s3112_s2 + $0x2b0] sm:$0xf0] }
 0x1ac   :  { %1299 = vmatpush.bf16.msra.mxu2 %v1908_v26  ;;  %1312 = vmatpush.bf16.msra.mxu3 %v2036_v27  ;;  %v1555_v26 = vld [vmem:[%s3112_s2 + $0x20] sm:$0xf]  ;;  %v2055_v27 = vld [vmem:[%s3112_s2 + $0x2c] sm:$0xf0]  ;;  %v2005_v20 = vld [vmem:[%s3112_s2 + $0x3b0] sm:$0xf0] }
 0x1ad   :  { %v301_v44 = vpop.xlane.xlu1 %300  ;;  %v1556_v29 = vor.u32 %v2055_v27, %v1555_v26  ;;  %v2008_v21 = vor.u32 %v2165_v19, %v2005_v20  ;;  %v1733_v26 = vld [vmem:[%s3112_s2 + $0x190] sm:$0xf0]  ;;  %v2129_v27 = vld [vmem:[%s3112_s2 + $0x284] sm:$0xf] }
 0x1ae   :  { %2183 = vrcp.f32 %v301_v44  ;;  %v1795_v44 = vld [vmem:[%s3112_s2 + $0x200] sm:$0xf]  ;;  %v1864_v30 = vor.u32 %v2129_v27, %v1861_v28 }
 0x1af   :  { %1274 = vmatpush.bf16.msra.mxu0 %v1636_v34  ;;  %1287 = vmatpush.bf16.msra.mxu1 %v1764_v35  ;;  %v1812_v34 = vor.u32 %v2119_v32, %v1811_v31  ;;  %v1939_v35 = vld [vmem:[%s3112_s2 + $0x320] sm:$0xf]  ;;  %v1796_v47 = vor.u32 %v2115_v45, %v1795_v44  ;;  %v2161_v31 = vld [vmem:[%s3112_s2 + $0x384] sm:$0xf]  ;;  %v1989_v32 = vld [vmem:[%s3112_s2 + $0x390] sm:$0xf0] }
 0x1b0   :  { %1300 = vmatpush.bf16.msra.mxu2 %v1892_v39  ;;  %1313 = vmatpush.bf16.msra.mxu3 %v2020_v40  ;;  %v1940_v38 = vor.u32 %v2151_v37, %v1939_v35  ;;  %v1539_v39 = vld [vmem:[%s3112_s2] sm:$0xf]  ;;  %v2051_v40 = vld [vmem:[%s3112_s2 + $0xc] sm:$0xf0]  ;;  %v1589_v35 = vld [vmem:[%s3112_s2 + $0x70] sm:$0xf0] }
 0x1b1   :  { %v1540_v42 = vor.u32 %v2051_v40, %v1539_v39  ;;  %v2093_v37 = vld [vmem:[%s3112_s2 + $0x164] sm:$0xf]  ;;  %v1717_v39 = vld [vmem:[%s3112_s2 + $0x170] sm:$0xf0] }
 0x1b2   :  { %v2125_v40 = vld [vmem:[%s3112_s2 + $0x264] sm:$0xf]  ;;  %v1973_v45 = vld [vmem:[%s3112_s2 + $0x370] sm:$0xf0] }
 0x1b3   :  { %1275 = vmatpush.bf16.msra.mxu0 %v1620_v48  ;;  %1288 = vmatpush.bf16.msra.mxu1 %v1748_v49  ;;  %v1923_v48 = vld [vmem:[%s3112_s2 + $0x300] sm:$0xf]  ;;  %v2147_v49 = vld [vmem:[%s3112_s2 + $0x30c] sm:$0xf0]  ;;  %v1848_v43 = vor.u32 %v2125_v40, %v1845_v41  ;;  %v2157_v44 = vld [vmem:[%s3112_s2 + $0x364] sm:$0xf] }
 0x1b4   :  { %v2184_v0 = vpop.eup %2183  ;;  %1301 = vmatpush.bf16.msra.mxu2 %v1876_v52  ;;  %1314 = vmatpush.bf16.msra.mxu3 %v2004_v53  ;;  %v1924_v51 = vor.u32 %v2147_v49, %v1923_v48  ;;  %v1653_v52 = vld [vmem:[%s3112_s2 + $0xf0] sm:$0xf0]  ;;  %v2109_v53 = vld [vmem:[%s3112_s2 + $0x1e4] sm:$0xf] }
 0x1b5   :  { %v305_v6 = vmul.f32 %v2184_v0, %v2258_v36  ;;  %v1571_v36 = vld [vmem:[%s3112_s2 + $0x40] sm:$0xf]  ;;  %v1656_v55 = vor.u32 %v2077_v50, %v1653_v52  ;;  %v1784_v56 = vor.u32 %v2109_v53, %v1781_v54  ;;  %v1637_v0 = vld [vmem:[%s3112_s2 + $0xd0] sm:$0xf0]  ;;  %v2089_v49 = vld [vmem:[%s3112_s2 + $0x144] sm:$0xf] }
 0x1b6   :  { %v1572_v22 = vor.u32 %v2059_v13, %v1571_v36  ;;  %v1640_v3 = vor.u32 %v2073_v62, %v1637_v0  ;;  %v2101_v36 = vld [vmem:[%s3112_s2 + $0x1a4] sm:$0xf]  ;;  %v1573_v48 = vld [vmem:[%s3112_s2 + $0x50] sm:$0xf0] }
 0x1b7   :  { %v307_v10 = vpack.c.bf16 %v305_v6, %v305_v6  ;;  %1276 = vmatpush.bf16.msra.mxu0 %v1604_v60  ;;  %1289 = vmatpush.bf16.msra.mxu1 %v1732_v61  ;;  %v1912_v60 = vor.u32 %v2141_v57, %v1909_v58  ;;  %v2037_v61 = vld [vmem:[%s3112_s2 + $0x3f0] sm:$0xf0]  ;;  %v2121_v52 = vld [vmem:[%s3112_s2 + $0x244] sm:$0xf] }
 0x1b8   :  { %1302 = vmatpush.bf16.msra.mxu2 %v1860_v1  ;;  %1315 = vmatpush.bf16.msra.mxu3 %v1988_v2  ;;  %v2040_v63 = vor.u32 %v2173_v59, %v2037_v61  ;;  %v2105_v1 = vld [vmem:[%s3112_s2 + $0x1c4] sm:$0xf]  ;;  %v1765_v2 = vld [vmem:[%s3112_s2 + $0x1d0] sm:$0xf0] }
 0x1b9   :  { %1533 = vmatmul.msk.bf16.vlgmr.msrb.gmra.mxu0 %vm318_vm2, %v307_v10  ;;  %1534 = vmatmul.msk.bf16.vlgmr.msrb.gmra.mxu1 %vm318_vm2, %v307_v10  ;;  %v1768_v4 = vor.u32 %v2105_v1, %v1765_v2  ;;  %v1893_v6 = vld [vmem:[%s3112_s2 + $0x2d0] sm:$0xf0]  ;;  %v2053_v59 = vld [vmem:[%s3112_s2 + $0x24] sm:$0xf] }
 0x1ba   :  { %1535 = vmatmul.msk.bf16.vlgmr.msrb.gmra.mxu2 %vm318_vm2, %v307_v10  ;;  %1536 = vmatmul.msk.bf16.vlgmr.msrb.gmra.mxu3 %vm318_vm2, %v307_v10  ;;  %v1896_v7 = vor.u32 %v2137_v5, %v1893_v6  ;;  %v2024_v10 = vor.u32 %v2169_v8, %v2021_v9  ;;  %v1829_v53 = vld [vmem:[%s3112_s2 + $0x250] sm:$0xf0]  ;;  %v2085_v61 = vld [vmem:[%s3112_s2 + $0x124] sm:$0xf] }
 0x1bb   :  { %1277 = vmatpush.bf16.msra.mxu0 %v1588_v11  ;;  %1290 = vmatpush.bf16.msra.mxu1 %v1716_v12  ;;  %v2069_v11 = vld [vmem:[%s3112_s2 + $0xa4] sm:$0xf]  ;;  %v1621_v12 = vld [vmem:[%s3112_s2 + $0xb0] sm:$0xf0] }
 0x1bc   :  { %1303 = vmatpush.bf16.msra.mxu2 %v1844_v14  ;;  %1316 = vmatpush.bf16.msra.mxu3 %v1972_v15  ;;  %v1624_v13 = vor.u32 %v2069_v11, %v1621_v12  ;;  %v1749_v14 = vld [vmem:[%s3112_s2 + $0x1b0] sm:$0xf0]  ;;  %v2133_v15 = vld [vmem:[%s3112_s2 + $0x2a4] sm:$0xf] }
 0x1bd   :  { %v1752_v17 = vor.u32 %v2101_v36, %v1749_v14  ;;  %v1880_v18 = vor.u32 %v2133_v15, %v1877_v16  ;;  %v1957_v57 = vld [vmem:[%s3112_s2 + $0x350] sm:$0xf0]  ;;  %v2117_v0 = vld [vmem:[%s3112_s2 + $0x224] sm:$0xf] }
 0x1be   :  { %v1813_v1 = vld [vmem:[%s3112_s2 + $0x230] sm:$0xf0]  ;;  %v2149_v6 = vld [vmem:[%s3112_s2 + $0x324] sm:$0xf] }
 0x1bf   :  { %1278 = vmatpush.bf16.msra.mxu0 %v1572_v22  ;;  %1291 = vmatpush.bf16.msra.mxu1 %v1700_v23  ;;  %v2065_v22 = vld [vmem:[%s3112_s2 + $0x84] sm:$0xf]  ;;  %v1605_v23 = vld [vmem:[%s3112_s2 + $0x90] sm:$0xf0]  ;;  %v1816_v5 = vor.u32 %v2117_v0, %v1813_v1  ;;  %v1899_v1 = vld [vmem:[%s3112_s2 + $0x2c8] sm:$0xf] }
 0x1c0   :  { %1304 = vmatpush.bf16.msra.mxu2 %v1828_v24  ;;  %1317 = vmatpush.bf16.msra.mxu3 %v1956_v25  ;;  %v2097_v24 = vld [vmem:[%s3112_s2 + $0x184] sm:$0xf]  ;;  %v1608_v25 = vor.u32 %v2065_v22, %v1605_v23  ;;  %v1669_v12 = vld [vmem:[%s3112_s2 + $0x110] sm:$0xf0] }
 0x1c1   :  { %v2049_v8 = vld [vmem:[%s3112_s2 + $0x4] sm:$0xf] }
 0x1c2   :  { %v2081_v11 = vld [vmem:[%s3112_s2 + $0x104] sm:$0xf] }
 0x1c3   :  { %1279 = vmatpush.bf16.msra.mxu0 %v1556_v29  ;;  %1292 = vmatpush.bf16.msra.mxu1 %v1684_v33  ;;  %v1736_v29 = vor.u32 %v2097_v24, %v1733_v26  ;;  %v1992_v33 = vor.u32 %v2161_v31, %v1989_v32  ;;  %v2113_v36 = vld [vmem:[%s3112_s2 + $0x204] sm:$0xf]  ;;  %v1672_v16 = vor.u32 %v2081_v11, %v1669_v12 }
 0x1c4   :  { %1305 = vmatpush.bf16.msra.mxu2 %v1812_v34  ;;  %1318 = vmatpush.bf16.msra.mxu3 %v1940_v38  ;;  %v2061_v34 = vld [vmem:[%s3112_s2 + $0x64] sm:$0xf] }
 0x1c5   :  { %v1592_v38 = vor.u32 %v2061_v34, %v1589_v35  ;;  %v2145_v14 = vld [vmem:[%s3112_s2 + $0x304] sm:$0xf] }
 0x1c7   :  { %1280 = vmatpush.bf16.msra.mxu0 %v1540_v42  ;;  %1293 = vmatpush.bf16.msra.mxu1 %v1668_v46  ;;  %v1720_v42 = vor.u32 %v2093_v37, %v1717_v39  ;;  %v1976_v46 = vor.u32 %v2157_v44, %v1973_v45 }
 0x1c8   :  { %1306 = vmatpush.bf16.msra.mxu2 %v1796_v47  ;;  %1319 = vmatpush.bf16.msra.mxu3 %v1924_v51  ;;  %v2057_v47 = vld [vmem:[%s3112_s2 + $0x44] sm:$0xf]  ;;  %v1701_v51 = vld [vmem:[%s3112_s2 + $0x150] sm:$0xf0] }
 0x1c9   :  { %v1576_v50 = vor.u32 %v2057_v47, %v1573_v48  ;;  %v1704_v54 = vor.u32 %v2089_v49, %v1701_v51  ;;  %v1659_v51 = vld [vmem:[%s3112_s2 + $0xe8] sm:$0xf] }
 0x1cb   :  { %1325 = vmatpush.bf16.msrb.mxu0 %v1656_v55  ;;  %1338 = vmatpush.bf16.msrb.mxu1 %v1784_v56  ;;  %v1832_v55 = vor.u32 %v2121_v52, %v1829_v53  ;;  %v2153_v56 = vld [vmem:[%s3112_s2 + $0x344] sm:$0xf]  ;;  %v2080_v52 = vld [vmem:[%s3112_s2 + $0xf4] sm:$0xf0]  ;;  %v1787_v53 = vld [vmem:[%s3112_s2 + $0x1e8] sm:$0xf] }
 0x1cc   :  { %1351 = vmatpush.bf16.msrb.mxu2 %v1912_v60  ;;  %1364 = vmatpush.bf16.msrb.mxu3 %v2040_v63  ;;  %v1960_v58 = vor.u32 %v2153_v56, %v1957_v57  ;;  %v1557_v60 = vld [vmem:[%s3112_s2 + $0x30] sm:$0xf0]  ;;  %v2144_v56 = vld [vmem:[%s3112_s2 + $0x2f4] sm:$0xf0]  ;;  %v2043_v57 = vld [vmem:[%s3112_s2 + $0x3e8] sm:$0xf] }
 0x1cd   :  { %v1560_v62 = vor.u32 %v2053_v59, %v1557_v60  ;;  %v1685_v63 = vld [vmem:[%s3112_s2 + $0x130] sm:$0xf0]  ;;  %v1643_v59 = vld [vmem:[%s3112_s2 + $0xc8] sm:$0xf]  ;;  %v2076_v60 = vld [vmem:[%s3112_s2 + $0xd4] sm:$0xf0] }
 0x1ce   :  { %v1644_v11 = vor.u32 %v2076_v60, %v1643_v59 }
 0x1cf   :  { %1326 = vmatpush.bf16.msrb.mxu0 %v1640_v3  ;;  %1339 = vmatpush.bf16.msrb.mxu1 %v1768_v4  ;;  %v1688_v4 = vor.u32 %v2085_v61, %v1685_v63  ;;  %v1771_v61 = vld [vmem:[%s3112_s2 + $0x1c8] sm:$0xf]  ;;  %v1660_v63 = vor.u32 %v2080_v52, %v1659_v51 }
 0x1d0   :  { %1352 = vmatpush.bf16.msrb.mxu2 %v1896_v7  ;;  %1365 = vmatpush.bf16.msrb.mxu3 %v2024_v10  ;;  %v1941_v7 = vld [vmem:[%s3112_s2 + $0x330] sm:$0xf0] }
 0x1d1   :  { %v1944_v9 = vor.u32 %v2149_v6, %v1941_v7  ;;  %v1541_v10 = vld [vmem:[%s3112_s2 + $0x10] sm:$0xf0] }
 0x1d2   :  { %v1544_v15 = vor.u32 %v2049_v8, %v1541_v10 }
 0x1d3   :  { %1327 = vmatpush.bf16.msrb.mxu0 %v1624_v13  ;;  %1340 = vmatpush.bf16.msrb.mxu1 %v1752_v17  ;;  %v1797_v13 = vld [vmem:[%s3112_s2 + $0x210] sm:$0xf0] }
 0x1d4   :  { %1353 = vmatpush.bf16.msrb.mxu2 %v1880_v18  ;;  %1366 = vmatpush.bf16.msrb.mxu3 %v2008_v21  ;;  %v1925_v17 = vld [vmem:[%s3112_s2 + $0x310] sm:$0xf0]  ;;  %v1800_v19 = vor.u32 %v2113_v36, %v1797_v13  ;;  %v1627_v36 = vld [vmem:[%s3112_s2 + $0xa8] sm:$0xf]  ;;  %v2072_v13 = vld [vmem:[%s3112_s2 + $0xb4] sm:$0xf0] }
 0x1d5   :  { %v1928_v20 = vor.u32 %v2145_v14, %v1925_v17  ;;  %v2104_v17 = vld [vmem:[%s3112_s2 + $0x1b4] sm:$0xf0] }
 0x1d7   :  { %1328 = vmatpush.bf16.msrb.mxu0 %v1608_v25  ;;  %1341 = vmatpush.bf16.msrb.mxu1 %v1736_v29 }
 0x1d8   :  { %1354 = vmatpush.bf16.msrb.mxu2 %v1864_v30  ;;  %1367 = vmatpush.bf16.msrb.mxu3 %v1992_v33 }
 0x1db   :  { %1329 = vmatpush.bf16.msrb.mxu0 %v1592_v38  ;;  %1342 = vmatpush.bf16.msrb.mxu1 %v1720_v42 }
 0x1dc   :  { %1355 = vmatpush.bf16.msrb.mxu2 %v1848_v43  ;;  %1368 = vmatpush.bf16.msrb.mxu3 %v1976_v46 }
 0x1df   :  { %1330 = vmatpush.bf16.msrb.mxu0 %v1576_v50  ;;  %1343 = vmatpush.bf16.msrb.mxu1 %v1704_v54  ;;  %v2112_v54 = vld [vmem:[%s3112_s2 + $0x1f4] sm:$0xf0] }
 0x1e0   :  { %1356 = vmatpush.bf16.msrb.mxu2 %v1832_v55  ;;  %1369 = vmatpush.bf16.msrb.mxu3 %v1960_v58  ;;  %v1915_v55 = vld [vmem:[%s3112_s2 + $0x2e8] sm:$0xf]  ;;  %v2176_v58 = vld [vmem:[%s3112_s2 + $0x3f4] sm:$0xf0]  ;;  %v1788_v0 = vor.u32 %v2112_v54, %v1787_v53 }
 0x1e1   :  { %v1916_v7 = vor.u32 %v2144_v56, %v1915_v55  ;;  %v2044_v8 = vor.u32 %v2176_v58, %v2043_v57  ;;  %v1707_v53 = vld [vmem:[%s3112_s2 + $0x148] sm:$0xf]  ;;  %v2092_v54 = vld [vmem:[%s3112_s2 + $0x154] sm:$0xf0] }
 0x1e2   :  { %v1835_v55 = vld [vmem:[%s3112_s2 + $0x248] sm:$0xf]  ;;  %v2124_v56 = vld [vmem:[%s3112_s2 + $0x254] sm:$0xf0]  ;;  %v1708_v60 = vor.u32 %v2092_v54, %v1707_v53  ;;  %v2102_v53 = vld [vmem:[%s3112_s2 + $0x1ac] sm:$0xf] }
 0x1e3   :  { %1331 = vmatpush.bf16.msrb.mxu0 %v1560_v62  ;;  %1344 = vmatpush.bf16.msrb.mxu1 %v1688_v4  ;;  %v2108_v62 = vld [vmem:[%s3112_s2 + $0x1d4] sm:$0xf0]  ;;  %v1963_v57 = vld [vmem:[%s3112_s2 + $0x348] sm:$0xf]  ;;  %v1757_v54 = vld [vmem:[%s3112_s2 + $0x1b8] sm:$0xf0] }
 0x1e4   :  { %1357 = vmatpush.bf16.msrb.mxu2 %v1816_v5  ;;  %1370 = vmatpush.bf16.msrb.mxu3 %v1944_v9  ;;  %v2172_v4 = vld [vmem:[%s3112_s2 + $0x3d4] sm:$0xf0]  ;;  %v1772_v12 = vor.u32 %v2108_v62, %v1771_v61  ;;  %v1563_v61 = vld [vmem:[%s3112_s2 + $0x28] sm:$0xf] }
 0x1e5   :  { %v2156_v58 = vld [vmem:[%s3112_s2 + $0x354] sm:$0xf0] }
 0x1e6   :  { %v2056_v62 = vld [vmem:[%s3112_s2 + $0x34] sm:$0xf0] }
 0x1e7   :  { %1332 = vmatpush.bf16.msrb.mxu0 %v1544_v15  ;;  %1345 = vmatpush.bf16.msrb.mxu1 %v1672_v16  ;;  %v1755_v16 = vld [vmem:[%s3112_s2 + $0x1a8] sm:$0xf] }
 0x1e8   :  { %1358 = vmatpush.bf16.msrb.mxu2 %v1800_v19  ;;  %1371 = vmatpush.bf16.msrb.mxu3 %v1928_v20  ;;  %v2136_v19 = vld [vmem:[%s3112_s2 + $0x2b4] sm:$0xf0]  ;;  %v2011_v20 = vld [vmem:[%s3112_s2 + $0x3a8] sm:$0xf] }
 0x226   :  { %v344_v2 = vpop.f32.mrf.mxu0  ;;  %v357_v3 = vpop.f32.mrf.mxu1 }
 0x227   :  { %v464_v18 = vpack.c.bf16 %v357_v3, %v344_v2  ;;  %v2140_v2 = vld [vmem:[%s3112_s2 + $0x2d4] sm:$0xf0]  ;;  %v2027_v3 = vld [vmem:[%s3112_s2 + $0x3c8] sm:$0xf] }
 0x228   :  { %v1900_v14 = vor.u32 %v2140_v2, %v1899_v1  ;;  %v2028_v15 = vor.u32 %v2172_v4, %v2027_v3  ;;  %v1691_v1 = vld [vmem:[%s3112_s2 + $0x128] sm:$0xf]  ;;  %v2088_v2 = vld [vmem:[%s3112_s2 + $0x134] sm:$0xf0] }
 0x229   :  { %v600_v23 = vrot.slane %v464_v18, 2  ;;  %v1819_v3 = vld [vmem:[%s3112_s2 + $0x228] sm:$0xf]  ;;  %v2120_v4 = vld [vmem:[%s3112_s2 + $0x234] sm:$0xf0] }
 0x22b   :  { %v608_v29 = vsel %vm322_vm1, %v464_v18, %v600_v23  ;;  %v1883_v18 = vld [vmem:[%s3112_s2 + $0x2a8] sm:$0xf]  ;;  %v1756_v23 = vor.u32 %v2104_v17, %v1755_v16  ;;  %v1820_v16 = vor.u32 %v2120_v4, %v1819_v3  ;;  %v2130_v3 = vld [vmem:[%s3112_s2 + $0x28c] sm:$0xf]  ;;  %v1869_v4 = vld [vmem:[%s3112_s2 + $0x298] sm:$0xf0] }
 0x22d   :  { %v370_v21 = vpop.f32.mrf.mxu2  ;;  %v383_v22 = vpop.f32.mrf.mxu3 }
 0x22e   :  { %v465_v24 = vpack.c.bf16 %v383_v22, %v370_v21  ;;  %v346_v25 = vpop.f32.mrf.mxu0  ;;  %v359_v26 = vpop.f32.mrf.mxu1  ;;  %v2168_v21 = vld [vmem:[%s3112_s2 + $0x3b4] sm:$0xf0]  ;;  %v1628_v22 = vor.u32 %v2072_v13, %v1627_v36  ;;  %v1692_v36 = vor.u32 %v2088_v2, %v1691_v1  ;;  %v2098_v1 = vld [vmem:[%s3112_s2 + $0x18c] sm:$0xf]  ;;  %v1741_v2 = vld [vmem:[%s3112_s2 + $0x198] sm:$0xf0] }
 0x22f   :  { %v2068_v25 = vld [vmem:[%s3112_s2 + $0x94] sm:$0xf0]  ;;  %v1884_v26 = vor.u32 %v2136_v19, %v1883_v18  ;;  %v1803_v18 = vld [vmem:[%s3112_s2 + $0x208] sm:$0xf] }
 0x230   :  { %v601_v27 = vrot.slane %v465_v24, 4  ;;  %v602_v28 = vrot.slane %v465_v24, 6  ;;  %v1611_v24 = vld [vmem:[%s3112_s2 + $0x88] sm:$0xf]  ;;  %v2052_v13 = vld [vmem:[%s3112_s2 + $0x14] sm:$0xf0] }
 0x231   :  { %v2116_v19 = vld [vmem:[%s3112_s2 + $0x214] sm:$0xf0] }
 0x232   :  { %v612_v30 = vsel %vm609_vm3, %v601_v27, %v602_v28  ;;  %v2012_v27 = vor.u32 %v2168_v21, %v2011_v20  ;;  %v1739_v28 = vld [vmem:[%s3112_s2 + $0x188] sm:$0xf]  ;;  %v2148_v21 = vld [vmem:[%s3112_s2 + $0x314] sm:$0xf0] }
 0x233   :  { %v614_v31 = vsel %vm613_vm4, %v608_v29, %v612_v30  ;;  %v2100_v29 = vld [vmem:[%s3112_s2 + $0x194] sm:$0xf0]  ;;  %v1867_v30 = vld [vmem:[%s3112_s2 + $0x288] sm:$0xf] }
 0x234   :  { %622 = vst [vmem:[#allocation1] ss:$4 sm:$0xff] %v614_v31  ;;  %v2132_v31 = vld [vmem:[%s3112_s2 + $0x294] sm:$0xf0]  ;;  %v1931_v20 = vld [vmem:[%s3112_s2 + $0x308] sm:$0xf] }
 0x235   :  { %v372_v32 = vpop.f32.mrf.mxu2  ;;  %v385_v33 = vpop.f32.mrf.mxu3 }
 0x236   :  { %v421_v34 = vpop.f32.mrf.mxu0  ;;  %v434_v35 = vpop.f32.mrf.mxu1  ;;  %v1995_v32 = vld [vmem:[%s3112_s2 + $0x388] sm:$0xf]  ;;  %v2164_v33 = vld [vmem:[%s3112_s2 + $0x394] sm:$0xf0] }
 0x237   :  { %v466_v37 = vpack.c.bf16 %v434_v35, %v421_v34  ;;  %v1612_v34 = vor.u32 %v2068_v25, %v1611_v24  ;;  %v1740_v35 = vor.u32 %v2100_v29, %v1739_v28  ;;  %v2110_v24 = vld [vmem:[%s3112_s2 + $0x1ec] sm:$0xf]  ;;  %v1789_v25 = vld [vmem:[%s3112_s2 + $0x1f8] sm:$0xf0] }
 0x238   :  { %v1917_v29 = vld [vmem:[%s3112_s2 + $0x2f8] sm:$0xf0] }
 0x239   :  { %v603_v40 = vrot.slane %v466_v37, 2 }
 0x23b   :  { %v617_v46 = vsel %vm322_vm1, %v466_v37, %v603_v40  ;;  %v1595_v37 = vld [vmem:[%s3112_s2 + $0x68] sm:$0xf]  ;;  %v1996_v40 = vor.u32 %v2164_v33, %v1995_v32  ;;  %v1804_v32 = vor.u32 %v2116_v19, %v1803_v18  ;;  %v1932_v33 = vor.u32 %v2148_v21, %v1931_v20  ;;  %v2126_v18 = vld [vmem:[%s3112_s2 + $0x26c] sm:$0xf]  ;;  %v1853_v19 = vld [vmem:[%s3112_s2 + $0x278] sm:$0xf0] }
 0x23c   :  { %v2158_v20 = vld [vmem:[%s3112_s2 + $0x36c] sm:$0xf]  ;;  %v1981_v21 = vld [vmem:[%s3112_s2 + $0x378] sm:$0xf0] }
 0x23d   :  { %v447_v38 = vpop.f32.mrf.mxu2  ;;  %v460_v39 = vpop.f32.mrf.mxu3 }
 0x23e   :  { %v467_v41 = vpack.c.bf16 %v460_v39, %v447_v38  ;;  %v423_v42 = vpop.f32.mrf.mxu0  ;;  %v436_v43 = vpop.f32.mrf.mxu1  ;;  %v2064_v38 = vld [vmem:[%s3112_s2 + $0x74] sm:$0xf0]  ;;  %v1868_v39 = vor.u32 %v2132_v31, %v1867_v30  ;;  %v2174_v30 = vld [vmem:[%s3112_s2 + $0x3ec] sm:$0xf]  ;;  %v2045_v31 = vld [vmem:[%s3112_s2 + $0x3f8] sm:$0xf0] }
 0x23f   :  { %v2096_v42 = vld [vmem:[%s3112_s2 + $0x174] sm:$0xf0]  ;;  %v1851_v43 = vld [vmem:[%s3112_s2 + $0x268] sm:$0xf] }
 0x240   :  { %v604_v44 = vrot.slane %v467_v41, 4  ;;  %v605_v45 = vrot.slane %v467_v41, 6  ;;  %v1723_v41 = vld [vmem:[%s3112_s2 + $0x168] sm:$0xf] }
 0x242   :  { %v620_v47 = vsel %vm609_vm3, %v604_v44, %v605_v45  ;;  %v2128_v44 = vld [vmem:[%s3112_s2 + $0x274] sm:$0xf0]  ;;  %v1979_v45 = vld [vmem:[%s3112_s2 + $0x368] sm:$0xf] }
 0x243   :  { %v621_v48 = vsel %vm613_vm4, %v617_v46, %v620_v47  ;;  %v2160_v46 = vld [vmem:[%s3112_s2 + $0x374] sm:$0xf0]  ;;  %v1596_v47 = vor.u32 %v2064_v38, %v1595_v37  ;;  %v1852_v51 = vor.u32 %v2128_v44, %v1851_v43  ;;  %v2074_v37 = vld [vmem:[%s3112_s2 + $0xcc] sm:$0xf]  ;;  %v1645_v38 = vld [vmem:[%s3112_s2 + $0xd8] sm:$0xf0] }
 0x244   :  { %624 = vst [vmem:[#allocation1 + $0x1] ss:$4 sm:$0xff] %v621_v48  ;;  %v1724_v48 = vor.u32 %v2096_v42, %v1723_v41  ;;  %v1980_v52 = vor.u32 %v2160_v46, %v1979_v45  ;;  %v2106_v41 = vld [vmem:[%s3112_s2 + $0x1cc] sm:$0xf]  ;;  %v1773_v42 = vld [vmem:[%s3112_s2 + $0x1d8] sm:$0xf0] }
 0x245   :  { %v449_v49 = vpop.f32.mrf.mxu2  ;;  %v462_v50 = vpop.f32.mrf.mxu3  ;;  %v2138_v43 = vld [vmem:[%s3112_s2 + $0x2cc] sm:$0xf]  ;;  %v1901_v44 = vld [vmem:[%s3112_s2 + $0x2d8] sm:$0xf0] }
 0x246   :  { %v1579_v49 = vld [vmem:[%s3112_s2 + $0x48] sm:$0xf]  ;;  %v2060_v50 = vld [vmem:[%s3112_s2 + $0x54] sm:$0xf0]  ;;  %v2170_v45 = vld [vmem:[%s3112_s2 + $0x3cc] sm:$0xf] }
 0x247   :  { %v1580_v59 = vor.u32 %v2060_v50, %v1579_v49  ;;  %v2029_v46 = vld [vmem:[%s3112_s2 + $0x3d8] sm:$0xf0]  ;;  %v2070_v49 = vld [vmem:[%s3112_s2 + $0xac] sm:$0xf] }
 0x248   :  { %v1629_v50 = vld [vmem:[%s3112_s2 + $0xb8] sm:$0xf0] }
 0x24b   :  { %v2718_v5 = vld.sshfl [vmem:[#allocation1] sm:$0xff pattern:$0x73625140]  ;;  %v2720_v6 = vld.sshfl [vmem:[#allocation1 + $0x8] sm:$0xff pattern:$0x73625140] }
 0x24c   :  { %1281 = vmatmul.bf16.vlgmr.msra.gmra.mxu0 %v2718_v5  ;;  %1294 = vmatmul.bf16.vlgmr.msra.gmra.mxu1 %v2720_v6  ;;  %v2724_v9 = vld.sshfl [vmem:[#allocation1 + $0x10] sm:$0xff pattern:$0x73625140]  ;;  %v2726_v10 = vld.sshfl [vmem:[#allocation1 + $0x18] sm:$0xff pattern:$0x73625140] }
 0x24d   :  { %1307 = vmatmul.bf16.vlgmr.msra.gmra.mxu2 %v2724_v9  ;;  %1320 = vmatmul.bf16.vlgmr.msra.gmra.mxu3 %v2726_v10 }
 0x24e   :  { %1377 = vmatpush.bf16.msra.mxu0 %v1660_v63  ;;  %1390 = vmatpush.bf16.msra.mxu1 %v1788_v0  ;;  %v1836_v63 = vor.u32 %v2124_v56, %v1835_v55  ;;  %v1964_v0 = vor.u32 %v2156_v58, %v1963_v57  ;;  %v2134_v55 = vld [vmem:[%s3112_s2 + $0x2ac] sm:$0xf]  ;;  %v1885_v56 = vld [vmem:[%s3112_s2 + $0x2b8] sm:$0xf0] }
 0x24f   :  { %1403 = vmatpush.bf16.msra.mxu2 %v1916_v7  ;;  %1416 = vmatpush.bf16.msra.mxu3 %v2044_v8  ;;  %v1947_v7 = vld [vmem:[%s3112_s2 + $0x328] sm:$0xf]  ;;  %v2152_v8 = vld [vmem:[%s3112_s2 + $0x334] sm:$0xf0]  ;;  %v2166_v57 = vld [vmem:[%s3112_s2 + $0x3ac] sm:$0xf] }
 0x250   :  { %v1948_v17 = vor.u32 %v2152_v8, %v1947_v7  ;;  %v2013_v58 = vld [vmem:[%s3112_s2 + $0x3b8] sm:$0xf0]  ;;  %v2162_v7 = vld [vmem:[%s3112_s2 + $0x38c] sm:$0xf] }
 0x251   :  { %v1997_v8 = vld [vmem:[%s3112_s2 + $0x398] sm:$0xf0] }
 0x252   :  { %1378 = vmatpush.bf16.msra.mxu0 %v1644_v11  ;;  %1391 = vmatpush.bf16.msra.mxu1 %v1772_v12  ;;  %v1547_v11 = vld [vmem:[%s3112_s2 + $0x8] sm:$0xf]  ;;  %v1564_v12 = vor.u32 %v2056_v62, %v1563_v61  ;;  %v2066_v61 = vld [vmem:[%s3112_s2 + $0x8c] sm:$0xf]  ;;  %v1613_v62 = vld [vmem:[%s3112_s2 + $0x98] sm:$0xf0] }
 0x253   :  { %1404 = vmatpush.bf16.msra.mxu2 %v1900_v14  ;;  %1417 = vmatpush.bf16.msra.mxu3 %v2028_v15  ;;  %v1675_v14 = vld [vmem:[%s3112_s2 + $0x108] sm:$0xf]  ;;  %v2084_v15 = vld [vmem:[%s3112_s2 + $0x114] sm:$0xf0] }
 0x254   :  { %v1676_v28 = vor.u32 %v2084_v15, %v1675_v14  ;;  %v1872_v14 = vor.u32 %v2130_v3, %v1869_v4  ;;  %v2000_v15 = vor.u32 %v2162_v7, %v1997_v8 }
 0x256   :  { %1379 = vmatpush.bf16.msra.mxu0 %v1628_v22  ;;  %1392 = vmatpush.bf16.msra.mxu1 %v1756_v23  ;;  %v2078_v22 = vld [vmem:[%s3112_s2 + $0xec] sm:$0xf]  ;;  %v1661_v23 = vld [vmem:[%s3112_s2 + $0xf8] sm:$0xf0] }
 0x257   :  { %1405 = vmatpush.bf16.msra.mxu2 %v1884_v26  ;;  %1418 = vmatpush.bf16.msra.mxu3 %v2012_v27  ;;  %v2142_v26 = vld [vmem:[%s3112_s2 + $0x2ec] sm:$0xf]  ;;  %v1548_v27 = vor.u32 %v2052_v13, %v1547_v11  ;;  %v1616_v11 = vor.u32 %v2066_v61, %v1613_v62  ;;  %v1597_v13 = vld [vmem:[%s3112_s2 + $0x78] sm:$0xf0] }
 0x25a   :  { %1380 = vmatpush.bf16.msra.mxu0 %v1612_v34  ;;  %1393 = vmatpush.bf16.msra.mxu1 %v1740_v35  ;;  %v1664_v34 = vor.u32 %v2078_v22, %v1661_v23  ;;  %v1792_v35 = vor.u32 %v2110_v24, %v1789_v25  ;;  %v2058_v24 = vld [vmem:[%s3112_s2 + $0x4c] sm:$0xf]  ;;  %v1581_v25 = vld [vmem:[%s3112_s2 + $0x58] sm:$0xf0] }
 0x25b   :  { %1406 = vmatpush.bf16.msra.mxu2 %v1868_v39  ;;  %1419 = vmatpush.bf16.msra.mxu3 %v1996_v40  ;;  %v1920_v39 = vor.u32 %v2142_v26, %v1917_v29  ;;  %v2048_v40 = vor.u32 %v2174_v30, %v2045_v31  ;;  %v1856_v26 = vor.u32 %v2126_v18, %v1853_v19  ;;  %v1709_v29 = vld [vmem:[%s3112_s2 + $0x158] sm:$0xf0]  ;;  %v2122_v30 = vld [vmem:[%s3112_s2 + $0x24c] sm:$0xf] }
 0x25c   :  { %1333 = vmatmul.bf16.vlgmr.msrb.gmra.mxu0 %v2718_v5  ;;  %1346 = vmatmul.bf16.vlgmr.msrb.gmra.mxu1 %v2720_v6  ;;  %v1837_v31 = vld [vmem:[%s3112_s2 + $0x258] sm:$0xf0] }
 0x25d   :  { %1359 = vmatmul.bf16.vlgmr.msrb.gmra.mxu2 %v2724_v9  ;;  %1372 = vmatmul.bf16.vlgmr.msrb.gmra.mxu3 %v2726_v10 }
 0x25e   :  { %1381 = vmatpush.bf16.msra.mxu0 %v1596_v47  ;;  %1394 = vmatpush.bf16.msra.mxu1 %v1724_v48  ;;  %v1648_v47 = vor.u32 %v2074_v37, %v1645_v38  ;;  %v1776_v48 = vor.u32 %v2106_v41, %v1773_v42  ;;  %v2054_v37 = vld [vmem:[%s3112_s2 + $0x2c] sm:$0xf]  ;;  %v1565_v38 = vld [vmem:[%s3112_s2 + $0x38] sm:$0xf0] }
 0x25f   :  { %1407 = vmatpush.bf16.msra.mxu2 %v1852_v51  ;;  %1420 = vmatpush.bf16.msra.mxu3 %v1980_v52  ;;  %v1904_v51 = vor.u32 %v2138_v43, %v1901_v44  ;;  %v2032_v52 = vor.u32 %v2170_v45, %v2029_v46  ;;  %v2086_v41 = vld [vmem:[%s3112_s2 + $0x12c] sm:$0xf]  ;;  %v1693_v42 = vld [vmem:[%s3112_s2 + $0x138] sm:$0xf0] }
 0x260   :  { %v2118_v43 = vld [vmem:[%s3112_s2 + $0x22c] sm:$0xf]  ;;  %v1821_v44 = vld [vmem:[%s3112_s2 + $0x238] sm:$0xf0] }
 0x261   :  { %v2150_v45 = vld [vmem:[%s3112_s2 + $0x32c] sm:$0xf]  ;;  %v1949_v46 = vld [vmem:[%s3112_s2 + $0x338] sm:$0xf0] }
 0x262   :  { %1382 = vmatpush.bf16.msra.mxu0 %v1580_v59  ;;  %1395 = vmatpush.bf16.msra.mxu1 %v1708_v60  ;;  %v1632_v59 = vor.u32 %v2070_v49, %v1629_v50  ;;  %v1760_v60 = vor.u32 %v2102_v53, %v1757_v54  ;;  %v2050_v49 = vld [vmem:[%s3112_s2 + $0xc] sm:$0xf]  ;;  %v1549_v50 = vld [vmem:[%s3112_s2 + $0x18] sm:$0xf0] }
 0x263   :  { %1408 = vmatpush.bf16.msra.mxu2 %v1836_v63  ;;  %1421 = vmatpush.bf16.msra.mxu3 %v1964_v0  ;;  %v1888_v63 = vor.u32 %v2134_v55, %v1885_v56  ;;  %v2016_v0 = vor.u32 %v2166_v57, %v2013_v58  ;;  %v2082_v53 = vld [vmem:[%s3112_s2 + $0x10c] sm:$0xf]  ;;  %v1677_v54 = vld [vmem:[%s3112_s2 + $0x118] sm:$0xf0] }
 0x264   :  { %v2114_v55 = vld [vmem:[%s3112_s2 + $0x20c] sm:$0xf]  ;;  %v1805_v56 = vld [vmem:[%s3112_s2 + $0x218] sm:$0xf0] }
 0x265   :  { %v2146_v57 = vld [vmem:[%s3112_s2 + $0x30c] sm:$0xf]  ;;  %v1933_v58 = vld [vmem:[%s3112_s2 + $0x318] sm:$0xf0]  ;;  %v1808_v61 = vor.u32 %v2114_v55, %v1805_v56 }
 0x266   :  { %1383 = vmatpush.bf16.msra.mxu0 %v1564_v12  ;;  %1396 = vmatpush.bf16.msra.mxu1 %v1692_v36  ;;  %v1744_v12 = vor.u32 %v2098_v1, %v1741_v2  ;;  %v2062_v36 = vld [vmem:[%s3112_s2 + $0x6c] sm:$0xf]  ;;  %v1936_v62 = vor.u32 %v2146_v57, %v1933_v58 }
 0x267   :  { %1409 = vmatpush.bf16.msra.mxu2 %v1820_v16  ;;  %1422 = vmatpush.bf16.msra.mxu3 %v1948_v17  ;;  %v2094_v16 = vld [vmem:[%s3112_s2 + $0x16c] sm:$0xf]  ;;  %v1725_v17 = vld [vmem:[%s3112_s2 + $0x178] sm:$0xf0]  ;;  %v1600_v22 = vor.u32 %v2062_v36, %v1597_v13 }
 0x268   :  { %v1728_v23 = vor.u32 %v2094_v16, %v1725_v17 }
 0x26a   :  { %1384 = vmatpush.bf16.msra.mxu0 %v1548_v27  ;;  %1397 = vmatpush.bf16.msra.mxu1 %v1676_v28  ;;  %v1984_v27 = vor.u32 %v2158_v20, %v1981_v21  ;;  %v2090_v28 = vld [vmem:[%s3112_s2 + $0x14c] sm:$0xf] }
 0x26b   :  { %1410 = vmatpush.bf16.msra.mxu2 %v1804_v32  ;;  %1423 = vmatpush.bf16.msra.mxu3 %v1932_v33  ;;  %v2154_v32 = vld [vmem:[%s3112_s2 + $0x34c] sm:$0xf]  ;;  %v1965_v33 = vld [vmem:[%s3112_s2 + $0x358] sm:$0xf0] }
 0x26d   :  { %1385 = vmatmul.bf16.vlgmr.msra.gmra.mxu0 %v2718_v5  ;;  %1398 = vmatmul.bf16.vlgmr.msra.gmra.mxu1 %v2720_v6 }
 0x26e   :  { %1429 = vmatpush.bf16.msrb.mxu0 %v1664_v34  ;;  %1442 = vmatpush.bf16.msrb.mxu1 %v1792_v35  ;;  %v1584_v34 = vor.u32 %v2058_v24, %v1581_v25  ;;  %v1712_v35 = vor.u32 %v2090_v28, %v1709_v29 }
 0x26f   :  { %1455 = vmatpush.bf16.msrb.mxu2 %v1920_v39  ;;  %1468 = vmatpush.bf16.msrb.mxu3 %v2048_v40  ;;  %v1840_v39 = vor.u32 %v2122_v30, %v1837_v31  ;;  %v1968_v40 = vor.u32 %v2154_v32, %v1965_v33 }
 0x270   :  { %1411 = vmatmul.bf16.vlgmr.msra.gmra.mxu2 %v2724_v9  ;;  %1424 = vmatmul.bf16.vlgmr.msra.gmra.mxu3 %v2726_v10 }
 0x272   :  { %1430 = vmatpush.bf16.msrb.mxu0 %v1648_v47  ;;  %1443 = vmatpush.bf16.msrb.mxu1 %v1776_v48  ;;  %v1568_v47 = vor.u32 %v2054_v37, %v1565_v38  ;;  %v1696_v48 = vor.u32 %v2086_v41, %v1693_v42 }
 0x273   :  { %1456 = vmatpush.bf16.msrb.mxu2 %v1904_v51  ;;  %1469 = vmatpush.bf16.msrb.mxu3 %v2032_v52  ;;  %v1824_v51 = vor.u32 %v2118_v43, %v1821_v44  ;;  %v1952_v52 = vor.u32 %v2150_v45, %v1949_v46 }
 0x276   :  { %1431 = vmatpush.bf16.msrb.mxu0 %v1632_v59  ;;  %1444 = vmatpush.bf16.msrb.mxu1 %v1760_v60  ;;  %v1552_v59 = vor.u32 %v2050_v49, %v1549_v50  ;;  %v1680_v60 = vor.u32 %v2082_v53, %v1677_v54 }
 0x277   :  { %1457 = vmatpush.bf16.msrb.mxu2 %v1888_v63  ;;  %1470 = vmatpush.bf16.msrb.mxu3 %v2016_v0 }
 0x27a   :  { %1432 = vmatpush.bf16.msrb.mxu0 %v1616_v11  ;;  %1445 = vmatpush.bf16.msrb.mxu1 %v1744_v12 }
 0x27b   :  { %1458 = vmatpush.bf16.msrb.mxu2 %v1872_v14  ;;  %1471 = vmatpush.bf16.msrb.mxu3 %v2000_v15 }
 0x27e   :  { %1433 = vmatpush.bf16.msrb.mxu0 %v1600_v22  ;;  %1446 = vmatpush.bf16.msrb.mxu1 %v1728_v23  ;;  %v1497_v23 = vld [vmem:[%s3114_s1] sm:$0xff] }
 0x27f   :  { %1459 = vmatpush.bf16.msrb.mxu2 %v1856_v26  ;;  %1472 = vmatpush.bf16.msrb.mxu3 %v1984_v27  ;;  %v1499_v26 = vld [vmem:[%s3114_s1 + $0x10] sm:$0xff] }
 0x282   :  { %1434 = vmatpush.bf16.msrb.mxu0 %v1584_v34  ;;  %1447 = vmatpush.bf16.msrb.mxu1 %v1712_v35 }
 0x283   :  { %1460 = vmatpush.bf16.msrb.mxu2 %v1840_v39  ;;  %1473 = vmatpush.bf16.msrb.mxu3 %v1968_v40 }
 0x286   :  { %1435 = vmatpush.bf16.msrb.mxu0 %v1568_v47  ;;  %1448 = vmatpush.bf16.msrb.mxu1 %v1696_v48 }
 0x287   :  { %1461 = vmatpush.bf16.msrb.mxu2 %v1824_v51  ;;  %1474 = vmatpush.bf16.msrb.mxu3 %v1952_v52 }
 0x28a   :  { %1436 = vmatpush.bf16.msrb.mxu0 %v1552_v59  ;;  %1449 = vmatpush.bf16.msrb.mxu1 %v1680_v60  ;;  %v1498_v60 = vld [vmem:[%s3114_s1 + $0x8] sm:$0xff] }
 0x28b   :  { %1462 = vmatpush.bf16.msrb.mxu2 %v1808_v61  ;;  %1475 = vmatpush.bf16.msrb.mxu3 %v1936_v62 }
 0x28d   :  { %1437 = vmatmul.bf16.vlgmr.msrb.gmra.mxu0 %v2718_v5  ;;  %1450 = vmatmul.bf16.vlgmr.msrb.gmra.mxu1 %v2720_v6  ;;  %v1505_v5 = vld [vmem:[%s3113_s3] sm:$0xf] }
 0x28e   :  { %1463 = vmatmul.bf16.vlgmr.msrb.gmra.mxu2 %v2724_v9  ;;  %1476 = vmatmul.bf16.vlgmr.msrb.gmra.mxu3 %v2726_v10  ;;  %v1508_v13 = vperm.slane %v1505_v5, 1  ;;  %v1507_v19 = vperm.slane %v1505_v5, 0  ;;  %v1510_v48 = vperm.slane %v1505_v5, 3  ;;  %v1509_v56 = vperm.slane %v1505_v5, 2 }
 0x290   :  { %v1511_v20 = vrot.slane %v1508_v13, 4  ;;  %v1512_v57 = vrot.slane %v1510_v48, 4 }
 0x292   :  { %v1513_v27 = vsel %vm613_vm4, %v1507_v19, %v1511_v20 }
 0x2c9   :  { %v1282_v63 = vpop.f32.mrf.mxu0  ;;  %v1295_v0 = vpop.f32.mrf.mxu1 }
 0x2ca   :  { %v1296_v36 = vadd.f32 %v1295_v0, %v1282_v63  ;;  %v1500_v63 = vld [vmem:[%s3114_s1 + $0x18] sm:$0xff]  ;;  %v1514_v0 = vsel %vm613_vm4, %v1509_v56, %v1512_v57 }
 0x2d0   :  { %v1308_v1 = vpop.f32.mrf.mxu2  ;;  %v1321_v2 = vpop.f32.mrf.mxu3 }
 0x2d1   :  { %v1284_v3 = vpop.f32.mrf.mxu0  ;;  %v1297_v4 = vpop.f32.mrf.mxu1  ;;  %v1309_v10 = vadd.f32 %v1308_v1, %v1296_v36 }
 0x2d3   :  { %v1322_v21 = vadd.f32 %v1321_v2, %v1309_v10 }
 0x2d8   :  { %v1310_v7 = vpop.f32.mrf.mxu2  ;;  %v1323_v8 = vpop.f32.mrf.mxu3 }
 0x2d9   :  { %v1334_v11 = vpop.f32.mrf.mxu0  ;;  %v1347_v12 = vpop.f32.mrf.mxu1 }
 0x2da   :  { %v1348_v6 = vadd.f32 %v1347_v12, %v1334_v11 }
 0x2e0   :  { %v1360_v9 = vpop.f32.mrf.mxu2  ;;  %v1373_v14 = vpop.f32.mrf.mxu3 }
 0x2e1   :  { %v1361_v15 = vadd.f32 %v1360_v9, %v1348_v6  ;;  %v1336_v16 = vpop.f32.mrf.mxu0  ;;  %v1349_v17 = vpop.f32.mrf.mxu1 }
 0x2e3   :  { %v1374_v18 = vadd.f32 %v1373_v14, %v1361_v15 }
 0x2e5   :  { %v1485_v22 = vrot.slane %v1374_v18, 4 }
 0x2e7   :  { %v1487_v24 = vsel %vm613_vm4, %v1322_v21, %v1485_v22  ;;  %v1489_v25 = vsel %vm613_vm4, %v1485_v22, %v1322_v21 }
 0x2e8   :  { %v1490_v28 = vrot.slane %v1489_v25, 4  ;;  %v1501_v29 = vadd.f32 %v1497_v23, %v1487_v24  ;;  %v1362_v30 = vpop.f32.mrf.mxu2  ;;  %v1375_v31 = vpop.f32.mrf.mxu3 }
 0x2ea   :  { %v1503_v32 = vadd.f32 %v1499_v26, %v1490_v28  ;;  %v1517_v33 = vadd.f32 %v1513_v27, %v1501_v29  ;;  %v1386_v34 = vpop.f32.mrf.mxu0  ;;  %v1399_v35 = vpop.f32.mrf.mxu1 }
 0x2eb   :  { %v1400_v46 = vadd.f32 %v1399_v35, %v1386_v34 }
 0x2ec   :  { %v1519_v37 = vadd.f32 %v1513_v27, %v1503_v32  ;;  %1521 = vst [vmem:[%s3115_s4] sm:$0xff] %v1517_v33 }
 0x2ee   :  { %1523 = vst [vmem:[%s3115_s4 + $0x10] sm:$0xff] %v1519_v37 }
 0x2f2   :  { %v1388_v40 = vpop.f32.mrf.mxu0  ;;  %v1401_v41 = vpop.f32.mrf.mxu1 }
 0x2f3   :  { %v1412_v38 = vpop.f32.mrf.mxu2  ;;  %v1425_v39 = vpop.f32.mrf.mxu3 }
 0x2f4   :  { %v1413_v51 = vadd.f32 %v1412_v38, %v1400_v46 }
 0x2f6   :  { %v1426_v58 = vadd.f32 %v1425_v39, %v1413_v51 }
 0x2fb   :  { %v1414_v42 = vpop.f32.mrf.mxu2  ;;  %v1427_v43 = vpop.f32.mrf.mxu3 }
 0x30a   :  { %v1438_v44 = vpop.f32.mrf.mxu0  ;;  %v1451_v45 = vpop.f32.mrf.mxu1 }
 0x30b   :  { %v1452_v47 = vadd.f32 %v1451_v45, %v1438_v44 }
 0x311   :  { %v1464_v49 = vpop.f32.mrf.mxu2  ;;  %v1477_v50 = vpop.f32.mrf.mxu3 }
 0x312   :  { %v1465_v52 = vadd.f32 %v1464_v49, %v1452_v47  ;;  %v1440_v53 = vpop.f32.mrf.mxu0  ;;  %v1453_v54 = vpop.f32.mrf.mxu1 }
 0x314   :  { %v1478_v55 = vadd.f32 %v1477_v50, %v1465_v52 }
 0x316   :  { %v1486_v59 = vrot.slane %v1478_v55, 4 }
 0x318   :  { %v1488_v61 = vsel %vm613_vm4, %v1426_v58, %v1486_v59  ;;  %v1491_v62 = vsel %vm613_vm4, %v1486_v59, %v1426_v58 }
 0x319   :  { %v1492_v1 = vrot.slane %v1491_v62, 4  ;;  %v1502_v2 = vadd.f32 %v1498_v60, %v1488_v61  ;;  %v1466_v3 = vpop.f32.mrf.mxu2  ;;  %v1479_v4 = vpop.f32.mrf.mxu3 }
 0x31b   :  { %v1504_v7 = vadd.f32 %v1500_v63, %v1492_v1  ;;  %v1518_v8 = vadd.f32 %v1514_v0, %v1502_v2 }
 0x31d   :  { %v1520_v11 = vadd.f32 %v1514_v0, %v1504_v7  ;;  %1522 = vst [vmem:[%s3115_s4 + $0x8] sm:$0xff] %v1518_v8 }
 0x31f   :  { %1524 = vst [vmem:[%s3115_s4 + $0x18] sm:$0xff] %v1520_v11 }

// kernel: encoder_forward.15
= control target key start
LH: loop header
LB: loop body
LE: loop exit
PB: predicated region body
PF: predicated region fallthrough
CT: control target
= control target key end

     0   :  { %s1304_s1 = inlined_call_operand.vmem [shape: bf16[512,256], index: 1, kind: input, shape index: {}]   ;;  %s1305_s0 = inlined_call_operand.vmem [shape: bf16[8,512], index: 0, kind: input, shape index: {}]   ;;  %s1306_s2 = inlined_call_operand.vmem [shape: f32[1,256], index: 2, kind: input, shape index: {}]   ;;  %s1307_s3 = inlined_call_operand.vmem [shape: f32[8,256], index: 3, kind: output, shape index: {}]  }
   0x1   :  { %v607_v0 = vld [vmem:[%s1304_s1 + $0x70] sm:$0xf]  ;;  %v820_v1 = vld [vmem:[%s1304_s1 + $0x74] sm:$0xf0]  ;;  %v599_v11 = vld [vmem:[%s1304_s1 + $0x60] sm:$0xf] }
   0x2   :  { %v671_v2 = vld [vmem:[%s1304_s1 + $0xf0] sm:$0xf]  ;;  %v608_v3 = vor.u32 %v820_v1, %v607_v0  ;;  %v836_v4 = vld [vmem:[%s1304_s1 + $0xf4] sm:$0xf0]  ;;  %v818_v13 = vld [vmem:[%s1304_s1 + $0x64] sm:$0xf0] }
   0x3   :  { %v735_v5 = vld [vmem:[%s1304_s1 + $0x170] sm:$0xf]  ;;  %v852_v6 = vld [vmem:[%s1304_s1 + $0x174] sm:$0xf0]  ;;  %v672_v7 = vor.u32 %v836_v4, %v671_v2  ;;  %v663_v14 = vld [vmem:[%s1304_s1 + $0xe0] sm:$0xf]  ;;  %v600_v16 = vor.u32 %v818_v13, %v599_v11 }
   0x4   :  { %v736_v8 = vor.u32 %v852_v6, %v735_v5  ;;  %v799_v9 = vld [vmem:[%s1304_s1 + $0x1f0] sm:$0xf]  ;;  %v868_v10 = vld [vmem:[%s1304_s1 + $0x1f4] sm:$0xf0]  ;;  %422 = vmatpush.bf16.msra.mxu0 %v608_v3  ;;  %v834_v15 = vld [vmem:[%s1304_s1 + $0xe4] sm:$0xf0] }
   0x5   :  { %v800_v12 = vor.u32 %v868_v10, %v799_v9  ;;  %435 = vmatpush.bf16.msra.mxu1 %v672_v7  ;;  %v664_v17 = vor.u32 %v834_v15, %v663_v14  ;;  %v727_v18 = vld [vmem:[%s1304_s1 + $0x160] sm:$0xf]  ;;  %v850_v19 = vld [vmem:[%s1304_s1 + $0x164] sm:$0xf0]  ;;  %v591_v23 = vld [vmem:[%s1304_s1 + $0x50] sm:$0xf] }
   0x6   :  { %448 = vmatpush.bf16.msra.mxu2 %v736_v8  ;;  %v791_v20 = vld [vmem:[%s1304_s1 + $0x1e0] sm:$0xf]  ;;  %v728_v21 = vor.u32 %v850_v19, %v727_v18  ;;  %v866_v22 = vld [vmem:[%s1304_s1 + $0x1e4] sm:$0xf0]  ;;  %v816_v24 = vld [vmem:[%s1304_s1 + $0x54] sm:$0xf0] }
   0x7   :  { %461 = vmatpush.bf16.msra.mxu3 %v800_v12  ;;  %v792_v25 = vor.u32 %v866_v22, %v791_v20  ;;  %v655_v26 = vld [vmem:[%s1304_s1 + $0xd0] sm:$0xf]  ;;  %v832_v27 = vld [vmem:[%s1304_s1 + $0xd4] sm:$0xf0]  ;;  %v592_v29 = vor.u32 %v816_v24, %v591_v23  ;;  %v583_v35 = vld [vmem:[%s1304_s1 + $0x40] sm:$0xf] }
   0x8   :  { %v719_v28 = vld [vmem:[%s1304_s1 + $0x150] sm:$0xf]  ;;  %423 = vmatpush.bf16.msra.mxu0 %v600_v16  ;;  %v848_v30 = vld [vmem:[%s1304_s1 + $0x154] sm:$0xf0]  ;;  %v656_v33 = vor.u32 %v832_v27, %v655_v26  ;;  %v814_v36 = vld [vmem:[%s1304_s1 + $0x44] sm:$0xf0] }
   0x9   :  { %v783_v31 = vld [vmem:[%s1304_s1 + $0x1d0] sm:$0xf]  ;;  %v864_v32 = vld [vmem:[%s1304_s1 + $0x1d4] sm:$0xf0]  ;;  %436 = vmatpush.bf16.msra.mxu1 %v664_v17  ;;  %v720_v34 = vor.u32 %v848_v30, %v719_v28  ;;  %v647_v37 = vld [vmem:[%s1304_s1 + $0xc0] sm:$0xf]  ;;  %v584_v44 = vor.u32 %v814_v36, %v583_v35 }
   0xa   :  { %449 = vmatpush.bf16.msra.mxu2 %v728_v21  ;;  %v784_v38 = vor.u32 %v864_v32, %v783_v31  ;;  %v830_v39 = vld [vmem:[%s1304_s1 + $0xc4] sm:$0xf0]  ;;  %v711_v40 = vld [vmem:[%s1304_s1 + $0x140] sm:$0xf]  ;;  %v575_v47 = vld [vmem:[%s1304_s1 + $0x30] sm:$0xf] }
   0xb   :  { %462 = vmatpush.bf16.msra.mxu3 %v792_v25  ;;  %v846_v41 = vld [vmem:[%s1304_s1 + $0x144] sm:$0xf0]  ;;  %v775_v42 = vld [vmem:[%s1304_s1 + $0x1c0] sm:$0xf]  ;;  %v648_v45 = vor.u32 %v830_v39, %v647_v37  ;;  %v812_v48 = vld [vmem:[%s1304_s1 + $0x34] sm:$0xf0] }
   0xc   :  { %v862_v43 = vld [vmem:[%s1304_s1 + $0x1c4] sm:$0xf0]  ;;  %424 = vmatpush.bf16.msra.mxu0 %v592_v29  ;;  %v712_v46 = vor.u32 %v846_v41, %v711_v40  ;;  %v639_v49 = vld [vmem:[%s1304_s1 + $0xb0] sm:$0xf]  ;;  %v828_v51 = vld [vmem:[%s1304_s1 + $0xb4] sm:$0xf0]  ;;  %v576_v56 = vor.u32 %v812_v48, %v575_v47 }
   0xd   :  { %437 = vmatpush.bf16.msra.mxu1 %v656_v33  ;;  %v776_v50 = vor.u32 %v862_v43, %v775_v42  ;;  %v703_v52 = vld [vmem:[%s1304_s1 + $0x130] sm:$0xf]  ;;  %v844_v53 = vld [vmem:[%s1304_s1 + $0x134] sm:$0xf0]  ;;  %v640_v57 = vor.u32 %v828_v51, %v639_v49  ;;  %v567_v59 = vld [vmem:[%s1304_s1 + $0x20] sm:$0xf] }
   0xe   :  { %450 = vmatpush.bf16.msra.mxu2 %v720_v34  ;;  %v767_v54 = vld [vmem:[%s1304_s1 + $0x1b0] sm:$0xf]  ;;  %v860_v55 = vld [vmem:[%s1304_s1 + $0x1b4] sm:$0xf0]  ;;  %v704_v58 = vor.u32 %v844_v53, %v703_v52  ;;  %v810_v60 = vld [vmem:[%s1304_s1 + $0x24] sm:$0xf0] }
   0xf   :  { %463 = vmatpush.bf16.msra.mxu3 %v784_v38  ;;  %v631_v61 = vld [vmem:[%s1304_s1 + $0xa0] sm:$0xf]  ;;  %v768_v62 = vor.u32 %v860_v55, %v767_v54  ;;  %v826_v63 = vld [vmem:[%s1304_s1 + $0xa4] sm:$0xf0]  ;;  %v568_v4 = vor.u32 %v810_v60, %v567_v59  ;;  %v559_v7 = vld [vmem:[%s1304_s1 + $0x10] sm:$0xf] }
  0x10   :  { %425 = vmatpush.bf16.msra.mxu0 %v584_v44  ;;  %v695_v0 = vld [vmem:[%s1304_s1 + $0x120] sm:$0xf]  ;;  %v842_v1 = vld [vmem:[%s1304_s1 + $0x124] sm:$0xf0]  ;;  %v632_v5 = vor.u32 %v826_v63, %v631_v61  ;;  %v808_v8 = vld [vmem:[%s1304_s1 + $0x14] sm:$0xf0] }
  0x11   :  { %438 = vmatpush.bf16.msra.mxu1 %v648_v45  ;;  %v759_v2 = vld [vmem:[%s1304_s1 + $0x1a0] sm:$0xf]  ;;  %v858_v3 = vld [vmem:[%s1304_s1 + $0x1a4] sm:$0xf0]  ;;  %v696_v6 = vor.u32 %v842_v1, %v695_v0  ;;  %v623_v9 = vld [vmem:[%s1304_s1 + $0x90] sm:$0xf]  ;;  %v560_v16 = vor.u32 %v808_v8, %v559_v7 }
  0x12   :  { %451 = vmatpush.bf16.msra.mxu2 %v712_v46  ;;  %v760_v10 = vor.u32 %v858_v3, %v759_v2  ;;  %v824_v11 = vld [vmem:[%s1304_s1 + $0x94] sm:$0xf0]  ;;  %v687_v12 = vld [vmem:[%s1304_s1 + $0x110] sm:$0xf]  ;;  %v551_v17 = vld [vmem:[%s1304_s1] sm:$0xf] }
  0x13   :  { %464 = vmatpush.bf16.msra.mxu3 %v776_v50  ;;  %v840_v13 = vld [vmem:[%s1304_s1 + $0x114] sm:$0xf0]  ;;  %v751_v14 = vld [vmem:[%s1304_s1 + $0x190] sm:$0xf]  ;;  %v806_v18 = vld [vmem:[%s1304_s1 + $0x4] sm:$0xf0]  ;;  %v624_v20 = vor.u32 %v824_v11, %v623_v9 }
  0x14   :  { %426 = vmatpush.bf16.msra.mxu0 %v576_v56  ;;  %v856_v15 = vld [vmem:[%s1304_s1 + $0x194] sm:$0xf0]  ;;  %v615_v19 = vld [vmem:[%s1304_s1 + $0x80] sm:$0xf]  ;;  %v688_v21 = vor.u32 %v840_v13, %v687_v12  ;;  %v822_v22 = vld [vmem:[%s1304_s1 + $0x84] sm:$0xf0]  ;;  %v552_v32 = vor.u32 %v806_v18, %v551_v17 }
  0x15   :  { %439 = vmatpush.bf16.msra.mxu1 %v640_v57  ;;  %v679_v23 = vld [vmem:[%s1304_s1 + $0x100] sm:$0xf]  ;;  %v838_v24 = vld [vmem:[%s1304_s1 + $0x104] sm:$0xf0]  ;;  %v752_v25 = vor.u32 %v856_v15, %v751_v14  ;;  %v819_v28 = vld [vmem:[%s1304_s1 + $0x74] sm:$0xf]  ;;  %v616_v37 = vor.u32 %v822_v22, %v615_v19 }
  0x16   :  { %452 = vmatpush.bf16.msra.mxu2 %v704_v58  ;;  %v743_v26 = vld [vmem:[%s1304_s1 + $0x180] sm:$0xf]  ;;  %v854_v27 = vld [vmem:[%s1304_s1 + $0x184] sm:$0xf0]  ;;  %v609_v29 = vld [vmem:[%s1304_s1 + $0x78] sm:$0xf0]  ;;  %v680_v38 = vor.u32 %v838_v24, %v679_v23 }
  0x17   :  { %465 = vmatpush.bf16.msra.mxu3 %v768_v62  ;;  %v835_v30 = vld [vmem:[%s1304_s1 + $0xf4] sm:$0xf]  ;;  %v23_v31 = vld [vmem:[%s1305_s0 + $0x8] sm:$0xff]  ;;  %v673_v33 = vld [vmem:[%s1304_s1 + $0xf8] sm:$0xf0]  ;;  %v744_v42 = vor.u32 %v854_v27, %v743_v26  ;;  %v612_v43 = vor.u32 %v819_v28, %v609_v29 }
  0x18   :  { %427 = vmatpush.bf16.msra.mxu0 %v568_v4  ;;  %v851_v34 = vld [vmem:[%s1304_s1 + $0x174] sm:$0xf]  ;;  %v737_v35 = vld [vmem:[%s1304_s1 + $0x178] sm:$0xf0]  ;;  %v92_v36 = vunpack.c.l.b16 %v23_v31  ;;  %v93_v41 = vunpack.c.h.b16 %v23_v31  ;;  %v22_v44 = vld [vmem:[%s1305_s0] sm:$0xff]  ;;  %v676_v45 = vor.u32 %v835_v30, %v673_v33 }
  0x19   :  { %440 = vmatpush.bf16.msra.mxu1 %v632_v5  ;;  %v867_v39 = vld [vmem:[%s1304_s1 + $0x1f4] sm:$0xf]  ;;  %v801_v40 = vld [vmem:[%s1304_s1 + $0x1f8] sm:$0xf0]  ;;  %v740_v46 = vor.u32 %v851_v34, %v737_v35  ;;  %v817_v47 = vld [vmem:[%s1304_s1 + $0x64] sm:$0xf]  ;;  %v90_v50 = vunpack.c.l.b16 %v22_v44  ;;  %v91_v51 = vunpack.c.h.b16 %v22_v44 }
  0x1a   :  { %453 = vmatpush.bf16.msra.mxu2 %v696_v6  ;;  %v601_v48 = vld [vmem:[%s1304_s1 + $0x68] sm:$0xf0]  ;;  %v833_v49 = vld [vmem:[%s1304_s1 + $0xe4] sm:$0xf]  ;;  %v804_v52 = vor.u32 %v867_v39, %v801_v40  ;;  %v1129_v56 = vpack.c.b16 %v92_v36, %v92_v36  ;;  %v1137_v59 = vpack.c.b16 %v93_v41, %v93_v41  ;;  %v815_v1 = vld [vmem:[%s1304_s1 + $0x54] sm:$0xf] }
  0x1b   :  { %466 = vmatpush.bf16.msra.mxu3 %v760_v10  ;;  %v665_v53 = vld [vmem:[%s1304_s1 + $0xe8] sm:$0xf0]  ;;  %v849_v54 = vld [vmem:[%s1304_s1 + $0x164] sm:$0xf]  ;;  %v1139_v60 = vpack.c.b16 %v90_v50, %v90_v50  ;;  %v604_v61 = vor.u32 %v817_v47, %v601_v48  ;;  %v1141_v62 = vpack.c.b16 %v91_v51, %v91_v51  ;;  %v593_v2 = vld [vmem:[%s1304_s1 + $0x58] sm:$0xf0] }
  0x1c   :  { %428 = vmatpush.bf16.msra.mxu0 %v560_v16  ;;  %v729_v55 = vld [vmem:[%s1304_s1 + $0x168] sm:$0xf0]  ;;  %v865_v57 = vld [vmem:[%s1304_s1 + $0x1e4] sm:$0xf]  ;;  %v668_v63 = vor.u32 %v833_v49, %v665_v53  ;;  %v831_v3 = vld [vmem:[%s1304_s1 + $0xd4] sm:$0xf]  ;;  %v596_v10 = vor.u32 %v815_v1, %v593_v2 }
  0x1d   :  { %441 = vmatpush.bf16.msra.mxu1 %v624_v20  ;;  %v793_v58 = vld [vmem:[%s1304_s1 + $0x1e8] sm:$0xf0]  ;;  %v732_v0 = vor.u32 %v849_v54, %v729_v55  ;;  %v657_v5 = vld [vmem:[%s1304_s1 + $0xd8] sm:$0xf0]  ;;  %v847_v6 = vld [vmem:[%s1304_s1 + $0x154] sm:$0xf] }
  0x1e   :  { %454 = vmatpush.bf16.msra.mxu2 %v688_v21  ;;  %v796_v4 = vor.u32 %v865_v57, %v793_v58  ;;  %v721_v7 = vld [vmem:[%s1304_s1 + $0x158] sm:$0xf0]  ;;  %v863_v8 = vld [vmem:[%s1304_s1 + $0x1d4] sm:$0xf]  ;;  %v660_v11 = vor.u32 %v831_v3, %v657_v5  ;;  %v813_v13 = vld [vmem:[%s1304_s1 + $0x44] sm:$0xf] }
  0x1f   :  { %467 = vmatpush.bf16.msra.mxu3 %v752_v25  ;;  %v785_v9 = vld [vmem:[%s1304_s1 + $0x1d8] sm:$0xf0]  ;;  %v724_v12 = vor.u32 %v847_v6, %v721_v7  ;;  %v585_v14 = vld [vmem:[%s1304_s1 + $0x48] sm:$0xf0]  ;;  %v829_v15 = vld [vmem:[%s1304_s1 + $0xc4] sm:$0xf] }
  0x20   :  { %429 = vmatpush.bf16.msra.mxu0 %v552_v32  ;;  %v788_v16 = vor.u32 %v863_v8, %v785_v9  ;;  %v649_v17 = vld [vmem:[%s1304_s1 + $0xc8] sm:$0xf0]  ;;  %v845_v18 = vld [vmem:[%s1304_s1 + $0x144] sm:$0xf]  ;;  %v588_v22 = vor.u32 %v813_v13, %v585_v14  ;;  %v811_v25 = vld [vmem:[%s1304_s1 + $0x34] sm:$0xf] }
  0x21   :  { %442 = vmatpush.bf16.msra.mxu1 %v616_v37  ;;  %v713_v19 = vld [vmem:[%s1304_s1 + $0x148] sm:$0xf0]  ;;  %v861_v20 = vld [vmem:[%s1304_s1 + $0x1c4] sm:$0xf]  ;;  %v652_v23 = vor.u32 %v829_v15, %v649_v17  ;;  %v577_v26 = vld [vmem:[%s1304_s1 + $0x38] sm:$0xf0] }
  0x22   :  { %455 = vmatpush.bf16.msra.mxu2 %v680_v38  ;;  %v777_v21 = vld [vmem:[%s1304_s1 + $0x1c8] sm:$0xf0]  ;;  %v716_v24 = vor.u32 %v845_v18, %v713_v19  ;;  %v827_v27 = vld [vmem:[%s1304_s1 + $0xb4] sm:$0xf]  ;;  %v641_v29 = vld [vmem:[%s1304_s1 + $0xb8] sm:$0xf0]  ;;  %v580_v34 = vor.u32 %v811_v25, %v577_v26 }
  0x23   :  { %468 = vmatpush.bf16.msra.mxu3 %v744_v42  ;;  %430 = vmatmul.bf16.vlgmr.msra.gmra.mxu0 %v1139_v60  ;;  %v780_v28 = vor.u32 %v861_v20, %v777_v21  ;;  %v843_v30 = vld [vmem:[%s1304_s1 + $0x134] sm:$0xf]  ;;  %v705_v31 = vld [vmem:[%s1304_s1 + $0x138] sm:$0xf0]  ;;  %v644_v35 = vor.u32 %v827_v27, %v641_v29  ;;  %v809_v37 = vld [vmem:[%s1304_s1 + $0x24] sm:$0xf] }
  0x24   :  { %474 = vmatpush.bf16.msrb.mxu0 %v612_v43  ;;  %443 = vmatmul.bf16.vlgmr.msra.gmra.mxu1 %v1141_v62  ;;  %v859_v32 = vld [vmem:[%s1304_s1 + $0x1b4] sm:$0xf]  ;;  %v769_v33 = vld [vmem:[%s1304_s1 + $0x1b8] sm:$0xf0]  ;;  %v708_v36 = vor.u32 %v843_v30, %v705_v31  ;;  %v569_v38 = vld [vmem:[%s1304_s1 + $0x28] sm:$0xf0] }
  0x25   :  { %487 = vmatpush.bf16.msrb.mxu1 %v676_v45  ;;  %456 = vmatmul.bf16.vlgmr.msra.gmra.mxu2 %v1129_v56  ;;  %v825_v39 = vld [vmem:[%s1304_s1 + $0xa4] sm:$0xf]  ;;  %v772_v40 = vor.u32 %v859_v32, %v769_v33  ;;  %v633_v41 = vld [vmem:[%s1304_s1 + $0xa8] sm:$0xf0]  ;;  %v807_v49 = vld [vmem:[%s1304_s1 + $0x14] sm:$0xf] }
  0x26   :  { %500 = vmatpush.bf16.msrb.mxu2 %v740_v46  ;;  %469 = vmatmul.bf16.vlgmr.msra.gmra.mxu3 %v1137_v59  ;;  %v841_v42 = vld [vmem:[%s1304_s1 + $0x124] sm:$0xf]  ;;  %v697_v43 = vld [vmem:[%s1304_s1 + $0x128] sm:$0xf0]  ;;  %v572_v46 = vor.u32 %v809_v37, %v569_v38  ;;  %v636_v47 = vor.u32 %v825_v39, %v633_v41  ;;  %v561_v50 = vld [vmem:[%s1304_s1 + $0x18] sm:$0xf0] }
  0x27   :  { %513 = vmatpush.bf16.msrb.mxu3 %v804_v52  ;;  %v857_v44 = vld [vmem:[%s1304_s1 + $0x1a4] sm:$0xf]  ;;  %v761_v45 = vld [vmem:[%s1304_s1 + $0x1a8] sm:$0xf0]  ;;  %v700_v48 = vor.u32 %v841_v42, %v697_v43  ;;  %v823_v51 = vld [vmem:[%s1304_s1 + $0x94] sm:$0xf] }
  0x28   :  { %475 = vmatpush.bf16.msrb.mxu0 %v604_v61  ;;  %v764_v52 = vor.u32 %v857_v44, %v761_v45  ;;  %v625_v53 = vld [vmem:[%s1304_s1 + $0x98] sm:$0xf0]  ;;  %v839_v54 = vld [vmem:[%s1304_s1 + $0x114] sm:$0xf]  ;;  %v564_v61 = vor.u32 %v807_v49, %v561_v50  ;;  %v805_v1 = vld [vmem:[%s1304_s1 + $0x4] sm:$0xf] }
  0x29   :  { %488 = vmatpush.bf16.msrb.mxu1 %v668_v63  ;;  %v689_v55 = vld [vmem:[%s1304_s1 + $0x118] sm:$0xf0]  ;;  %v855_v57 = vld [vmem:[%s1304_s1 + $0x194] sm:$0xf]  ;;  %v628_v63 = vor.u32 %v823_v51, %v625_v53  ;;  %v553_v2 = vld [vmem:[%s1304_s1 + $0x8] sm:$0xf0] }
  0x2a   :  { %501 = vmatpush.bf16.msrb.mxu2 %v732_v0  ;;  %v753_v58 = vld [vmem:[%s1304_s1 + $0x198] sm:$0xf0]  ;;  %v692_v0 = vor.u32 %v839_v54, %v689_v55  ;;  %v821_v3 = vld [vmem:[%s1304_s1 + $0x84] sm:$0xf]  ;;  %v617_v5 = vld [vmem:[%s1304_s1 + $0x88] sm:$0xf0] }
  0x2b   :  { %514 = vmatpush.bf16.msrb.mxu3 %v796_v4  ;;  %v756_v4 = vor.u32 %v855_v57, %v753_v58  ;;  %v837_v6 = vld [vmem:[%s1304_s1 + $0x104] sm:$0xf]  ;;  %v681_v7 = vld [vmem:[%s1304_s1 + $0x108] sm:$0xf0]  ;;  %v535_v17 = vld [vmem:[%s1306_s2] sm:$0x3] }
  0x2c   :  { %476 = vmatpush.bf16.msrb.mxu0 %v596_v10  ;;  %v853_v8 = vld [vmem:[%s1304_s1 + $0x184] sm:$0xf]  ;;  %v745_v9 = vld [vmem:[%s1304_s1 + $0x188] sm:$0xf0]  ;;  %v556_v10 = vor.u32 %v805_v1, %v553_v2  ;;  %v537_v21 = vperm.slane %v535_v17, 0  ;;  %v538_v30 = vperm.slane %v535_v17, 1 }
  0x2d   :  { %489 = vmatpush.bf16.msrb.mxu1 %v660_v11  ;;  %v620_v11 = vor.u32 %v821_v3, %v617_v5  ;;  %v748_v13 = vor.u32 %v853_v8, %v745_v9 }
  0x2e   :  { %502 = vmatpush.bf16.msrb.mxu2 %v724_v12  ;;  %v684_v12 = vor.u32 %v837_v6, %v681_v7 }
  0x2f   :  { %515 = vmatpush.bf16.msrb.mxu3 %v788_v16 }
  0x30   :  { %477 = vmatpush.bf16.msrb.mxu0 %v588_v22 }
  0x31   :  { %490 = vmatpush.bf16.msrb.mxu1 %v652_v23 }
  0x32   :  { %503 = vmatpush.bf16.msrb.mxu2 %v716_v24 }
  0x33   :  { %516 = vmatpush.bf16.msrb.mxu3 %v780_v28 }
  0x34   :  { %478 = vmatpush.bf16.msrb.mxu0 %v580_v34 }
  0x35   :  { %491 = vmatpush.bf16.msrb.mxu1 %v644_v35 }
  0x36   :  { %504 = vmatpush.bf16.msrb.mxu2 %v708_v36 }
  0x37   :  { %517 = vmatpush.bf16.msrb.mxu3 %v772_v40 }
  0x38   :  { %479 = vmatpush.bf16.msrb.mxu0 %v572_v46 }
  0x39   :  { %492 = vmatpush.bf16.msrb.mxu1 %v636_v47 }
  0x3a   :  { %505 = vmatpush.bf16.msrb.mxu2 %v700_v48 }
  0x3b   :  { %518 = vmatpush.bf16.msrb.mxu3 %v764_v52 }
  0x3c   :  { %480 = vmatpush.bf16.msrb.mxu0 %v564_v61 }
  0x3d   :  { %493 = vmatpush.bf16.msrb.mxu1 %v628_v63 }
  0x3e   :  { %506 = vmatpush.bf16.msrb.mxu2 %v692_v0 }
  0x3f   :  { %519 = vmatpush.bf16.msrb.mxu3 %v756_v4 }
  0x40   :  { %481 = vmatpush.bf16.msrb.mxu0 %v556_v10 }
  0x41   :  { %494 = vmatpush.bf16.msrb.mxu1 %v620_v11 }
  0x42   :  { %507 = vmatpush.bf16.msrb.mxu2 %v684_v12 }
  0x43   :  { %520 = vmatpush.bf16.msrb.mxu3 %v748_v13  ;;  %482 = vmatmul.bf16.vlgmr.msrb.gmra.mxu0 %v1139_v60 }
  0x44   :  { %495 = vmatmul.bf16.vlgmr.msrb.gmra.mxu1 %v1141_v62 }
  0x45   :  { %508 = vmatmul.bf16.vlgmr.msrb.gmra.mxu2 %v1129_v56 }
  0x46   :  { %521 = vmatmul.bf16.vlgmr.msrb.gmra.mxu3 %v1137_v59 }
  0xa0   :  { %v431_v14 = vpop.f32.mrf.mxu0 }
  0xa1   :  { %v444_v15 = vpop.f32.mrf.mxu1 }
  0xa2   :  { %v445_v16 = vadd.f32 %v444_v15, %v431_v14 }
  0xa8   :  { %v457_v18 = vpop.f32.mrf.mxu2  ;;  %v433_v23 = vpop.f32.mrf.mxu0 }
  0xa9   :  { %v458_v19 = vadd.f32 %v457_v18, %v445_v16  ;;  %v470_v20 = vpop.f32.mrf.mxu3  ;;  %v446_v60 = vpop.f32.mrf.mxu1 }
  0xab   :  { %v471_v22 = vadd.f32 %v470_v20, %v458_v19 }
  0xad   :  { %v541_v24 = vadd.f32 %v537_v21, %v471_v22 }
  0xaf   :  { %543 = vst [vmem:[%s1307_s3] sm:$0xff] %v541_v24 }
  0xb0   :  { %v459_v56 = vpop.f32.mrf.mxu2 }
  0xb1   :  { %v472_v59 = vpop.f32.mrf.mxu3 }
  0xc0   :  { %v483_v62 = vpop.f32.mrf.mxu0 }
  0xc1   :  { %v496_v25 = vpop.f32.mrf.mxu1 }
  0xc2   :  { %v497_v26 = vadd.f32 %v496_v25, %v483_v62 }
  0xc8   :  { %v509_v27 = vpop.f32.mrf.mxu2  ;;  %v485_v31 = vpop.f32.mrf.mxu0 }
  0xc9   :  { %v510_v28 = vadd.f32 %v509_v27, %v497_v26  ;;  %v522_v29 = vpop.f32.mrf.mxu3  ;;  %v498_v32 = vpop.f32.mrf.mxu1 }
  0xcb   :  { %v523_v33 = vadd.f32 %v522_v29, %v510_v28 }
  0xcd   :  { %v542_v34 = vadd.f32 %v538_v30, %v523_v33 }
  0xcf   :  { %544 = vst [vmem:[%s1307_s3 + $0x8] sm:$0xff] %v542_v34 }
  0xd0   :  { %v511_v35 = vpop.f32.mrf.mxu2 }
  0xd1   :  { %v524_v36 = vpop.f32.mrf.mxu3 }

</bundles_post_ra>
